<compile_context>
chip_gen: v7x
topology: tpu7x:2x2x1
jax: 0.10.0
libtpu: 0.0.40
codegen_flags: <defaults>
</compile_context>

<pallas_src>
import functools
import math

import jax
import jax.numpy as jnp
from jax.experimental import pallas as pl
from jax.experimental.pallas import tpu as pltpu

LANES = 128


# ------------------------------- Pallas kernel ------------------------------- #

def _encoder_fused_kernel(x_ref, w1_ref, b1_ref, w2_ref, b2_ref, mask_ref,
                          o_ref, a1_ref, *, lp, wp2, off0, cp):
    # x_ref   : (1, Lext, 4*Cin) bf16  space-to-depth input on the padded flat grid
    # w1_ref  : (9, 4*Cin, Cp)   bf16  conv1 weights (AvgPool + BN1 scale folded in)
    # b1_ref  : (1, Cp)          f32   folded conv1/BN1 bias
    # w2_ref  : (9, Cp, Cp)      bf16  conv2 weights (BN2 scale folded in)
    # b2_ref  : (1, Cp)          f32   folded conv2/BN2 bias
    # mask_ref: (Lp, 1)          f32   1 on interior grid rows, 0 on the padded ring
    # o_ref   : (1, Lp, Cp)      f32   conv2 output on the padded grid
    # a1_ref  : VMEM scratch (Lext, Cp) f32  conv1 activation + zero halos
    x = x_ref[0].astype(jnp.float32)                      # single input load

    # ---- conv1 (+ fused AvgPool + folded BN1 scale) ----
    acc1 = jnp.zeros((lp, cp), jnp.float32)
    for t in range(9):                                    # static unroll over taps
        kh, kw = t // 3, t % 3
        s = off0 + (kh - 1) * wp2 + (kw - 1)              # static row shift
        lhs = x[s:s + lp, :].astype(jnp.bfloat16)         # bf16 MXU operand
        acc1 = acc1 + jnp.dot(lhs, w1_ref[t],
                              preferred_element_type=jnp.float32)
    # bias + ReLU; zero the ring so it acts as conv2's zero padding.
    a1 = jnp.maximum(acc1 + b1_ref[...], 0.0) * mask_ref[...]

    # conv1 activation stays in VMEM (halo rows explicitly zeroed).
    a1_ref[pl.ds(0, off0), :] = jnp.zeros((off0, cp), jnp.float32)
    a1_ref[pl.ds(off0 + lp, off0), :] = jnp.zeros((off0, cp), jnp.float32)
    a1_ref[pl.ds(off0, lp), :] = a1

    # ---- conv2 (+ folded BN2 scale) ----
    acc2 = jnp.zeros((lp, cp), jnp.float32)
    for t in range(9):
        kh, kw = t // 3, t % 3
        s = off0 + (kh - 1) * wp2 + (kw - 1)
        lhs = a1_ref[pl.ds(s, lp), :].astype(jnp.bfloat16)
        acc2 = acc2 + jnp.dot(lhs, w2_ref[t],
                              preferred_element_type=jnp.float32)
    o_ref[0] = jnp.maximum(acc2 + b2_ref[...], 0.0).astype(o_ref.dtype)


# ------------------------------ Pallas wrapper ------------------------------- #

def encoder_block_forward(x_nchw, p, eps=1e-5):
    """Encoder_block forward (eval semantics). NCHW f32 in -> NCHW f32 out."""
    N, Cin, H, W = x_nchw.shape
    Cout = p["w1"].shape[-1]
    Ho, Wo = H // 2, W // 2
    Hp2, Wp2 = Ho + 2, Wo + 2
    Lp = Hp2 * Wp2                       # flattened padded pooled grid
    off0 = Wp2 + 1                       # halo rows needed by the 3x3 row shifts
    Lext = Lp + 2 * off0
    cp = max(LANES, ((Cout + LANES - 1) // LANES) * LANES)   # lane-dense channels

    # -------- glue: layout plumbing (one relayout of x) + parameter folding ------
    # Space-to-depth so the 2x2 AvgPool window sits on the lane axis, pad the pooled
    # grid by 1 (conv1 halo), flatten spatial to 1D, add off0 zero rows per end.
    x_s2d = (x_nchw.reshape(N, Cin, Ho, 2, Wo, 2)
             .transpose(0, 2, 4, 3, 5, 1)
             .reshape(N, Ho, Wo, 4 * Cin))
    x_pad = jnp.pad(x_s2d, ((0, 0), (1, 1), (1, 1), (0, 0)))
    x_ext = jnp.pad(x_pad.reshape(N, Lp, 4 * Cin), ((0, 0), (off0, off0), (0, 0)))
    x_ext = x_ext.astype(jnp.bfloat16)                    # halve HBM read traffic

    # Fold BN scale into conv weights, AvgPool (x0.25 over the 2x2 window) into
    # conv1 weights, and zero-pad channel dims to the 128-lane width.
    s1 = p["g1"] / jnp.sqrt(p["v1"] + eps)
    s2 = p["g2"] / jnp.sqrt(p["v2"] + eps)
    b1f = p["beta1"] + (p["b1"] - p["m1"]) * s1
    b2f = p["beta2"] + (p["b2"] - p["m2"]) * s2
    w1q = (jnp.tile(p["w1"] * s1, (1, 1, 4, 1)) * 0.25).reshape(9, 4 * Cin, Cout)
    w2q = (p["w2"] * s2).reshape(9, Cout, Cout)
    w1p = jnp.pad(w1q, ((0, 0), (0, 0), (0, cp - Cout))).astype(jnp.bfloat16)
    w2p = jnp.pad(w2q, ((0, 0), (0, cp - Cout), (0, cp - Cout))).astype(jnp.bfloat16)
    b1p = jnp.pad(b1f, (0, cp - Cout)).reshape(1, cp).astype(jnp.float32)
    b2p = jnp.pad(b2f, (0, cp - Cout)).reshape(1, cp).astype(jnp.float32)
    mask = (jnp.zeros((Hp2, Wp2), jnp.float32)
            .at[1:Ho + 1, 1:Wo + 1].set(1.0).reshape(Lp, 1))

    kernel = functools.partial(_encoder_fused_kernel,
                               lp=Lp, wp2=Wp2, off0=off0, cp=cp)
    flops = 2 * N * Lp * 9 * (4 * Cin * cp + cp * cp)
    bytes_accessed = (N * Lext * 4 * Cin * 2 + N * Lp * cp * 4
                      + 9 * (4 * Cin + cp) * cp * 2 + Lp * 4 + 4 * cp * 4)

    y = pl.pallas_call(
        kernel,
        out_shape=jax.ShapeDtypeStruct((N, Lp, cp), jnp.float32),
        grid=(N,),
        in_specs=[
            pl.BlockSpec((1, Lext, 4 * Cin), lambda n: (n, 0, 0)),
            pl.BlockSpec((9, 4 * Cin, cp), lambda n: (0, 0, 0)),
            pl.BlockSpec((1, cp), lambda n: (0, 0)),
            pl.BlockSpec((9, cp, cp), lambda n: (0, 0, 0)),
            pl.BlockSpec((1, cp), lambda n: (0, 0)),
            pl.BlockSpec((Lp, 1), lambda n: (0, 0)),
        ],
        out_specs=pl.BlockSpec((1, Lp, cp), lambda n: (n, 0, 0)),
        scratch_shapes=[pltpu.VMEM((Lext, cp), jnp.float32)],
        compiler_params=pltpu.CompilerParams(
            dimension_semantics=("parallel",),
            vmem_limit_bytes=64 * 1024 * 1024),
        cost_estimate=pl.CostEstimate(flops=flops, transcendentals=0,
                                      bytes_accessed=bytes_accessed),
    )(x_ext, w1p, b1p, w2p, b2p, mask)

    # glue: drop the padded ring / padded channels, back to NCHW.
    y = y.reshape(N, Hp2, Wp2, cp)[:, 1:Ho + 1, 1:Wo + 1, :Cout]
    return jnp.transpose(y, (0, 3, 1, 2))


# ------------------------- pure-JAX reference (check) ------------------------ #

def reference_forward(x_nchw, p, eps=1e-5):
    x = jnp.transpose(x_nchw, (0, 2, 3, 1))
    x = (x[:, 0::2, 0::2, :] + x[:, 0::2, 1::2, :]
         + x[:, 1::2, 0::2, :] + x[:, 1::2, 1::2, :]) * 0.25

    def cbr(x, w, b, g, bt, m, v):
        y = jax.lax.conv_general_dilated(
            x, w, window_strides=(1, 1), padding=((1, 1), (1, 1)),
            dimension_numbers=("NHWC", "HWIO", "NHWC")) + b
        y = (y - m) / jnp.sqrt(v + eps) * g + bt
        return jnp.maximum(y, 0.0)

    x = cbr(x, p["w1"], p["b1"], p["g1"], p["beta1"], p["m1"], p["v1"])
    x = cbr(x, p["w2"], p["b2"], p["g2"], p["beta2"], p["m2"], p["v2"])
    return jnp.transpose(x, (0, 3, 1, 2))


# ---------------------------------- main ------------------------------------- #

def make_params(key, cin, cout):
    ks = jax.random.split(key, 12)
    fan1 = cin * 3 * 3
    fan2 = cout * 3 * 3
    # Conv weights: kaiming_normal (fan_in, gain=sqrt(2)), stored HWIO.
    w1 = jax.random.normal(ks[0], (3, 3, cin, cout), jnp.float32) * math.sqrt(2.0 / fan1)
    w2 = jax.random.normal(ks[1], (3, 3, cout, cout), jnp.float32) * math.sqrt(2.0 / fan2)
    b1 = jax.random.uniform(ks[2], (cout,), jnp.float32, -1.0, 1.0) / math.sqrt(fan1)
    b2 = jax.random.uniform(ks[3], (cout,), jnp.float32, -1.0, 1.0) / math.sqrt(fan2)
    # BN params: random deterministic values so the folded BN path is non-trivial.
    g1 = jax.random.uniform(ks[4], (cout,), jnp.float32, 0.5, 1.5)
    g2 = jax.random.uniform(ks[5], (cout,), jnp.float32, 0.5, 1.5)
    beta1 = 0.1 * jax.random.normal(ks[6], (cout,), jnp.float32)
    beta2 = 0.1 * jax.random.normal(ks[7], (cout,), jnp.float32)
    m1 = 0.1 * jax.random.normal(ks[8], (cout,), jnp.float32)
    m2 = 0.1 * jax.random.normal(ks[9], (cout,), jnp.float32)
    v1 = jax.random.uniform(ks[10], (cout,), jnp.float32, 0.5, 1.5)
    v2 = jax.random.uniform(ks[11], (cout,), jnp.float32, 0.5, 1.5)
    return dict(w1=w1, b1=b1, g1=g1, beta1=beta1, m1=m1, v1=v1,
                w2=w2, b2=b2, g2=g2, beta2=beta2, m2=m2, v2=v2)


if __name__ == "__main__":
    key = jax.random.PRNGKey(0)
    k_x, k_p = jax.random.split(key)

    N, Cin, H, W = 2, 4, 16, 16      # input (PyTorch NCHW), matches encode_block1
    Cout = 8                         # output_dim of the Encoder_block
    x = jax.random.normal(k_x, (N, Cin, H, W), jnp.float32)
    params = make_params(k_p, Cin, Cout)

    out = jax.block_until_ready(encoder_block_forward(x, params))
    ref = jax.block_until_ready(reference_forward(x, params))

    assert out.shape == (N, Cout, H // 2, W // 2), out.shape
    err = float(jnp.max(jnp.abs(out - ref)))
    # bf16 MXU operands with f32 accumulation vs. pure-f32 reference.
    assert err < 1e-1, err
    print("KERNEL_OK")
</pallas_src>

<mosaic_0001>
module attributes {stable_mosaic.version = 11 : i64} {
  func.func @_encoder_fused_kernel(%arg0: i32, %arg1: memref<1x122x16xbf16, #tpu.memory_space<vmem>>, %arg2: memref<9x16x128xbf16, #tpu.memory_space<vmem>>, %arg3: memref<1x128xf32, #tpu.memory_space<vmem>>, %arg4: memref<9x128x128xbf16, #tpu.memory_space<vmem>>, %arg5: memref<1x128xf32, #tpu.memory_space<vmem>>, %arg6: memref<100x1xf32, #tpu.memory_space<vmem>>, %arg7: memref<1x100x128xf32, #tpu.memory_space<vmem>>, %arg8: memref<122x128xf32, #tpu.memory_space<vmem>>) attributes {dimension_semantics = [#tpu.dimension_semantics<parallel>], iteration_bounds = array<i64: 2>, scalar_prefetch = 0 : i64, scratch_operands = 1 : i64, tpu.core_type = #tpu.core_type<tc>, window_params = [{transform_indices = @transform_0, window_bounds = array<i64: 1, 122, 16>}, {pipeline_mode = #tpu.pipeline_mode<synchronous>, transform_indices = @transform_1, window_bounds = array<i64: 9, 16, 128>}, {pipeline_mode = #tpu.pipeline_mode<synchronous>, transform_indices = @transform_2, window_bounds = array<i64: 1, 128>}, {pipeline_mode = #tpu.pipeline_mode<synchronous>, transform_indices = @transform_3, window_bounds = array<i64: 9, 128, 128>}, {pipeline_mode = #tpu.pipeline_mode<synchronous>, transform_indices = @transform_4, window_bounds = array<i64: 1, 128>}, {pipeline_mode = #tpu.pipeline_mode<synchronous>, transform_indices = @transform_5, window_bounds = array<i64: 100, 1>}, {transform_indices = @transform_6, window_bounds = array<i64: 1, 100, 128>}]} {
    %c0 = arith.constant 0 : index
    %c0_0 = arith.constant 0 : index
    %c0_1 = arith.constant 0 : index
    %0 = vector.load %arg1[%c0, %c0_0, %c0_1] : memref<1x122x16xbf16, #tpu.memory_space<vmem>>, vector<1x122x16xbf16>
    %1 = vector.shape_cast %0 : vector<1x122x16xbf16> to vector<122x16xbf16>
    %2 = arith.extf %1 : vector<122x16xbf16> to vector<122x16xf32>
    %cst = arith.constant 0.000000e+00 : f32
    %3 = vector.broadcast %cst : f32 to vector<100x128xf32>
    %4 = vector.extract_strided_slice %2 {offsets = [0, 0], sizes = [100, 16], strides = [1, 1]} : vector<122x16xf32> to vector<100x16xf32>
    %5 = arith.truncf %4 : vector<100x16xf32> to vector<100x16xbf16>
    %c0_2 = arith.constant 0 : index
    %c0_3 = arith.constant 0 : index
    %c0_4 = arith.constant 0 : index
    %6 = vector.load %arg2[%c0_2, %c0_3, %c0_4] : memref<9x16x128xbf16, #tpu.memory_space<vmem>>, vector<1x16x128xbf16>
    %7 = vector.shape_cast %6 : vector<1x16x128xbf16> to vector<16x128xbf16>
    %cst_5 = arith.constant dense<0.000000e+00> : vector<100x128xf32>
    %8 = tpu.matmul %5, %7, %cst_5 {dimension_numbers = #tpu.dot_dimension_numbers<[1], [0], [0], [1], [0, 0, 1, 1], [], []>} : vector<100x16xbf16>, vector<16x128xbf16>, vector<100x128xf32> -> vector<100x128xf32>
    %9 = arith.addf %3, %8 : vector<100x128xf32>
    %10 = vector.extract_strided_slice %2 {offsets = [1, 0], sizes = [100, 16], strides = [1, 1]} : vector<122x16xf32> to vector<100x16xf32>
    %11 = arith.truncf %10 : vector<100x16xf32> to vector<100x16xbf16>
    %c1 = arith.constant 1 : index
    %c0_6 = arith.constant 0 : index
    %c0_7 = arith.constant 0 : index
    %12 = vector.load %arg2[%c1, %c0_6, %c0_7] : memref<9x16x128xbf16, #tpu.memory_space<vmem>>, vector<1x16x128xbf16>
    %13 = vector.shape_cast %12 : vector<1x16x128xbf16> to vector<16x128xbf16>
    %cst_8 = arith.constant dense<0.000000e+00> : vector<100x128xf32>
    %14 = tpu.matmul %11, %13, %cst_8 {dimension_numbers = #tpu.dot_dimension_numbers<[1], [0], [0], [1], [0, 0, 1, 1], [], []>} : vector<100x16xbf16>, vector<16x128xbf16>, vector<100x128xf32> -> vector<100x128xf32>
    %15 = arith.addf %9, %14 : vector<100x128xf32>
    %16 = vector.extract_strided_slice %2 {offsets = [2, 0], sizes = [100, 16], strides = [1, 1]} : vector<122x16xf32> to vector<100x16xf32>
    %17 = arith.truncf %16 : vector<100x16xf32> to vector<100x16xbf16>
    %c2 = arith.constant 2 : index
    %c0_9 = arith.constant 0 : index
    %c0_10 = arith.constant 0 : index
    %18 = vector.load %arg2[%c2, %c0_9, %c0_10] : memref<9x16x128xbf16, #tpu.memory_space<vmem>>, vector<1x16x128xbf16>
    %19 = vector.shape_cast %18 : vector<1x16x128xbf16> to vector<16x128xbf16>
    %cst_11 = arith.constant dense<0.000000e+00> : vector<100x128xf32>
    %20 = tpu.matmul %17, %19, %cst_11 {dimension_numbers = #tpu.dot_dimension_numbers<[1], [0], [0], [1], [0, 0, 1, 1], [], []>} : vector<100x16xbf16>, vector<16x128xbf16>, vector<100x128xf32> -> vector<100x128xf32>
    %21 = arith.addf %15, %20 : vector<100x128xf32>
    %22 = vector.extract_strided_slice %2 {offsets = [10, 0], sizes = [100, 16], strides = [1, 1]} : vector<122x16xf32> to vector<100x16xf32>
    %23 = arith.truncf %22 : vector<100x16xf32> to vector<100x16xbf16>
    %c3 = arith.constant 3 : index
    %c0_12 = arith.constant 0 : index
    %c0_13 = arith.constant 0 : index
    %24 = vector.load %arg2[%c3, %c0_12, %c0_13] : memref<9x16x128xbf16, #tpu.memory_space<vmem>>, vector<1x16x128xbf16>
    %25 = vector.shape_cast %24 : vector<1x16x128xbf16> to vector<16x128xbf16>
    %cst_14 = arith.constant dense<0.000000e+00> : vector<100x128xf32>
    %26 = tpu.matmul %23, %25, %cst_14 {dimension_numbers = #tpu.dot_dimension_numbers<[1], [0], [0], [1], [0, 0, 1, 1], [], []>} : vector<100x16xbf16>, vector<16x128xbf16>, vector<100x128xf32> -> vector<100x128xf32>
    %27 = arith.addf %21, %26 : vector<100x128xf32>
    %28 = vector.extract_strided_slice %2 {offsets = [11, 0], sizes = [100, 16], strides = [1, 1]} : vector<122x16xf32> to vector<100x16xf32>
    %29 = arith.truncf %28 : vector<100x16xf32> to vector<100x16xbf16>
    %c4 = arith.constant 4 : index
    %c0_15 = arith.constant 0 : index
    %c0_16 = arith.constant 0 : index
    %30 = vector.load %arg2[%c4, %c0_15, %c0_16] : memref<9x16x128xbf16, #tpu.memory_space<vmem>>, vector<1x16x128xbf16>
    %31 = vector.shape_cast %30 : vector<1x16x128xbf16> to vector<16x128xbf16>
    %cst_17 = arith.constant dense<0.000000e+00> : vector<100x128xf32>
    %32 = tpu.matmul %29, %31, %cst_17 {dimension_numbers = #tpu.dot_dimension_numbers<[1], [0], [0], [1], [0, 0, 1, 1], [], []>} : vector<100x16xbf16>, vector<16x128xbf16>, vector<100x128xf32> -> vector<100x128xf32>
    %33 = arith.addf %27, %32 : vector<100x128xf32>
    %34 = vector.extract_strided_slice %2 {offsets = [12, 0], sizes = [100, 16], strides = [1, 1]} : vector<122x16xf32> to vector<100x16xf32>
    %35 = arith.truncf %34 : vector<100x16xf32> to vector<100x16xbf16>
    %c5 = arith.constant 5 : index
    %c0_18 = arith.constant 0 : index
    %c0_19 = arith.constant 0 : index
    %36 = vector.load %arg2[%c5, %c0_18, %c0_19] : memref<9x16x128xbf16, #tpu.memory_space<vmem>>, vector<1x16x128xbf16>
    %37 = vector.shape_cast %36 : vector<1x16x128xbf16> to vector<16x128xbf16>
    %cst_20 = arith.constant dense<0.000000e+00> : vector<100x128xf32>
    %38 = tpu.matmul %35, %37, %cst_20 {dimension_numbers = #tpu.dot_dimension_numbers<[1], [0], [0], [1], [0, 0, 1, 1], [], []>} : vector<100x16xbf16>, vector<16x128xbf16>, vector<100x128xf32> -> vector<100x128xf32>
    %39 = arith.addf %33, %38 : vector<100x128xf32>
    %40 = vector.extract_strided_slice %2 {offsets = [20, 0], sizes = [100, 16], strides = [1, 1]} : vector<122x16xf32> to vector<100x16xf32>
    %41 = arith.truncf %40 : vector<100x16xf32> to vector<100x16xbf16>
    %c6 = arith.constant 6 : index
    %c0_21 = arith.constant 0 : index
    %c0_22 = arith.constant 0 : index
    %42 = vector.load %arg2[%c6, %c0_21, %c0_22] : memref<9x16x128xbf16, #tpu.memory_space<vmem>>, vector<1x16x128xbf16>
    %43 = vector.shape_cast %42 : vector<1x16x128xbf16> to vector<16x128xbf16>
    %cst_23 = arith.constant dense<0.000000e+00> : vector<100x128xf32>
    %44 = tpu.matmul %41, %43, %cst_23 {dimension_numbers = #tpu.dot_dimension_numbers<[1], [0], [0], [1], [0, 0, 1, 1], [], []>} : vector<100x16xbf16>, vector<16x128xbf16>, vector<100x128xf32> -> vector<100x128xf32>
    %45 = arith.addf %39, %44 : vector<100x128xf32>
    %46 = vector.extract_strided_slice %2 {offsets = [21, 0], sizes = [100, 16], strides = [1, 1]} : vector<122x16xf32> to vector<100x16xf32>
    %47 = arith.truncf %46 : vector<100x16xf32> to vector<100x16xbf16>
    %c7 = arith.constant 7 : index
    %c0_24 = arith.constant 0 : index
    %c0_25 = arith.constant 0 : index
    %48 = vector.load %arg2[%c7, %c0_24, %c0_25] : memref<9x16x128xbf16, #tpu.memory_space<vmem>>, vector<1x16x128xbf16>
    %49 = vector.shape_cast %48 : vector<1x16x128xbf16> to vector<16x128xbf16>
    %cst_26 = arith.constant dense<0.000000e+00> : vector<100x128xf32>
    %50 = tpu.matmul %47, %49, %cst_26 {dimension_numbers = #tpu.dot_dimension_numbers<[1], [0], [0], [1], [0, 0, 1, 1], [], []>} : vector<100x16xbf16>, vector<16x128xbf16>, vector<100x128xf32> -> vector<100x128xf32>
    %51 = arith.addf %45, %50 : vector<100x128xf32>
    %52 = vector.extract_strided_slice %2 {offsets = [22, 0], sizes = [100, 16], strides = [1, 1]} : vector<122x16xf32> to vector<100x16xf32>
    %53 = arith.truncf %52 : vector<100x16xf32> to vector<100x16xbf16>
    %c8 = arith.constant 8 : index
    %c0_27 = arith.constant 0 : index
    %c0_28 = arith.constant 0 : index
    %54 = vector.load %arg2[%c8, %c0_27, %c0_28] : memref<9x16x128xbf16, #tpu.memory_space<vmem>>, vector<1x16x128xbf16>
    %55 = vector.shape_cast %54 : vector<1x16x128xbf16> to vector<16x128xbf16>
    %cst_29 = arith.constant dense<0.000000e+00> : vector<100x128xf32>
    %56 = tpu.matmul %53, %55, %cst_29 {dimension_numbers = #tpu.dot_dimension_numbers<[1], [0], [0], [1], [0, 0, 1, 1], [], []>} : vector<100x16xbf16>, vector<16x128xbf16>, vector<100x128xf32> -> vector<100x128xf32>
    %57 = arith.addf %51, %56 : vector<100x128xf32>
    %c0_30 = arith.constant 0 : index
    %c0_31 = arith.constant 0 : index
    %58 = vector.load %arg3[%c0_30, %c0_31] : memref<1x128xf32, #tpu.memory_space<vmem>>, vector<1x128xf32>
    %59 = vector.broadcast %58 : vector<1x128xf32> to vector<100x128xf32>
    %60 = arith.addf %57, %59 : vector<100x128xf32>
    %cst_32 = arith.constant 0.000000e+00 : f32
    %61 = vector.broadcast %cst_32 : f32 to vector<100x128xf32>
    %62 = arith.maximumf %60, %61 : vector<100x128xf32>
    %c0_33 = arith.constant 0 : index
    %c0_34 = arith.constant 0 : index
    %63 = vector.load %arg6[%c0_33, %c0_34] : memref<100x1xf32, #tpu.memory_space<vmem>>, vector<100x1xf32>
    %64 = vector.broadcast %63 : vector<100x1xf32> to vector<100x128xf32>
    %65 = arith.mulf %62, %64 : vector<100x128xf32>
    %cst_35 = arith.constant 0.000000e+00 : f32
    %66 = vector.broadcast %cst_35 : f32 to vector<11x128xf32>
    %c0_36 = arith.constant 0 : index
    %c0_37 = arith.constant 0 : index
    %67 = vector.load %arg8[%c0_36, %c0_37] : memref<122x128xf32, #tpu.memory_space<vmem>>, vector<11x128xf32>
    tpu.vector_store %arg8[%c0_36, %c0_37], %66 {strides = array<i32>} : memref<122x128xf32, #tpu.memory_space<vmem>>, vector<11x128xf32>,
    %cst_38 = arith.constant 0.000000e+00 : f32
    %68 = vector.broadcast %cst_38 : f32 to vector<11x128xf32>
    %c111 = arith.constant 111 : index
    %c0_39 = arith.constant 0 : index
    %69 = vector.load %arg8[%c111, %c0_39] : memref<122x128xf32, #tpu.memory_space<vmem>>, vector<11x128xf32>
    tpu.vector_store %arg8[%c111, %c0_39], %68 {strides = array<i32>} : memref<122x128xf32, #tpu.memory_space<vmem>>, vector<11x128xf32>,
    %c11 = arith.constant 11 : index
    %c0_40 = arith.constant 0 : index
    %70 = vector.load %arg8[%c11, %c0_40] : memref<122x128xf32, #tpu.memory_space<vmem>>, vector<100x128xf32>
    tpu.vector_store %arg8[%c11, %c0_40], %65 {strides = array<i32>} : memref<122x128xf32, #tpu.memory_space<vmem>>, vector<100x128xf32>,
    %cst_41 = arith.constant 0.000000e+00 : f32
    %71 = vector.broadcast %cst_41 : f32 to vector<100x128xf32>
    %c0_42 = arith.constant 0 : index
    %c0_43 = arith.constant 0 : index
    %72 = vector.load %arg8[%c0_42, %c0_43] : memref<122x128xf32, #tpu.memory_space<vmem>>, vector<100x128xf32>
    %73 = arith.truncf %72 : vector<100x128xf32> to vector<100x128xbf16>
    %c0_44 = arith.constant 0 : index
    %c0_45 = arith.constant 0 : index
    %c0_46 = arith.constant 0 : index
    %74 = vector.load %arg4[%c0_44, %c0_45, %c0_46] : memref<9x128x128xbf16, #tpu.memory_space<vmem>>, vector<1x128x128xbf16>
    %75 = vector.shape_cast %74 : vector<1x128x128xbf16> to vector<128x128xbf16>
    %cst_47 = arith.constant dense<0.000000e+00> : vector<100x128xf32>
    %76 = tpu.matmul %73, %75, %cst_47 {dimension_numbers = #tpu.dot_dimension_numbers<[1], [0], [0], [1], [0, 0, 1, 1], [], []>} : vector<100x128xbf16>, vector<128x128xbf16>, vector<100x128xf32> -> vector<100x128xf32>
    %77 = arith.addf %71, %76 : vector<100x128xf32>
    %c1_48 = arith.constant 1 : index
    %c0_49 = arith.constant 0 : index
    %78 = vector.load %arg8[%c1_48, %c0_49] : memref<122x128xf32, #tpu.memory_space<vmem>>, vector<100x128xf32>
    %79 = arith.truncf %78 : vector<100x128xf32> to vector<100x128xbf16>
    %c1_50 = arith.constant 1 : index
    %c0_51 = arith.constant 0 : index
    %c0_52 = arith.constant 0 : index
    %80 = vector.load %arg4[%c1_50, %c0_51, %c0_52] : memref<9x128x128xbf16, #tpu.memory_space<vmem>>, vector<1x128x128xbf16>
    %81 = vector.shape_cast %80 : vector<1x128x128xbf16> to vector<128x128xbf16>
    %cst_53 = arith.constant dense<0.000000e+00> : vector<100x128xf32>
    %82 = tpu.matmul %79, %81, %cst_53 {dimension_numbers = #tpu.dot_dimension_numbers<[1], [0], [0], [1], [0, 0, 1, 1], [], []>} : vector<100x128xbf16>, vector<128x128xbf16>, vector<100x128xf32> -> vector<100x128xf32>
    %83 = arith.addf %77, %82 : vector<100x128xf32>
    %c2_54 = arith.constant 2 : index
    %c0_55 = arith.constant 0 : index
    %84 = vector.load %arg8[%c2_54, %c0_55] : memref<122x128xf32, #tpu.memory_space<vmem>>, vector<100x128xf32>
    %85 = arith.truncf %84 : vector<100x128xf32> to vector<100x128xbf16>
    %c2_56 = arith.constant 2 : index
    %c0_57 = arith.constant 0 : index
    %c0_58 = arith.constant 0 : index
    %86 = vector.load %arg4[%c2_56, %c0_57, %c0_58] : memref<9x128x128xbf16, #tpu.memory_space<vmem>>, vector<1x128x128xbf16>
    %87 = vector.shape_cast %86 : vector<1x128x128xbf16> to vector<128x128xbf16>
    %cst_59 = arith.constant dense<0.000000e+00> : vector<100x128xf32>
    %88 = tpu.matmul %85, %87, %cst_59 {dimension_numbers = #tpu.dot_dimension_numbers<[1], [0], [0], [1], [0, 0, 1, 1], [], []>} : vector<100x128xbf16>, vector<128x128xbf16>, vector<100x128xf32> -> vector<100x128xf32>
    %89 = arith.addf %83, %88 : vector<100x128xf32>
    %c10 = arith.constant 10 : index
    %c0_60 = arith.constant 0 : index
    %90 = vector.load %arg8[%c10, %c0_60] : memref<122x128xf32, #tpu.memory_space<vmem>>, vector<100x128xf32>
    %91 = arith.truncf %90 : vector<100x128xf32> to vector<100x128xbf16>
    %c3_61 = arith.constant 3 : index
    %c0_62 = arith.constant 0 : index
    %c0_63 = arith.constant 0 : index
    %92 = vector.load %arg4[%c3_61, %c0_62, %c0_63] : memref<9x128x128xbf16, #tpu.memory_space<vmem>>, vector<1x128x128xbf16>
    %93 = vector.shape_cast %92 : vector<1x128x128xbf16> to vector<128x128xbf16>
    %cst_64 = arith.constant dense<0.000000e+00> : vector<100x128xf32>
    %94 = tpu.matmul %91, %93, %cst_64 {dimension_numbers = #tpu.dot_dimension_numbers<[1], [0], [0], [1], [0, 0, 1, 1], [], []>} : vector<100x128xbf16>, vector<128x128xbf16>, vector<100x128xf32> -> vector<100x128xf32>
    %95 = arith.addf %89, %94 : vector<100x128xf32>
    %c11_65 = arith.constant 11 : index
    %c0_66 = arith.constant 0 : index
    %96 = vector.load %arg8[%c11_65, %c0_66] : memref<122x128xf32, #tpu.memory_space<vmem>>, vector<100x128xf32>
    %97 = arith.truncf %96 : vector<100x128xf32> to vector<100x128xbf16>
    %c4_67 = arith.constant 4 : index
    %c0_68 = arith.constant 0 : index
    %c0_69 = arith.constant 0 : index
    %98 = vector.load %arg4[%c4_67, %c0_68, %c0_69] : memref<9x128x128xbf16, #tpu.memory_space<vmem>>, vector<1x128x128xbf16>
    %99 = vector.shape_cast %98 : vector<1x128x128xbf16> to vector<128x128xbf16>
    %cst_70 = arith.constant dense<0.000000e+00> : vector<100x128xf32>
    %100 = tpu.matmul %97, %99, %cst_70 {dimension_numbers = #tpu.dot_dimension_numbers<[1], [0], [0], [1], [0, 0, 1, 1], [], []>} : vector<100x128xbf16>, vector<128x128xbf16>, vector<100x128xf32> -> vector<100x128xf32>
    %101 = arith.addf %95, %100 : vector<100x128xf32>
    %c12 = arith.constant 12 : index
    %c0_71 = arith.constant 0 : index
    %102 = vector.load %arg8[%c12, %c0_71] : memref<122x128xf32, #tpu.memory_space<vmem>>, vector<100x128xf32>
    %103 = arith.truncf %102 : vector<100x128xf32> to vector<100x128xbf16>
    %c5_72 = arith.constant 5 : index
    %c0_73 = arith.constant 0 : index
    %c0_74 = arith.constant 0 : index
    %104 = vector.load %arg4[%c5_72, %c0_73, %c0_74] : memref<9x128x128xbf16, #tpu.memory_space<vmem>>, vector<1x128x128xbf16>
    %105 = vector.shape_cast %104 : vector<1x128x128xbf16> to vector<128x128xbf16>
    %cst_75 = arith.constant dense<0.000000e+00> : vector<100x128xf32>
    %106 = tpu.matmul %103, %105, %cst_75 {dimension_numbers = #tpu.dot_dimension_numbers<[1], [0], [0], [1], [0, 0, 1, 1], [], []>} : vector<100x128xbf16>, vector<128x128xbf16>, vector<100x128xf32> -> vector<100x128xf32>
    %107 = arith.addf %101, %106 : vector<100x128xf32>
    %c20 = arith.constant 20 : index
    %c0_76 = arith.constant 0 : index
    %108 = vector.load %arg8[%c20, %c0_76] : memref<122x128xf32, #tpu.memory_space<vmem>>, vector<100x128xf32>
    %109 = arith.truncf %108 : vector<100x128xf32> to vector<100x128xbf16>
    %c6_77 = arith.constant 6 : index
    %c0_78 = arith.constant 0 : index
    %c0_79 = arith.constant 0 : index
    %110 = vector.load %arg4[%c6_77, %c0_78, %c0_79] : memref<9x128x128xbf16, #tpu.memory_space<vmem>>, vector<1x128x128xbf16>
    %111 = vector.shape_cast %110 : vector<1x128x128xbf16> to vector<128x128xbf16>
    %cst_80 = arith.constant dense<0.000000e+00> : vector<100x128xf32>
    %112 = tpu.matmul %109, %111, %cst_80 {dimension_numbers = #tpu.dot_dimension_numbers<[1], [0], [0], [1], [0, 0, 1, 1], [], []>} : vector<100x128xbf16>, vector<128x128xbf16>, vector<100x128xf32> -> vector<100x128xf32>
    %113 = arith.addf %107, %112 : vector<100x128xf32>
    %c21 = arith.constant 21 : index
    %c0_81 = arith.constant 0 : index
    %114 = vector.load %arg8[%c21, %c0_81] : memref<122x128xf32, #tpu.memory_space<vmem>>, vector<100x128xf32>
    %115 = arith.truncf %114 : vector<100x128xf32> to vector<100x128xbf16>
    %c7_82 = arith.constant 7 : index
    %c0_83 = arith.constant 0 : index
    %c0_84 = arith.constant 0 : index
    %116 = vector.load %arg4[%c7_82, %c0_83, %c0_84] : memref<9x128x128xbf16, #tpu.memory_space<vmem>>, vector<1x128x128xbf16>
    %117 = vector.shape_cast %116 : vector<1x128x128xbf16> to vector<128x128xbf16>
    %cst_85 = arith.constant dense<0.000000e+00> : vector<100x128xf32>
    %118 = tpu.matmul %115, %117, %cst_85 {dimension_numbers = #tpu.dot_dimension_numbers<[1], [0], [0], [1], [0, 0, 1, 1], [], []>} : vector<100x128xbf16>, vector<128x128xbf16>, vector<100x128xf32> -> vector<100x128xf32>
    %119 = arith.addf %113, %118 : vector<100x128xf32>
    %c22 = arith.constant 22 : index
    %c0_86 = arith.constant 0 : index
    %120 = vector.load %arg8[%c22, %c0_86] : memref<122x128xf32, #tpu.memory_space<vmem>>, vector<100x128xf32>
    %121 = arith.truncf %120 : vector<100x128xf32> to vector<100x128xbf16>
    %c8_87 = arith.constant 8 : index
    %c0_88 = arith.constant 0 : index
    %c0_89 = arith.constant 0 : index
    %122 = vector.load %arg4[%c8_87, %c0_88, %c0_89] : memref<9x128x128xbf16, #tpu.memory_space<vmem>>, vector<1x128x128xbf16>
    %123 = vector.shape_cast %122 : vector<1x128x128xbf16> to vector<128x128xbf16>
    %cst_90 = arith.constant dense<0.000000e+00> : vector<100x128xf32>
    %124 = tpu.matmul %121, %123, %cst_90 {dimension_numbers = #tpu.dot_dimension_numbers<[1], [0], [0], [1], [0, 0, 1, 1], [], []>} : vector<100x128xbf16>, vector<128x128xbf16>, vector<100x128xf32> -> vector<100x128xf32>
    %125 = arith.addf %119, %124 : vector<100x128xf32>
    %c0_91 = arith.constant 0 : index
    %c0_92 = arith.constant 0 : index
    %126 = vector.load %arg5[%c0_91, %c0_92] : memref<1x128xf32, #tpu.memory_space<vmem>>, vector<1x128xf32>
    %127 = vector.broadcast %126 : vector<1x128xf32> to vector<100x128xf32>
    %128 = arith.addf %125, %127 : vector<100x128xf32>
    %cst_93 = arith.constant 0.000000e+00 : f32
    %129 = vector.broadcast %cst_93 : f32 to vector<100x128xf32>
    %130 = arith.maximumf %128, %129 : vector<100x128xf32>
    %c0_94 = arith.constant 0 : index
    %c0_95 = arith.constant 0 : index
    %c0_96 = arith.constant 0 : index
    %131 = vector.load %arg7[%c0_94, %c0_95, %c0_96] : memref<1x100x128xf32, #tpu.memory_space<vmem>>, vector<1x100x128xf32>
    %132 = vector.shape_cast %131 : vector<1x100x128xf32> to vector<100x128xf32>
    %133 = vector.shape_cast %130 : vector<100x128xf32> to vector<1x100x128xf32>
    tpu.vector_store %arg7[%c0_94, %c0_95, %c0_96], %133 {strides = array<i32>} : memref<1x100x128xf32, #tpu.memory_space<vmem>>, vector<1x100x128xf32>,
    return
  }
  func.func @transform_0(%arg0: i32) -> (i32, i32, i32) {
    %c0_i32 = arith.constant 0 : i32
    %c0_i32_0 = arith.constant 0 : i32
    %c0_i32_1 = arith.constant 0 : i32
    return %arg0, %c0_i32, %c0_i32_0 : i32, i32, i32
  }
  func.func @transform_1(%arg0: i32) -> (i32, i32, i32) {
    %c0_i32 = arith.constant 0 : i32
    %c0_i32_0 = arith.constant 0 : i32
    %c0_i32_1 = arith.constant 0 : i32
    %c0_i32_2 = arith.constant 0 : i32
    return %c0_i32, %c0_i32_0, %c0_i32_1 : i32, i32, i32
  }
  func.func @transform_2(%arg0: i32) -> (i32, i32) {
    %c0_i32 = arith.constant 0 : i32
    %c0_i32_0 = arith.constant 0 : i32
    %c0_i32_1 = arith.constant 0 : i32
    return %c0_i32, %c0_i32_0 : i32, i32
  }
  func.func @transform_3(%arg0: i32) -> (i32, i32, i32) {
    %c0_i32 = arith.constant 0 : i32
    %c0_i32_0 = arith.constant 0 : i32
    %c0_i32_1 = arith.constant 0 : i32
    %c0_i32_2 = arith.constant 0 : i32
    return %c0_i32, %c0_i32_0, %c0_i32_1 : i32, i32, i32
  }
  func.func @transform_4(%arg0: i32) -> (i32, i32) {
    %c0_i32 = arith.constant 0 : i32
    %c0_i32_0 = arith.constant 0 : i32
    %c0_i32_1 = arith.constant 0 : i32
    return %c0_i32, %c0_i32_0 : i32, i32
  }
  func.func @transform_5(%arg0: i32) -> (i32, i32) {
    %c0_i32 = arith.constant 0 : i32
    %c0_i32_0 = arith.constant 0 : i32
    %c0_i32_1 = arith.constant 0 : i32
    return %c0_i32, %c0_i32_0 : i32, i32
  }
  func.func @transform_6(%arg0: i32) -> (i32, i32, i32) {
    %c0_i32 = arith.constant 0 : i32
    %c0_i32_0 = arith.constant 0 : i32
    %c0_i32_1 = arith.constant 0 : i32
    return %arg0, %c0_i32, %c0_i32_0 : i32, i32, i32
  }
}

</mosaic_0001>

<bundles_post_ra>
// kernel: tpu_custom_call.1
= control target key start
LH: loop header
LB: loop body
LE: loop exit
PB: predicated region body
PF: predicated region fallthrough
CT: control target
= control target key end

     0   :  { %11 = vsyncpa [#allocation4], 0  ;;  %s6786_s0 = inlined_call_operand.hbm [shape: bf16[2,122,16], index: 0, kind: input, shape index: {}]   ;;  %s6787_s1 = inlined_call_operand.hbm [shape: bf16[9,16,128], index: 1, kind: input, shape index: {}]   ;;  %s6788_s2 = inlined_call_operand.hbm [shape: f32[1,128], index: 2, kind: input, shape index: {}]   ;;  %s6789_s3 = inlined_call_operand.hbm [shape: bf16[9,128,128], index: 3, kind: input, shape index: {}]   ;;  %s6790_s4 = inlined_call_operand.hbm [shape: f32[1,128], index: 4, kind: input, shape index: {}]   ;;  %s6791_s5 = inlined_call_operand.hbm [shape: f32[100,1], index: 5, kind: input, shape index: {}]   ;;  %s6792_s6 = inlined_call_operand.hbm [shape: f32[2,100,128], index: 6, kind: output, shape index: {}]  }
   0x1   :  { %13 = vsyncpa [#allocation4 + $0x1], 0 }
   0x2   :  { %14 = vsyncpa [#allocation7], 0 }
   0x3   :  { %15 = vsyncpa [#allocation10], 0 }
   0x4   :  { %16 = vsyncpa [#allocation13], 0 }
   0x5   :  { %17 = vsyncpa [#allocation5], 0 }
   0x6   :  { %19 = vsyncpa [#allocation5 + $0x1], 0  ;;  %s5315_s21 = smov 0   ;;  %s5317_s22 = smov 0  }
   0x7   :  { %s5319_s23 = smov 0   ;;  %s5321_s24 = smov 0  }
   0x8 LB: > { %s5264_s25 = smov [#allocation6]   ;;  %s5336_s27 = sadd.s32 4294967295, %s5262_s24   ;;  %s5262_s24 = sphi %s5321_s24, %s6817_s24   ;;  %s5258_s23 = sphi %s5319_s23, %s6816_s23   ;;  %s5254_s22 = sphi %s5317_s22, %s6815_s22   ;;  %s5250_s21 = sphi %s5315_s21, %s6814_s21  }
   0x9   : > { %s199_s26 = sshll.u32 %s5264_s25, 4  ;;  %p3747_p0 = scmp.ge.s32.totalorder %s5262_s24, 1  ;;  %s5341_s26 = int_to_ptr.vmem [resolvable:$true] %s199_s26 }
   0xa   : > { %p6793_p1 = scmp.eq.s32.totalorder %s5336_s27, 0  ;;  %p187_p2 = scmp.lt.s32.totalorder %s5262_s24, 3 }
   0xb   : > { %s5265_s29 = smov [#allocation9]   ;;  %s5266_s8 = smov [#allocation8]  }
   0xc   : > { %p5343_p3 = pnand %p3747_p0, %p187_p2  ;;  %s223_s30 = sshll.u32 %s5265_s29, 4  ;;  %s5356_s30 = int_to_ptr.vmem [resolvable:$true] %s223_s30 }
   0xd   : > { %s213_s9 = sshll.u32 %s5266_s8, 4  ;;  %s5014_s12 = scalar_lea.hbm %s6787_s1, 1152  ;;  %s5358_s9 = int_to_ptr.vmem [resolvable:$true] %s213_s9 }
   0xe   : > { %s6796_s28 = scalar_select %p5343_p3, 1, 0 }
   0xf   : > { %p4830_p5 = pneg %p5343_p3  ;;  %p5015_p7 = scmp.ne.s32.totalorder %s6787_s1, %s5014_s12 }
  0x10   : > { %p5021_p11 = scmp.lt.u32.totalorder %s5014_s12, %s6787_s1 }
  0x11   : > { %p5352_p6 = pnand %p4830_p5, %p6793_p1 }
  0x13   : > { %p5368_p8 = pneg %p5352_p6 }
  0x15   : > { %p5017_p9 = pnand %p5368_p8, %p5015_p7 }
  0x17   : > { %p5018_p10 = pneg %p5017_p9 }
  0x19   : > { %p5023_p12 = pnand %p5021_p11, %p5018_p10 }
  0x1b   : > { %5026 = shalt.err (!%p5023_p12)
}
  0x1c   : > { %s5027_s18 = scalar_lea.vmem %s5341_s26, 1152  ;;  %p5035_p5 = scmp.lt.s32.totalorder %s5341_s26, %s5341_s26 }
  0x1d   : > { %p5028_p13 = scmp.ne.s32.totalorder %s5341_s26, %s5027_s18  ;;  %p5036_p4 = scmp.lt.s32.totalorder %s5027_s18, %s5027_s18 }
  0x1f   : > { %p5030_p0 = pnand %p5028_p13, %p5368_p8  ;;  %p5037_p7 = por %p5036_p4, %p5035_p5 }
  0x21   : > { %p5031_p2 = pneg %p5030_p0 }
  0x23   : > { %p5038_p9 = pnand %p5037_p7, %p5031_p2 }
  0x25   : > { %5041 = shalt.err (!%p5038_p9)
}
  0x26   : > { %s5267_s19 = smov 64   ;;  %s5268_s20 = smov 4  }
  0x27   : > { %4833 = dma.hbm_to_vmem [thread:$0]  (!%p5352_p6), %s6787_s1, 1152, %s5341_s26, [#allocation7], %s5267_s19, %s5267_s19, %s5268_s20  }
  0x28   : > { %s5042_s11 = scalar_lea.hbm %s6789_s3, 9216 }
  0x29   : > { %p5043_p4 = scmp.ne.s32.totalorder %s6789_s3, %s5042_s11  ;;  %p5049_p12 = scmp.lt.u32.totalorder %s5042_s11, %s6789_s3 }
  0x2b   : > { %p5045_p10 = pnand %p5043_p4, %p5368_p8 }
  0x2d   : > { %p5046_p11 = pneg %p5045_p10 }
  0x2f   : > { %p5051_p13 = pnand %p5049_p12, %p5046_p11 }
  0x31   : > { %5054 = shalt.err (!%p5051_p13)
}
  0x32   : > { %s5055_s26 = scalar_lea.vmem %s5356_s30, 9216  ;;  %p5063_p7 = scmp.lt.s32.totalorder %s5356_s30, %s5356_s30 }
  0x33   : > { %p5056_p0 = scmp.ne.s32.totalorder %s5356_s30, %s5055_s26  ;;  %p5064_p9 = scmp.lt.s32.totalorder %s5055_s26, %s5055_s26 }
  0x35   : > { %p5058_p2 = pnand %p5056_p0, %p5368_p8  ;;  %p5065_p4 = por %p5064_p9, %p5063_p7 }
  0x37   : > { %p5059_p5 = pneg %p5058_p2 }
  0x39   : > { %p5066_p10 = pnand %p5065_p4, %p5059_p5 }
  0x3b   : > { %5069 = shalt.err (!%p5066_p10)
}
  0x3c   : > { %4839 = dma.hbm_to_vmem [thread:$0]  (!%p5352_p6), %s6789_s3, 9216, %s5356_s30, [#allocation10], %s5267_s19, %s5267_s19, %s5268_s20  }
  0x3d   : > { %s5070_s8 = scalar_lea.hbm %s6788_s2, 16 }
  0x3e   : > { %p5071_p11 = scmp.ne.s32.totalorder %s6788_s2, %s5070_s8  ;;  %p5077_p0 = scmp.lt.u32.totalorder %s5070_s8, %s6788_s2 }
  0x40   : > { %p5073_p12 = pnand %p5071_p11, %p5368_p8 }
  0x42   : > { %p5074_p13 = pneg %p5073_p12 }
  0x44   : > { %p5079_p2 = pnand %p5077_p0, %p5074_p13 }
  0x46   : > { %5082 = shalt.err (!%p5079_p2)
}
  0x47   : > { %s5083_s30 = scalar_lea.vmem %s5358_s9, 16  ;;  %s5090_s14 = scalar_lea.vmem %s5358_s9, 32 }
  0x48   : > { %p5084_p5 = scmp.ne.s32.totalorder %s5358_s9, %s5083_s30  ;;  %p5091_p4 = scmp.lt.s32.totalorder %s5358_s9, %s5358_s9 }
  0x49   : > { %p5092_p10 = scmp.lt.s32.totalorder %s5090_s14, %s5083_s30 }
  0x4a   : > { %p5086_p7 = pnand %p5084_p5, %p5368_p8 }
  0x4b   : > { %p5093_p11 = por %p5092_p10, %p5091_p4 }
  0x4c   : > { %p5087_p9 = pneg %p5086_p7 }
  0x4e   : > { %p5094_p12 = pnand %p5093_p11, %p5087_p9 }
  0x50   : > { %5097 = shalt.err (!%p5094_p12)
}
  0x51   : > { %4836 = dma.hbm_to_vmem [thread:$0]  (!%p5352_p6), %s6788_s2, 16, %s5358_s9, [#allocation7]  }
  0x52   : > { %s5269_s17 = smov [#allocation11]   ;;  %s5270_s25 = smov [#allocation12]  }
  0x53   : > { %s237_s18 = sshll.u32 %s5269_s17, 4  ;;  %s247_s29 = sshll.u32 %s5270_s25, 4  ;;  %s238_s18 = int_to_ptr.vmem [resolvable:$true] %s237_s18  ;;  %s248_s29 = int_to_ptr.vmem [resolvable:$true] %s247_s29 }
  0x54   : > { %s5098_s11 = scalar_lea.hbm %s6790_s4, 16 }
  0x55   : > { %p5099_p13 = scmp.ne.s32.totalorder %s6790_s4, %s5098_s11  ;;  %p5105_p5 = scmp.lt.u32.totalorder %s5098_s11, %s6790_s4 }
  0x57   : > { %p5101_p0 = pnand %p5099_p13, %p5368_p8 }
  0x59   : > { %p5102_p2 = pneg %p5101_p0 }
  0x5b   : > { %p5107_p7 = pnand %p5105_p5, %p5102_p2 }
  0x5d   : > { %5110 = shalt.err (!%p5107_p7)
}
  0x5e   : > { %s5111_s9 = scalar_lea.vmem %s238_s18, 16  ;;  %s5118_s16 = scalar_lea.vmem %s238_s18, 32 }
  0x5f   : > { %p5112_p9 = scmp.ne.s32.totalorder %s238_s18, %s5111_s9  ;;  %p5119_p11 = scmp.lt.s32.totalorder %s238_s18, %s238_s18 }
  0x60   : > { %p5120_p12 = scmp.lt.s32.totalorder %s5118_s16, %s5111_s9 }
  0x61   : > { %p5114_p4 = pnand %p5112_p9, %p5368_p8 }
  0x62   : > { %p5121_p1 = por %p5120_p12, %p5119_p11 }
  0x63   : > { %p5115_p10 = pneg %p5114_p4 }
  0x65   : > { %p5122_p3 = pnand %p5121_p1, %p5115_p10 }
  0x67   : > { %5125 = shalt.err (!%p5122_p3)
}
  0x68   : > { %4842 = dma.hbm_to_vmem [thread:$0]  (!%p5352_p6), %s6790_s4, 16, %s238_s18, [#allocation10]  }
  0x69   : > { %s5126_s10 = scalar_lea.hbm %s6791_s5, 1664 }
  0x6a   : > { %p5127_p13 = scmp.ne.s32.totalorder %s6791_s5, %s5126_s10  ;;  %p5133_p3 = scmp.lt.u32.totalorder %s5126_s10, %s6791_s5 }
  0x6c   : > { %p5129_p0 = pnand %p5127_p13, %p5368_p8 }
  0x6e   : > { %p5130_p1 = pneg %p5129_p0 }
  0x70   : > { %p5135_p2 = pnand %p5133_p3, %p5130_p1 }
  0x72   : > { %5138 = shalt.err (!%p5135_p2)
}
  0x73   : > { %s5139_s14 = scalar_lea.vmem %s248_s29, 1664  ;;  %p5147_p4 = scmp.lt.s32.totalorder %s248_s29, %s248_s29 }
  0x74   : > { %p5140_p5 = scmp.ne.s32.totalorder %s248_s29, %s5139_s14  ;;  %p5148_p10 = scmp.lt.s32.totalorder %s5139_s14, %s5139_s14 }
  0x76   : > { %p5142_p7 = pnand %p5140_p5, %p5368_p8  ;;  %p5149_p11 = por %p5148_p10, %p5147_p4 }
  0x78   : > { %p5143_p9 = pneg %p5142_p7 }
  0x7a   : > { %p5150_p12 = pnand %p5149_p11, %p5143_p9 }
  0x7c   : > { %5153 = shalt.err (!%p5150_p12)
}
  0x7d   : > { %s5271_s18 = smov 128   ;;  %s5272_s15 = smov 8  }
  0x7e   : > { %4845 = dma.hbm_to_vmem [thread:$0]  (!%p5352_p6), %s6791_s5, 1664, %s248_s29, [#allocation13], %s5271_s18, %s5271_s18, %s5272_s15  }
  0x7f   : > { %s3746_s26 = sadd.s32 4294967294, %s5262_s24   ;;  %s5480_s17 = sadd.s32 1, %s5262_s24  }
  0x80   : > { %s32_s25 = sadd.s32 1, %s5258_s23  ;;  %s29_s8 = ssub.s32 %s5262_s24, %s5480_s17 }
  0x81   : > { %p39_p8 = scmp.ne.s32.totalorder %s5258_s23, %s5254_s22  ;;  %p30_p13 = scmp.eq.s32.totalorder %s29_s8, 0 }
  0x82   : > { %p40_p0 = scmp.eq.s32.totalorder %s5262_s24, 0  ;;  %p45_p1 = scmp.ne.s32.totalorder %s5254_s22, %s5250_s21 }
  0x83   : > { %p174_p3 = scmp.eq.s32.totalorder %s5336_s27, 1  ;;  %p6799_p5 = scmp.eq.s32.totalorder %s5336_s27, 0 }
  0x84   : > { %s5492_s10 = scalar_select %p30_p13, %s5258_s23, %s32_s25  }
  0x85   : > { %p41_p2 = por %p40_p0, %p39_p8  ;;  %p5496_p7 = por %p6799_p5, %p45_p1 }
  0x86   : > { %p5500_p6 = por %p174_p3, %p39_p8  ;;  %p180_p9 = scmp.eq.s32.totalorder %s3746_s26, 1 }
  0x87   : > { %p4859_p4 = scmp.lt.s32.totalorder %s5262_s24, 2  ;;  %s261_s11 = sand.u32 1, %s5258_s23  }
  0x88   : > { %s6801_s29 = scalar_select %p5500_p6, 1, 0 }
  0x89   : > { %p5506_p10 = por %p180_p9, %p45_p1  ;;  %s3754_s13 = sshll.u32 %s261_s11, 6 }
  0x8a   : > { %s3930_s30 = sshll.u32 %s5262_s24, 10  ;;  %s265_s9 = scalar_lea.vmem [#allocation3], %s3754_s13 }
  0x8b   : > { %s6802_s12 = scalar_select %p5506_p10, 1, 0 }
  0x8c   : > { %s5514_s15 = scalar_lea.hbm %s6786_s0, %s3930_s30  ;;  %s272_s16 = sshll.u32 %s265_s9, 4  ;;  %s5520_s16 = int_to_ptr.vmem [resolvable:$true] %s272_s16 }
  0x8d   : > { %p5516_p11 = pnand %p4859_p4, %p41_p2  ;;  %s5522_s25 = scalar_lea.sflag [#allocation4], %s261_s11 }
  0x8e   : > { %s5154_s8 = scalar_lea.hbm %s5514_s15, 1024  ;;  %s5159_s14 = scalar_lea.hbm %s6786_s0, 2048 }
  0x8f   : > { %p5155_p12 = scmp.ne.s32.totalorder %s5514_s15, %s5154_s8  ;;  %p5156_p8 = pneg %p5516_p11 }
  0x90   : > { %p5160_p1 = scmp.lt.u32.totalorder %s5514_s15, %s6786_s0  ;;  %p5161_p3 = scmp.lt.u32.totalorder %s5159_s14, %s5154_s8 }
  0x91   : > { %p5157_p13 = pnand %p5156_p8, %p5155_p12  ;;  %p5163_p5 = scmp.lt.u32.totalorder %s5154_s8, %s5514_s15 }
  0x92   : > { %p5162_p2 = por %p5161_p3, %p5160_p1 }
  0x93   : > { %p5158_p0 = pneg %p5157_p13 }
  0x94   : > { %p5164_p9 = por %p5163_p5, %p5162_p2 }
  0x96   : > { %p5165_p4 = pnand %p5164_p9, %p5158_p0 }
  0x98   : > { %5168 = shalt.err (!%p5165_p4)
}
  0x99   : > { %s5169_s11 = scalar_lea.vmem %s5520_s16, 1024  ;;  %s5273_s13 = smov [#allocation3]  }
  0x9a   : > { %p5170_p12 = scmp.ne.s32.totalorder %s5520_s16, %s5169_s11  ;;  %s5174_s30 = sshll.u32 %s5273_s13, 4  ;;  %s5175_s30 = int_to_ptr.vmem [resolvable:$false] %s5174_s30 }
  0x9b   : > { %s5176_s18 = scalar_lea.vmem %s5175_s30, 2048  ;;  %p5177_p6 = scmp.lt.s32.totalorder %s5520_s16, %s5175_s30 }
  0x9c   : > { %p5172_p13 = pnand %p5170_p12, %p5156_p8  ;;  %p5178_p1 = scmp.lt.s32.totalorder %s5176_s18, %s5169_s11 }
  0x9e   : > { %p5173_p10 = pneg %p5172_p13  ;;  %p5179_p3 = por %p5178_p1, %p5177_p6 }
  0xa0   : > { %p5180_p2 = pnand %p5179_p3, %p5173_p10 }
  0xa2   : > { %5183 = shalt.err (!%p5180_p2)
}
  0xa3   : > { %4849 = dma.hbm_to_vmem [thread:$0]  (!%p5516_p11), %s5514_s15, 1024, %s5520_s16, %s5522_s25, %s5267_s19, %s5267_s19, %s5268_s20  }
  0xa4   : > { %p6804_p8 = scmp.ne.s32.totalorder %s6796_s28, 0 }
  0xa5   : > { %s5556_s8 = sand.u32 (!%p6804_p8), 1, %s5254_s22  }
  0xa6   : > { %284 = sbr.rel (%p6804_p8) target bundleno = 1155 (0x483), region = 44  ;;  %s3758_s14 = sshll.u32 (!%p6804_p8), %s5556_s8, 6 }
  0xa7   : > { %s287_s9 = scalar_lea.sflag (!%p6804_p8), [#allocation4], %s5556_s8  ;;  %s5560_s11 = scalar_lea.vmem (!%p6804_p8), [#allocation3], %s3758_s14 }
  0xad   : > { %5229 = dma.done.wait (%p5496_p7), %s287_s9, 1024  }
  0xae   : > { %5231 = vsyncadd (%p5496_p7), %s287_s9, 4294966272  ;;  %p6805_p6 = scmp.eq.s32.totalorder %s5336_s27, 0 }
  0xb0   : > { %5233 = dma.done.wait (%p6805_p6), [#allocation7], 1168   ;;  %p6806_p10 = pmov %p6805_p6 }
  0xb1   : > { %p6807_p11 = pmov %p6805_p6 }
  0xb2   : > { %5235 = vsyncadd (%p6806_p10), [#allocation7], 4294966128 }
  0xb3   : > { %5237 = dma.done.wait (%p6807_p11), [#allocation10], 9232   ;;  %p6808_p0 = pmov %p6805_p6 }
  0xb5   : > { %5239 = vsyncadd (%p6808_p0), [#allocation10], 4294958064  ;;  %p6809_p5 = pmov %p6808_p0 }
  0xb6   : > { %p6810_p9 = pmov %p6808_p0 }
  0xb7   : > { %5241 = dma.done.wait (%p6809_p5), [#allocation13], 1664  }
  0xb8   : > { %5243 = vsyncadd (%p6810_p9), [#allocation13], 4294965632  ;;  %v5274_v0 = vmov 0.0   ;;  %vm5275_vm0 = vmmov 0   ;;  %v4914_v1 = vld [vmem:[#allocation6 + $0x8] sm:$0xff]   ;;  %v4915_v2 = vld [vmem:[#allocation6] sm:$0xff]  }
  0xb9   : > { %4138 = vmatprep.subr.bf16.mxu0 %v5274_v0  ;;  %1901 = vst [vmem:[#allocation2] sm:$0xff] %v5274_v0  ;;  %1902 = vst [vmem:[#allocation2 + $0x8] sm:$0x7] %v5274_v0  ;;  %4168 = vmatprep.subr.bf16.mxu1 %v5274_v0  ;;  %vm446_vm1 = vcmask 130048   ;;  %v340_v3 = vld [vmem:[%s5560_s11] sm:$0xf] }
  0xba   : > { %1903 = vst [vmem:[#allocation2 + $0x6f] sm:$0xff] %v5274_v0  ;;  %1904 = vst [vmem:[#allocation2 + $0x77] sm:$0x7] %v5274_v0  ;;  %4140 = vmatprep.mubr.msk.bf16.mxu0 %vm5275_vm0, %v5274_v0  ;;  %4170 = vmatprep.mubr.msk.bf16.mxu1 %vm5275_vm0, %v5274_v0  ;;  %v5590_v4 = vld [vmem:[%s5560_s11 + $0x4] sm:$0xf]  ;;  %v4925_v16 = vld [vmem:[#allocation6 + $0x18] sm:$0xff]  }
  0xbb   : > { %4139 = vmatpush3.bf16.msra.mxu0 %v4914_v1  ;;  %v5593_v5 = vld [vmem:[%s5560_s11 + $0x8] sm:$0xf]  ;;  %4169 = vmatpush3.bf16.msra.mxu1 %v4915_v2  ;;  %v5597_v6 = vld [vmem:[%s5560_s11 + $0xc] sm:$0xf]  ;;  %v5600_v7 = vcombine.low %v340_v3, %v5590_v4  ;;  %v5607_v9 = vld [vmem:[%s5560_s11 + $0x10] sm:$0xf] }
  0xbc   : > { %4198 = vmatprep.subr.bf16.mxu0 %v5274_v0  ;;  %v5604_v8 = vcombine.low %v5593_v5, %v5597_v6  ;;  %v5610_v10 = vld [vmem:[%s5560_s11 + $0x14] sm:$0xf]  ;;  %4228 = vmatprep.subr.bf16.mxu1 %v5274_v0  ;;  %vm384_vm2 = vsmask.f32 7424  ;;  %v5627_v22 = vld [vmem:[%s5560_s11 + $0x18] sm:$0xf]  ;;  %v5723_v60 = vcombine.low %v5590_v4, %v5593_v5  ;;  %v5728_v62 = vcombine.low %v5597_v6, %v5607_v9 }
  0xbd   : > { %v386_v11 = vshrl.u32 %v5600_v7, 16  ;;  %v388_v12 = vshll.u32 %v5600_v7, 16  ;;  %v5617_v13 = vcombine.low %v5607_v9, %v5610_v10  ;;  %v4919_v18 = vld [vmem:[#allocation6 + $0x10] sm:$0xff]   ;;  %v5630_v23 = vld [vmem:[%s5560_s11 + $0x1c] sm:$0xf]  ;;  %vm674_vm3 = vcmask 1046528  }
  0xbe   : > { %v393_v14 = vshll.u32 %v5604_v8, 16  ;;  %4171 = vmatmul.mubr.msk.bf16.vlgmr.msra.gmra.mrb[0].mxu1 %vm446_vm1, %v5600_v7  ;;  %v397_v20 = vshrl.u32 %v5604_v8, 16  ;;  %v5637_v25 = vcombine.low %v5627_v22, %v5630_v23  ;;  %v5649_v30 = vld [vmem:[%s5560_s11 + $0x20] sm:$0xf]  ;;  %v5652_v31 = vld [vmem:[%s5560_s11 + $0x24] sm:$0xf] }
  0xbf   : > { %v390_v15 = vrot.slane %v388_v12, 1  ;;  %4174 = vmatprep.mubr.msk.bf16.mxu1 %vm5275_vm0, %v5274_v0  ;;  %v401_v21 = vshll.u32 %v5617_v13, 16  ;;  %4229 = vmatpush3.bf16.msra.mxu1 %v4925_v16  ;;  %v405_v28 = vshrl.u32 %v5617_v13, 16  ;;  %v5662_v35 = vcombine.low %v5649_v30, %v5652_v31  ;;  %v5669_v36 = vld [vmem:[%s5560_s11 + $0x28] sm:$0xf]  ;;  %s4804_s28 = smul.u32 104, %s5556_s8 }
  0xc0   : > { %v395_v17 = vrot.slane %v393_v14, 1  ;;  %4288 = vmatprep.subr.bf16.mxu1 %v5274_v0  ;;  %v409_v29 = vshll.u32 %v5637_v25, 16  ;;  %v413_v38 = vshrl.u32 %v5637_v25, 16  ;;  %v5675_v40 = vld [vmem:[%s5560_s11 + $0x2c] sm:$0xf]  ;;  %v1467_v49 = vrot.slane %v393_v14, 3 }
  0xc1   : > { %v391_v19 = vor.u32 %v390_v15, %v386_v11  ;;  %v403_v27 = vrot.slane %v401_v21, 1  ;;  %v417_v39 = vshll.u32 %v5662_v35, 16  ;;  %v5680_v41 = vcombine.low %v5669_v36, %v5675_v40  ;;  %v5687_v44 = vld [vmem:[%s5560_s11 + $0x30] sm:$0xf]  ;;  %v4933_v11 = vld [vmem:[#allocation6 + $0x28] sm:$0xff]   ;;  %s6698_s19 = scalar_lea.vmem [#allocation14], %s4804_s28 }
  0xc2   : > { %v399_v26 = vor.u32 %v397_v20, %v395_v17  ;;  %v411_v34 = vrot.slane %v409_v29, 1  ;;  %v5696_v46 = vcombine.low %v5687_v44, %v5687_v44  ;;  %v421_v48 = vshrl.u32 %v5662_v35, 16  ;;  %s4805_s20 = smul.u32 1664, %s5336_s27  ;;  %s3625_s7 = sshll.u32 %s6698_s19, 4  ;;  %s6741_s7 = int_to_ptr.vmem [resolvable:$true] %s3625_s7 }
  0xc3   : > { %v396_v24 = vsel %vm384_vm2, %v391_v19, %v395_v17  ;;  %v407_v33 = vor.u32 %v405_v28, %v403_v27  ;;  %v419_v43 = vrot.slane %v417_v39, 1  ;;  %v425_v45 = vshll.u32 %v5680_v41, 16  ;;  %v4926_v19 = vld [vmem:[#allocation6 + $0x20] sm:$0xff]   ;;  %s3612_s27 = scalar_lea.sflag [#allocation5], %s5556_s8  ;;  %s5184_s25 = scalar_lea.vmem %s6741_s7, 1664 }
  0xc4   : > { %4141 = vmatmul.mubr.msk.bf16.vlgmr.msra.gmra.mrb[0].mxu0 %vm446_vm1, %v396_v24  ;;  %v404_v32 = vsel %vm384_vm2, %v399_v26, %v403_v27  ;;  %v415_v42 = vor.u32 %v413_v38, %v411_v34  ;;  %v429_v50 = vshrl.u32 %v5680_v41, 16  ;;  %v433_v52 = vshll.u32 %v5696_v46, 16  ;;  %s6739_s26 = scalar_lea.hbm %s6792_s6, %s4805_s20  ;;  %p5185_p7 = scmp.ne.s32.totalorder %s6741_s7, %s5184_s25 }
  0xc5   : > { %4199 = vmatpush3.bf16.msra.mxu0 %v4919_v18  ;;  %4144 = vmatprep.mubr.msk.bf16.mxu0 %vm5275_vm0, %v5274_v0  ;;  %v412_v37 = vsel %vm384_vm2, %v407_v33, %v411_v34  ;;  %v427_v51 = vrot.slane %v425_v45, 1  ;;  %v423_v53 = vor.u32 %v421_v48, %v419_v43  ;;  %v1466_v55 = vrot.slane %v397_v20, 2  ;;  %p6811_p4 = scmp.ne.s32.totalorder %s6801_s29, 0  ;;  %s5277_s13 = smov [#allocation14]  }
  0xc6   : > { %4175 = vmatmul.mubr.msk.bf16.gmra.mrb[4].mxu1 %vm446_vm1, %v5604_v8  ;;  %4258 = vmatprep.subr.bf16.mxu0 %v5274_v0  ;;  %v420_v47 = vsel %vm384_vm2, %v415_v42, %v419_v43  ;;  %v1470_v56 = vrot.slane %v401_v21, 3  ;;  %v1469_v57 = vrot.slane %v405_v28, 2  ;;  %v435_v59 = vrot.slane %v433_v52, 1  ;;  %s5188_s30 = sshll.u32 %s5277_s13, 4  ;;  %s5189_s30 = int_to_ptr.vmem [resolvable:$false] %s5188_s30 }
  0xc7   : > { %4178 = vmatprep.mubr.msk.bf16.mxu1 %vm5275_vm0, %v5274_v0  ;;  %v428_v54 = vsel %vm384_vm2, %v423_v53, %v427_v51  ;;  %v431_v58 = vor.u32 %v429_v50, %v427_v51  ;;  %v1468_v63 = vor.u32 %v1467_v49, %v1466_v55  ;;  %v437_v2 = vshrl.u32 %v5696_v46, 16  ;;  %p5186_p12 = pnand %p5185_p7, %p6811_p4  ;;  %s5190_s18 = scalar_lea.vmem %s5189_s30, 3328 }
  0xc8   : > { %v1471_v1 = vor.u32 %v1470_v56, %v1469_v57  ;;  %v675_v3 = vrot.slane %v5600_v7, 1  ;;  %vm1465_vm4 = vsmask.f32 5376  ;;  %v833_v4 = vrot.slane %v5723_v60, 1  ;;  %v5827_v57 = vld [vmem:[%s5560_s11 + $0x38] sm:$0xf]  ;;  %p5191_p1 = scmp.lt.s32.totalorder %s6741_s7, %s5189_s30  ;;  %p5192_p3 = scmp.lt.s32.totalorder %s5190_s18, %s5184_s25 }
  0xc9   : > { %v436_v61 = vsel %vm384_vm2, %v431_v58, %v435_v59  ;;  %v834_v5 = vrot.slane %v5728_v62, 1  ;;  %v439_v9 = vor.u32 %v437_v2, %v435_v59  ;;  %v5746_v7 = vcombine.low %v5610_v10, %v5627_v22  ;;  %p5187_p13 = pneg %p5186_p12 }
  0xca   : > { %v5738_v6 = vsel %vm1465_vm4, %v1468_v63, %v1471_v1  ;;  %v1473_v12 = vrot.slane %v413_v38, 2  ;;  %v1474_v14 = vrot.slane %v409_v29, 3  ;;  %v676_v17 = vrot.slane %v5604_v8, 1  ;;  %p5193_p2 = por %p5192_p3, %p5191_p1 }
  0xcb   : > { %v835_v15 = vsel %vm674_vm3, %v833_v4, %v834_v5  ;;  %v836_v18 = vrot.slane %v5746_v7, 1  ;;  %v5766_v21 = vcombine.low %v5630_v23, %v5649_v30  ;;  %v1477_v22 = vrot.slane %v421_v48, 2 }
  0xcc   : > { %4145 = vmatmul.mubr.msk.bf16.gmra.mrb[4].mxu0 %vm446_vm1, %v404_v32  ;;  %v1475_v16 = vor.u32 %v1474_v14, %v1473_v12  ;;  %v677_v20 = vsel %vm674_vm3, %v675_v3, %v676_v17  ;;  %v1478_v24 = vrot.slane %v417_v39, 3  ;;  %v678_v28 = vrot.slane %v5617_v13, 1  ;;  %p5194_p8 = pnand %p5193_p2, %p5187_p13 }
  0xcd   : > { %4148 = vmatprep.mubr.msk.bf16.mxu0 %vm5275_vm0, %v5274_v0  ;;  %v837_v26 = vsel %vm674_vm3, %v834_v5, %v836_v18  ;;  %v838_v29 = vrot.slane %v5766_v21, 1  ;;  %v1481_v32 = vrot.slane %v429_v50, 2  ;;  %v1482_v33 = vrot.slane %v425_v45, 3 }
  0xce   : > { %4179 = vmatmul.mubr.msk.bf16.gmra.mrb[8].mxu1 %vm446_vm1, %v5617_v13  ;;  %v5757_v10 = vsel %vm1465_vm4, %v1471_v1, %v1475_v16  ;;  %v1479_v27 = vor.u32 %v1478_v24, %v1477_v22  ;;  %v679_v30 = vsel %vm674_vm3, %v676_v17, %v678_v28  ;;  %v5790_v34 = vcombine.low %v5652_v31, %v5669_v36 }
  0xcf   : > { %4182 = vmatprep.mubr.msk.bf16.mxu1 %vm5275_vm0, %v5274_v0  ;;  %v839_v38 = vsel %vm674_vm3, %v836_v18, %v838_v29  ;;  %v1483_v39 = vor.u32 %v1482_v33, %v1481_v32  ;;  %v680_v42 = vrot.slane %v5637_v25, 1  ;;  %v1327_v36 = vrot.slane %v5680_v41, 2 }
  0xd0   : > { %v5777_v23 = vsel %vm1465_vm4, %v1475_v16, %v1479_v27  ;;  %v840_v31 = vrot.slane %v5790_v34, 1  ;;  %vm1171_vm5 = vcmask 1045504   ;;  %v5821_v55 = vcombine.low %v5675_v40, %v5687_v44 }
  0xd1   : > { %v5799_v43 = vsel %vm1465_vm4, %v1479_v27, %v1483_v39  ;;  %v681_v50 = vsel %vm674_vm3, %v678_v28, %v680_v42  ;;  %v682_v58 = vrot.slane %v5662_v35, 1  ;;  %v684_v4 = vrot.slane %v5680_v41, 1  ;;  %v4935_v28 = vld [vmem:[#allocation6 + $0x38] sm:$0xff]  }
  0xd2   : > { %v842_v40 = vrot.slane %v5821_v55, 1  ;;  %v686_v12 = vrot.slane %v5696_v46, 1  ;;  %v982_v16 = vshll.u32 %v5723_v60, 16  ;;  %v987_v17 = vshrl.u32 %v5728_v62, 16 }
  0xd3   : > { %v683_v63 = vsel %vm674_vm3, %v680_v42, %v682_v58  ;;  %v1172_v18 = vrot.slane %v5723_v60, 2  ;;  %v996_v32 = vshrl.u32 %v5746_v7, 16  ;;  %vm977_vm6 = vsmask.f32 6400 }
  0xd4   : > { %4149 = vmatmul.mubr.msk.bf16.gmra.mrb[8].mxu0 %vm446_vm1, %v412_v37  ;;  %v353_v37 = vld [vmem:[%s5560_s11 + $0x34] sm:$0xf]  ;;  %v843_v2 = vsel %vm674_vm3, %v840_v31, %v842_v40  ;;  %v687_v14 = vsel %vm674_vm3, %v684_v4, %v686_v12  ;;  %v984_v22 = vrot.slane %v982_v16, 2  ;;  %v989_v24 = vrot.slane %v987_v17, 1 }
  0xd5   : > { %4152 = vmatprep.mubr.msk.bf16.mxu0 %vm5275_vm0, %v5274_v0  ;;  %v5802_v45 = vcombine.low %v5687_v44, %v353_v37  ;;  %v5850_v3 = vcombine.low %v353_v37, %v353_v37  ;;  %v4934_v37 = vld [vmem:[#allocation6 + $0x30] sm:$0xff]   ;;  %vm1635_vm7 = vcmask 1044480  }
  0xd6   : > { %4183 = vmatmul.mubr.msk.bf16.gmra.mrb[12].mxu1 %vm446_vm1, %v5637_v25 }
  0xd7   : > { %4186 = vmatprep.mubr.msk.bf16.mxu1 %vm5275_vm0, %v5274_v0  ;;  %v1486_v48 = vshrl.u32 %v5802_v45, 16  ;;  %v1489_v49 = vshll.u32 %v5802_v45, 16  ;;  %v844_v5 = vrot.slane %v5850_v3, 1 }
  0xd9   : > { %v1488_v52 = vrot.slane %v1486_v48, 2  ;;  %v1491_v53 = vrot.slane %v1489_v49, 3  ;;  %v1177_v48 = vrot.slane %v5766_v21, 2 }
  0xdb   : > { %v5823_v56 = vor.u32 %v1491_v53, %v1488_v52 }
  0xdc   : > { %4153 = vmatmul.mubr.msk.bf16.gmra.mrb[12].mxu0 %vm446_vm1, %v420_v47  ;;  %v1329_v47 = vrot.slane %v5802_v45, 2 }
  0xdd   : > { %4156 = vmatprep.mubr.msk.bf16.mxu0 %vm5275_vm0, %v5274_v0  ;;  %v5834_v59 = vsel %vm1465_vm4, %v1483_v39, %v5823_v56 }
  0xde   : > { %4187 = vmatmul.mubr.msk.bf16.gmra.mrb[16].mxu1 %vm446_vm1, %v5662_v35  ;;  %v5816_v51 = vsel %vm1171_vm5, %v1327_v36, %v1329_v47 }
  0xdf   : > { %4190 = vmatprep.mubr.msk.bf16.mxu1 %vm5275_vm0, %v5274_v0 }
  0xe4   : > { %4157 = vmatmul.mubr.msk.bf16.gmra.mrb[16].mxu0 %vm446_vm1, %v428_v54  ;;  %v841_v54 = vsel %vm674_vm3, %v838_v29, %v840_v31 }
  0xe5   : > { %4160 = vmatprep.mubr.msk.bf16.mxu0 %vm5275_vm0, %v5274_v0 }
  0xe6   : > { %4191 = vmatmul.mubr.msk.bf16.gmra.mrb[20].mxu1 %vm446_vm1, %v5680_v41 }
  0xe7   : > { %4194 = vmatprep.mubr.msk.bf16.mxu1 %vm5275_vm0, %v5274_v0 }
  0xec   : > { %4161 = vmatmul.mubr.msk.bf16.gmra.mrb[20].mxu0 %vm446_vm1, %v436_v61  ;;  %v3827_v61 = vcombine.low %v5827_v57, %v5827_v57 }
  0xed   : > { %4164 = vmatprep.mubr.msk.bf16.mxu0 %vm5275_vm0, %v5274_v0 }
  0xee   : > { %4195 = vmatmul.mubr.msk.bf16.gmra.mrb[24].mxu1 %vm446_vm1, %v5696_v46  ;;  %v5842_v44 = vrot.slane %v3827_v61, 2  ;;  %v990_v46 = vshll.u32 %v5728_v62, 16  ;;  %v1017_v61 = vshll.u32 %v5790_v34, 16 }
  0xef   : > { %4230 = vmatprep.mubr.msk.bf16.mxu1 %vm5275_vm0, %v5274_v0 }
  0xf0   : > { %v5847_v1 = vsel %vm1171_vm5, %v1329_v47, %v5842_v44  ;;  %v1005_v47 = vshrl.u32 %v5766_v21, 16 }
  0xf4   : > { %4165 = vmatmul.mubr.msk.bf16.gmra.mrb[24].mxu0 %vm446_vm1, %v439_v9  ;;  %v685_v9 = vsel %vm674_vm3, %v682_v58, %v684_v4  ;;  %v1014_v58 = vshrl.u32 %v5790_v34, 16 }
  0xf5   : > { %4200 = vmatprep.mubr.msk.bf16.mxu0 %vm5275_vm0, %v5274_v0 }
  0xf6   : > { %4231 = vmatmul.mubr.msk.bf16.vlgmr.msra.gmra.mrb[28].mxu1 %vm446_vm1, %v835_v15  ;;  %v979_v15 = vshrl.u32 %v5723_v60, 16  ;;  %v999_v60 = vshll.u32 %v5746_v7, 16 }
  0xf7   : > { %4234 = vmatprep.mubr.msk.bf16.mxu1 %vm5275_vm0, %v5274_v0  ;;  %4289 = vmatpush3.bf16.msra.mxu1 %v4933_v11  ;;  %v845_v11 = vsel %vm674_vm3, %v842_v40, %v844_v5 }
  0xf8   : > { %4348 = vmatprep.subr.bf16.mxu1 %v5274_v0  ;;  %v1001_v39 = vrot.slane %v999_v60, 2  ;;  %v1320_v60 = vrot.slane %v5604_v8, 2 }
  0xfc   : > { %4201 = vmatmul.mubr.msk.bf16.vlgmr.msra.gmra.mrb[28].mxu0 %vm446_vm1, %v677_v20  ;;  %v981_v20 = vrot.slane %v979_v15, 1 }
  0xfd   : > { %4259 = vmatpush3.bf16.msra.mxu0 %v4926_v19  ;;  %4204 = vmatprep.mubr.msk.bf16.mxu0 %vm5275_vm0, %v5274_v0  ;;  %v1173_v19 = vrot.slane %v5728_v62, 2  ;;  %v1175_v62 = vrot.slane %v5746_v7, 2  ;;  %v1008_v7 = vshll.u32 %v5766_v21, 16  ;;  %v1179_v21 = vrot.slane %v5790_v34, 2 }
  0xfe   : > { %4235 = vmatmul.mubr.msk.bf16.gmra.mrb[32].mxu1 %vm446_vm1, %v837_v26  ;;  %4318 = vmatprep.subr.bf16.mxu0 %v5274_v0  ;;  %v992_v26 = vrot.slane %v990_v46, 2  ;;  %v985_v29 = vor.u32 %v984_v22, %v981_v20  ;;  %v1181_v34 = vrot.slane %v5821_v55, 2  ;;  %v1645_v46 = vrot.slane %v5802_v45, 3 }
  0xff   : > { %4238 = vmatprep.mubr.msk.bf16.mxu1 %vm5275_vm0, %v5274_v0  ;;  %v1174_v27 = vsel %vm1171_vm5, %v1172_v18, %v1173_v19  ;;  %v1176_v42 = vsel %vm1171_vm5, %v1173_v19, %v1175_v62  ;;  %v1010_v52 = vrot.slane %v1008_v7, 2  ;;  %v1178_v53 = vsel %vm1171_vm5, %v1175_v62, %v1177_v48  ;;  %v1816_v7 = vld [vmem:[#allocation12 + $0x30] sm:$0xff] }
 0x100   : > { %v1180_v4 = vsel %vm1171_vm5, %v1177_v48, %v1179_v21  ;;  %v1182_v19 = vsel %vm1171_vm5, %v1179_v21, %v1181_v34  ;;  %v1032_v20 = vshrl.u32 %v5850_v3, 16  ;;  %v1035_v22 = vshll.u32 %v5850_v3, 16  ;;  %v1813_v48 = vld [vmem:[#allocation12 + $0x18] sm:$0xff] }
 0x101   : > { %v1321_v62 = vrot.slane %v5617_v13, 2 }
 0x104   : > { %4205 = vmatmul.mubr.msk.bf16.gmra.mrb[32].mxu0 %vm446_vm1, %v679_v30  ;;  %v993_v30 = vor.u32 %v992_v26, %v989_v24  ;;  %v1183_v24 = vrot.slane %v5850_v3, 2  ;;  %v1810_v3 = vld [vmem:[#allocation12] sm:$0xff] }
 0x105   : > { %4208 = vmatprep.mubr.msk.bf16.mxu0 %vm5275_vm0, %v5274_v0 }
 0x106   : > { %4239 = vmatmul.mubr.msk.bf16.gmra.mrb[36].mxu1 %vm446_vm1, %v839_v38  ;;  %v994_v33 = vsel %vm977_vm6, %v985_v29, %v993_v30  ;;  %v998_v38 = vrot.slane %v996_v32, 1  ;;  %v1184_v29 = vsel %vm1171_vm5, %v1181_v34, %v1183_v24 }
 0x107   : > { %4242 = vmatprep.mubr.msk.bf16.mxu1 %vm5275_vm0, %v5274_v0 }
 0x108   : > { %v1002_v31 = vor.u32 %v1001_v39, %v998_v38  ;;  %v4936_v38 = vld [vmem:[#allocation6 + $0x40] sm:$0xff]   ;;  %v1811_v39 = vld [vmem:[#allocation12 + $0x8] sm:$0xff] }
 0x10a   : > { %v1003_v49 = vsel %vm977_vm6, %v993_v30, %v1002_v31 }
 0x10c   : > { %4209 = vmatmul.mubr.msk.bf16.gmra.mrb[36].mxu0 %vm446_vm1, %v681_v50  ;;  %v1007_v50 = vrot.slane %v1005_v47, 1  ;;  %v1812_v47 = vld [vmem:[#allocation12 + $0x10] sm:$0xff] }
 0x10d   : > { %4212 = vmatprep.mubr.msk.bf16.mxu0 %vm5275_vm0, %v5274_v0 }
 0x10e   : > { %4243 = vmatmul.mubr.msk.bf16.gmra.mrb[40].mxu1 %vm446_vm1, %v841_v54  ;;  %v1011_v54 = vor.u32 %v1010_v52, %v1007_v50  ;;  %v1815_v52 = vld [vmem:[#allocation12 + $0x28] sm:$0xff] }
 0x10f   : > { %4246 = vmatprep.mubr.msk.bf16.mxu1 %vm5275_vm0, %v5274_v0 }
 0x110   : > { %v1012_v40 = vsel %vm977_vm6, %v1002_v31, %v1011_v54  ;;  %v1323_v31 = vrot.slane %v5637_v25, 2 }
 0x114   : > { %4213 = vmatmul.mubr.msk.bf16.gmra.mrb[40].mxu0 %vm446_vm1, %v683_v63  ;;  %v1016_v63 = vrot.slane %v1014_v58, 1  ;;  %v1822_v58 = vld [vmem:[#allocation12 + $0x60] sm:$0xf] }
 0x115   : > { %4216 = vmatprep.mubr.msk.bf16.mxu0 %vm5275_vm0, %v5274_v0 }
 0x116   : > { %4247 = vmatmul.mubr.msk.bf16.gmra.mrb[44].mxu1 %vm446_vm1, %v843_v2  ;;  %v1019_v2 = vrot.slane %v1017_v61, 2 }
 0x117   : > { %4250 = vmatprep.mubr.msk.bf16.mxu1 %vm5275_vm0, %v5274_v0 }
 0x11c   : > { %4217 = vmatmul.mubr.msk.bf16.gmra.mrb[44].mxu0 %vm446_vm1, %v685_v9  ;;  %v355_v9 = vld [vmem:[%s5560_s11 + $0x3c] sm:$0x1] }
 0x11d   : > { %4220 = vmatprep.mubr.msk.bf16.mxu0 %vm5275_vm0, %v5274_v0 }
 0x11e   : > { %4251 = vmatmul.mubr.msk.bf16.gmra.mrb[48].mxu1 %vm446_vm1, %v845_v11  ;;  %v1020_v11 = vor.u32 %v1019_v2, %v1016_v63 }
 0x11f   : > { %4254 = vmatprep.mubr.msk.bf16.mxu1 %vm5275_vm0, %v5274_v0 }
 0x120   : > { %v1021_v16 = vsel %vm977_vm6, %v1011_v54, %v1020_v11  ;;  %v1817_v54 = vld [vmem:[#allocation12 + $0x38] sm:$0xff] }
 0x124   : > { %4221 = vmatmul.mubr.msk.bf16.gmra.mrb[48].mxu0 %vm446_vm1, %v687_v14  ;;  %v5929_v14 = vcombine.low %v5827_v57, %v355_v9 }
 0x125   : > { %4224 = vmatprep.mubr.msk.bf16.mxu0 %vm5275_vm0, %v5274_v0 }
 0x126   : > { %4255 = vmatmul.mubr.msk.bf16.gmra.mrb[52].mxu1 %vm446_vm1, %v844_v5  ;;  %v1023_v5 = vshrl.u32 %v5821_v55, 16  ;;  %v1647_v18 = vrot.slane %v5929_v14, 3  ;;  %v1498_v61 = vshll.u32 %v5929_v14, 16 }
 0x127   : > { %4290 = vmatprep.mubr.msk.bf16.mxu1 %vm5275_vm0, %v5274_v0 }
 0x128   : > { %v1025_v15 = vrot.slane %v1023_v5, 1  ;;  %v1500_v2 = vrot.slane %v1498_v61, 3 }
 0x12c   : > { %4225 = vmatmul.mubr.msk.bf16.gmra.mrb[52].mxu0 %vm446_vm1, %v686_v12  ;;  %v1026_v12 = vshll.u32 %v5821_v55, 16  ;;  %v5940_v55 = vsel %vm1635_vm7, %v1645_v46, %v1647_v18 }
 0x12d   : > { %4260 = vmatprep.mubr.msk.bf16.mxu0 %vm5275_vm0, %v5274_v0 }
 0x12e   : > { %4291 = vmatmul.mubr.msk.bf16.vlgmr.msra.gmra.mrb[56].mxu1 %vm446_vm1, %v1174_v27  ;;  %v1028_v17 = vrot.slane %v1026_v12, 2  ;;  %v1034_v27 = vrot.slane %v1032_v20, 1  ;;  %v1636_v20 = vrot.slane %v5604_v8, 3  ;;  %v1639_v8 = vrot.slane %v5637_v25, 3 }
 0x12f   : > { %4294 = vmatprep.mubr.msk.bf16.mxu1 %vm5275_vm0, %v5274_v0  ;;  %4349 = vmatpush3.bf16.msra.mxu1 %v4935_v28  ;;  %v1037_v28 = vrot.slane %v1035_v22, 2  ;;  %v1637_v22 = vrot.slane %v5617_v13, 3  ;;  %v1641_v25 = vrot.slane %v5662_v35, 3 }
 0x130   : > { %4408 = vmatprep.subr.bf16.mxu1 %v5274_v0  ;;  %v1029_v57 = vor.u32 %v1028_v17, %v1025_v15 }
 0x131   : > { %v1038_v30 = vor.u32 %v1037_v28, %v1034_v27 }
 0x132   : > { %v1030_v26 = vsel %vm977_vm6, %v1020_v11, %v1029_v57 }
 0x133   : > { %v1039_v32 = vsel %vm977_vm6, %v1029_v57, %v1038_v30 }
 0x134   : > { %4261 = vmatmul.mubr.msk.bf16.vlgmr.msra.gmra.mrb[56].mxu0 %vm446_vm1, %v994_v33  ;;  %v5276_v33 = vmov 0  }
 0x135   : > { %4319 = vmatpush3.bf16.msra.mxu0 %v4934_v37  ;;  %4264 = vmatprep.mubr.msk.bf16.mxu0 %vm5275_vm0, %v5274_v0  ;;  %v1322_v37 = vsel %vm1171_vm5, %v1320_v60, %v1321_v62 }
 0x136   : > { %4295 = vmatmul.mubr.msk.bf16.gmra.mrb[60].mxu1 %vm446_vm1, %v1176_v42  ;;  %4378 = vmatprep.subr.bf16.mxu0 %v5274_v0  ;;  %v1814_v42 = vld [vmem:[#allocation12 + $0x20] sm:$0xff] }
 0x137   : > { %4298 = vmatprep.mubr.msk.bf16.mxu1 %vm5275_vm0, %v5274_v0  ;;  %4912 = vset.pattern.permute.xlu0 %v5276_v33 }
 0x138   : > { %1825 = vperm.xlu0 %4912, %v1810_v3   ;;  %4913 = vset.pattern.permute.xlu1 %v5276_v33 }
 0x139   : > { %1835 = vperm.xlu1 %4913, %v1812_v47  }
 0x13c   : > { %4265 = vmatmul.mubr.msk.bf16.gmra.mrb[60].mxu0 %vm446_vm1, %v1003_v49  ;;  %1830 = vperm.xlu0 %4912, %v1811_v39   ;;  %v1818_v49 = vld [vmem:[#allocation12 + $0x40] sm:$0xff]  ;;  %v1640_v39 = vsel %vm1635_vm7, %v1637_v22, %v1639_v8 }
 0x13d   : > { %4268 = vmatprep.mubr.msk.bf16.mxu0 %vm5275_vm0, %v5274_v0  ;;  %1840 = vperm.xlu1 %4913, %v1813_v48  }
 0x13e   : > { %4299 = vmatmul.mubr.msk.bf16.gmra.mrb[64].mxu1 %vm446_vm1, %v1178_v53  ;;  %v1820_v53 = vld [vmem:[#allocation12 + $0x50] sm:$0xff] }
 0x13f   : > { %4302 = vmatprep.mubr.msk.bf16.mxu1 %vm5275_vm0, %v5274_v0 }
 0x140   : > { %1845 = vperm.xlu0 %4912, %v1814_v42  }
 0x141   : > { %1850 = vperm.xlu1 %4913, %v1815_v52  }
 0x144   : > { %4269 = vmatmul.mubr.msk.bf16.gmra.mrb[64].mxu0 %vm446_vm1, %v1012_v40  ;;  %1855 = vperm.xlu0 %4912, %v1816_v7   ;;  %v1819_v40 = vld [vmem:[#allocation12 + $0x48] sm:$0xff] }
 0x145   : > { %4272 = vmatprep.mubr.msk.bf16.mxu0 %vm5275_vm0, %v5274_v0  ;;  %1860 = vperm.xlu1 %4913, %v1817_v54  }
 0x146   : > { %4303 = vmatmul.mubr.msk.bf16.gmra.mrb[68].mxu1 %vm446_vm1, %v1180_v4  ;;  %v1821_v4 = vld [vmem:[#allocation12 + $0x58] sm:$0xff] }
 0x147   : > { %4306 = vmatprep.mubr.msk.bf16.mxu1 %vm5275_vm0, %v5274_v0 }
 0x148   : > { %1865 = vperm.xlu0 %4912, %v1818_v49  }
 0x149   : > { %1870 = vperm.xlu1 %4913, %v1819_v40  }
 0x14c   : > { %4273 = vmatmul.mubr.msk.bf16.gmra.mrb[68].mxu0 %vm446_vm1, %v1021_v16  ;;  %1875 = vperm.xlu0 %4912, %v1820_v53   ;;  %v1642_v53 = vsel %vm1635_vm7, %v1639_v8, %v1641_v25 }
 0x14d   : > { %4276 = vmatprep.mubr.msk.bf16.mxu0 %vm5275_vm0, %v5274_v0  ;;  %1880 = vperm.xlu1 %4913, %v1821_v4  }
 0x14e   : > { %4307 = vmatmul.mubr.msk.bf16.gmra.mrb[72].mxu1 %vm446_vm1, %v1182_v19 }
 0x14f   : > { %4310 = vmatprep.mubr.msk.bf16.mxu1 %vm5275_vm0, %v5274_v0 }
 0x150   : > { %1885 = vperm.xlu0 %4912, %v1822_v58  }
 0x154   : > { %4277 = vmatmul.mubr.msk.bf16.gmra.mrb[72].mxu0 %vm446_vm1, %v1030_v26 }
 0x155   : > { %4280 = vmatprep.mubr.msk.bf16.mxu0 %vm5275_vm0, %v5274_v0 }
 0x156   : > { %4311 = vmatmul.mubr.msk.bf16.gmra.mrb[76].mxu1 %vm446_vm1, %v1184_v29  ;;  %v1638_v29 = vsel %vm1635_vm7, %v1636_v20, %v1637_v22 }
 0x157   : > { %4314 = vmatprep.mubr.msk.bf16.mxu1 %vm5275_vm0, %v5274_v0 }
 0x15c   : > { %4281 = vmatmul.mubr.msk.bf16.gmra.mrb[76].mxu0 %vm446_vm1, %v1039_v32 }
 0x15d   : > { %4284 = vmatprep.mubr.msk.bf16.mxu0 %vm5275_vm0, %v5274_v0 }
 0x15e   : > { %4315 = vmatmul.mubr.msk.bf16.gmra.mrb[80].mxu1 %vm446_vm1, %v1183_v24 }
 0x15f   : > { %4350 = vmatprep.mubr.msk.bf16.mxu1 %vm5275_vm0, %v5274_v0 }
 0x164   : > { %4285 = vmatmul.mubr.msk.bf16.gmra.mrb[80].mxu0 %vm446_vm1, %v1038_v30 }
 0x165   : > { %4320 = vmatprep.mubr.msk.bf16.mxu0 %vm5275_vm0, %v5274_v0 }
 0x166   : > { %4351 = vmatmul.mubr.msk.bf16.vlgmr.msra.gmra.mrb[84].mxu1 %vm446_vm1, %v5738_v6  ;;  %v1324_v6 = vsel %vm1171_vm5, %v1321_v62, %v1323_v31 }
 0x167   : > { %4354 = vmatprep.mubr.msk.bf16.mxu1 %vm5275_vm0, %v5274_v0 }
 0x16c   : > { %4321 = vmatmul.mubr.msk.bf16.vlgmr.msra.gmra.mrb[84].mxu0 %vm446_vm1, %v1322_v37 }
 0x16d   : > { %4379 = vmatpush3.bf16.msra.mxu0 %v4936_v38  ;;  %4324 = vmatprep.mubr.msk.bf16.mxu0 %vm5275_vm0, %v5274_v0 }
 0x16e   : > { %4355 = vmatmul.mubr.msk.bf16.gmra.mrb[88].mxu1 %vm446_vm1, %v5757_v10  ;;  %4452 = vmatprep.subr.bf16.mxu0 %v5274_v0  ;;  %v1325_v10 = vrot.slane %v5662_v35, 2  ;;  %v1643_v35 = vrot.slane %v5680_v41, 3 }
 0x16f   : > { %4358 = vmatprep.mubr.msk.bf16.mxu1 %vm5275_vm0, %v5274_v0 }
 0x170   : > { %v1326_v50 = vsel %vm1171_vm5, %v1323_v31, %v1325_v10  ;;  %v1328_v21 = vsel %vm1171_vm5, %v1325_v10, %v1327_v36 }
 0x174   : > { %4325 = vmatmul.mubr.msk.bf16.gmra.mrb[88].mxu0 %vm446_vm1, %v1324_v6 }
 0x175   : > { %4328 = vmatprep.mubr.msk.bf16.mxu0 %vm5275_vm0, %v5274_v0 }
 0x176   : > { %4359 = vmatmul.mubr.msk.bf16.gmra.mrb[92].mxu1 %vm446_vm1, %v5777_v23  ;;  %v1495_v23 = vshrl.u32 %v5929_v14, 16 }
 0x177   : > { %4362 = vmatprep.mubr.msk.bf16.mxu1 %vm5275_vm0, %v5274_v0 }
 0x178   : > { %v1497_v63 = vrot.slane %v1495_v23, 2 }
 0x17c   : > { %4329 = vmatmul.mubr.msk.bf16.gmra.mrb[92].mxu0 %vm446_vm1, %v1326_v50 }
 0x17d   : > { %4332 = vmatprep.mubr.msk.bf16.mxu0 %vm5275_vm0, %v5274_v0 }
 0x17e   : > { %4363 = vmatmul.mubr.msk.bf16.gmra.mrb[96].mxu1 %vm446_vm1, %v5799_v43  ;;  %v6008_v43 = vld [vmem:[#allocation2] sm:$0xff] }
 0x17f   : > { %4366 = vmatprep.mubr.msk.bf16.mxu1 %vm5275_vm0, %v5274_v0  ;;  %v1501_v0 = vor.u32 %v1500_v2, %v1497_v63 }
 0x181   : > { %v1502_v36 = vsel %vm1465_vm4, %v5823_v56, %v1501_v0 }
 0x184   : > { %4333 = vmatmul.mubr.msk.bf16.gmra.mrb[96].mxu0 %vm446_vm1, %v1328_v21 }
 0x185   : > { %4336 = vmatprep.mubr.msk.bf16.mxu0 %vm5275_vm0, %v6008_v43 }
 0x186   : > { %4367 = vmatmul.mubr.msk.bf16.gmra.mrb[100].mxu1 %vm446_vm1, %v5834_v59 }
 0x187   : > { %4370 = vmatprep.mubr.msk.bf16.mxu1 %vm5275_vm0, %v6008_v43 }
 0x18c   : > { %4337 = vmatmul.mubr.msk.bf16.gmra.mrb[100].mxu0 %vm446_vm1, %v5816_v51 }
 0x18d   : > { %4340 = vmatprep.mubr.msk.bf16.mxu0 %vm5275_vm0, %v6008_v43 }
 0x18e   : > { %4371 = vmatmul.mubr.msk.bf16.gmra.mrb[104].mxu1 %vm446_vm1, %v1502_v36  ;;  %v1644_v36 = vsel %vm1635_vm7, %v1641_v25, %v1643_v35 }
 0x18f   : > { %4374 = vmatprep.mubr.msk.bf16.mxu1 %vm5275_vm0, %v6008_v43 }
 0x191   : > { %v610_v59 = vpop.f32.mrb[0].mxu1 }
 0x192   : > { %v4172_v5 = vpop.f32.mrb[1].mxu1 }
 0x193   : > { %v613_v9 = vpop.f32.mrb[2].mxu1 }
 0x194   : > { %4341 = vmatmul.mubr.msk.bf16.gmra.mrb[104].mxu0 %vm446_vm1, %v5847_v1  ;;  %v4173_v11 = vpop.f32.mrb[3].mxu1 }
 0x195   : > { %4344 = vmatprep.mubr.msk.bf16.mxu0 %vm5275_vm0, %v6008_v43 }
 0x196   : > { %4375 = vmatmul.mubr.msk.bf16.gmra.mrb[108].mxu1 %vm446_vm1, %v1501_v0 }
 0x197   : > { %v502_v51 = vpop.f32.mrb[0].mxu0  ;;  %4424 = vmatprep.mubr.msk.bf16.mxu1 %vm5275_vm0, %v6008_v43 }
 0x198   : > { %v6032_v56 = vadd.f32 %v610_v59, %v502_v51  ;;  %v4142_v12 = vpop.f32.mrb[1].mxu0 }
 0x199   : > { %v505_v34 = vpop.f32.mrb[2].mxu0  ;;  %v618_v15 = vpop.f32.mrb[4].mxu1 }
 0x19a   : > { %v6034_v16 = vadd.f32 %v613_v9, %v505_v34  ;;  %v4143_v17 = vpop.f32.mrb[3].mxu0  ;;  %v4176_v19 = vpop.f32.mrb[5].mxu1 }
 0x19b   : > { %v621_v1 = vpop.f32.mrb[6].mxu1  ;;  %v1646_v19 = vsel %vm1635_vm7, %v1643_v35, %v1645_v46 }
 0x19c   : > { %4345 = vmatmul.mubr.msk.bf16.gmra.mrb[108].mxu0 %vm446_vm1, %v5842_v44  ;;  %v4177_v57 = vpop.f32.mrb[7].mxu1 }
 0x19d   : > { %4380 = vmatprep.mubr.msk.bf16.mxu0 %vm5275_vm0, %v6008_v43 }
 0x19f   : > { %v510_v24 = vpop.f32.mrb[4].mxu0 }
 0x1a0   : > { %v6042_v26 = vadd.f32 %v618_v15, %v510_v24  ;;  %v4146_v27 = vpop.f32.mrb[5].mxu0 }
 0x1a1   : > { %v513_v28 = vpop.f32.mrb[6].mxu0  ;;  %v626_v30 = vpop.f32.mrb[8].mxu1 }
 0x1a2   : > { %v6045_v32 = vadd.f32 %v621_v1, %v513_v28  ;;  %v4147_v3 = vpop.f32.mrb[7].mxu0  ;;  %v4180_v44 = vpop.f32.mrb[9].mxu1 }
 0x1a3   : > { %v629_v60 = vpop.f32.mrb[10].mxu1 }
 0x1a4   : > { %4381 = vmatmul.mubr.msk.bf16.vlgmr.msra.gmra.mrb[112].mxu0 %vm446_vm1, %v1638_v29  ;;  %v4181_v62 = vpop.f32.mrb[11].mxu1 }
 0x1a5   : > { %4384 = vmatprep.mubr.msk.bf16.mxu0 %vm5275_vm0, %v6008_v43 }
 0x1a7   : > { %v518_v13 = vpop.f32.mrb[8].mxu0 }
 0x1a8   : > { %v6051_v33 = vadd.f32 %v626_v30, %v518_v13  ;;  %v4150_v37 = vpop.f32.mrb[9].mxu0 }
 0x1a9   : > { %v521_v38 = vpop.f32.mrb[10].mxu0  ;;  %v634_v42 = vpop.f32.mrb[12].mxu1 }
 0x1aa   : > { %v6054_v31 = vadd.f32 %v629_v60, %v521_v38  ;;  %v4151_v6 = vpop.f32.mrb[11].mxu0  ;;  %v4184_v47 = vpop.f32.mrb[13].mxu1 }
 0x1ab   : > { %v637_v7 = vpop.f32.mrb[14].mxu1 }
 0x1ac   : > { %4385 = vmatmul.mubr.msk.bf16.gmra.mrb[116].mxu0 %vm446_vm1, %v1640_v39  ;;  %v4185_v48 = vpop.f32.mrb[15].mxu1 }
 0x1ad   : > { %4388 = vmatprep.mubr.msk.bf16.mxu0 %vm5275_vm0, %v6008_v43  ;;  %v4940_v48 = vld [vmem:[#allocation9 + $0x40] sm:$0xff]  }
 0x1ae   : > { %4409 = vmatpush3.bf16.msra.mxu1 %v4940_v48 }
 0x1af   : > { %v526_v49 = vpop.f32.mrb[12].mxu0  ;;  %4410 = vmatprep.subr.bf16.mxu1 %v6008_v43 }
 0x1b0   : > { %v6060_v10 = vadd.f32 %v634_v42, %v526_v49  ;;  %v4154_v50 = vpop.f32.mrb[13].mxu0 }
 0x1b1   : > { %v529_v52 = vpop.f32.mrb[14].mxu0  ;;  %v642_v54 = vpop.f32.mrb[16].mxu1 }
 0x1b2   : > { %v6063_v58 = vadd.f32 %v637_v7, %v529_v52  ;;  %v4155_v23 = vpop.f32.mrb[15].mxu0  ;;  %v4188_v61 = vpop.f32.mrb[17].mxu1 }
 0x1b3   : > { %v645_v21 = vpop.f32.mrb[18].mxu1 }
 0x1b4   : > { %4389 = vmatmul.mubr.msk.bf16.gmra.mrb[120].mxu0 %vm446_vm1, %v1642_v53  ;;  %v4189_v40 = vpop.f32.mrb[19].mxu1 }
 0x1b5   : > { %4392 = vmatprep.mubr.msk.bf16.mxu0 %vm5275_vm0, %v6008_v43 }
 0x1b7   : > { %v534_v63 = vpop.f32.mrb[16].mxu0 }
 0x1b8   : > { %v6069_v2 = vadd.f32 %v642_v54, %v534_v63  ;;  %v4158_v4 = vpop.f32.mrb[17].mxu0 }
 0x1b9   : > { %v537_v0 = vpop.f32.mrb[18].mxu0  ;;  %v650_v59 = vpop.f32.mrb[20].mxu1 }
 0x1ba   : > { %v6072_v5 = vadd.f32 %v645_v21, %v537_v0  ;;  %v4159_v9 = vpop.f32.mrb[19].mxu0  ;;  %v4192_v11 = vpop.f32.mrb[21].mxu1  ;;  %v4942_v0 = vld [vmem:[#allocation9 + $0x50] sm:$0xff]  }
 0x1bb   : > { %v653_v51 = vpop.f32.mrb[22].mxu1 }
 0x1bc   : > { %4393 = vmatmul.mubr.msk.bf16.gmra.mrb[124].mxu0 %vm446_vm1, %v1644_v36  ;;  %v4193_v12 = vpop.f32.mrb[23].mxu1 }
 0x1bd   : > { %4396 = vmatprep.mubr.msk.bf16.mxu0 %vm5275_vm0, %v6008_v43 }
 0x1bf   : > { %v542_v41 = vpop.f32.mrb[20].mxu0 }
 0x1c0   : > { %v6077_v34 = vadd.f32 %v650_v59, %v542_v41  ;;  %v4162_v15 = vpop.f32.mrb[21].mxu0 }
 0x1c1   : > { %v545_v17 = vpop.f32.mrb[22].mxu0  ;;  %v658_v1 = vpop.f32.mrb[24].mxu1 }
 0x1c2   : > { %v6082_v57 = vadd.f32 %v653_v51, %v545_v17  ;;  %v4163_v20 = vpop.f32.mrb[23].mxu0  ;;  %v4196_v22 = vpop.f32.mrb[25].mxu1 }
 0x1c3   : > { %v661_v24 = vpop.f32.mrb[26].mxu1 }
 0x1c4   : > { %4397 = vmatmul.mubr.msk.bf16.gmra.mrb[128].mxu0 %vm446_vm1, %v1646_v19  ;;  %v4197_v27 = vpop.f32.mrb[27].mxu1  ;;  %v4944_v24 = vld [vmem:[#allocation9] sm:$0xff]  }
 0x1c5   : > { %4400 = vmatprep.mubr.msk.bf16.mxu0 %vm5275_vm0, %v6008_v43  ;;  %4453 = vmatpush3.bf16.msra.mxu0 %v4944_v24 }
 0x1c6   : > { %4454 = vmatprep.subr.bf16.mxu0 %v6008_v43 }
 0x1c7   : > { %v550_v28 = vpop.f32.mrb[24].mxu0 }
 0x1c8   : > { %v6087_v29 = vadd.f32 %v658_v1, %v550_v28  ;;  %v4166_v30 = vpop.f32.mrb[25].mxu0  ;;  %v4943_v1 = vld [vmem:[#allocation9 + $0x58] sm:$0xff]  }
 0x1c9   : > { %v553_v3 = vpop.f32.mrb[26].mxu0  ;;  %v907_v45 = vpop.f32.mrb[28].mxu1 }
 0x1ca   : > { %v4167_v44 = vpop.f32.mrb[27].mxu0  ;;  %v4232_v46 = vpop.f32.mrb[29].mxu1 }
 0x1cb   : > { %v910_v60 = vpop.f32.mrb[30].mxu1  ;;  %v4946_v46 = vld [vmem:[#allocation9 + $0x8] sm:$0xff]  }
 0x1cc   : > { %4401 = vmatmul.mubr.msk.bf16.gmra.mrb[132].mxu0 %vm446_vm1, %v5940_v55  ;;  %v4233_v62 = vpop.f32.mrb[31].mxu1 }
 0x1cd   : > { %4404 = vmatprep.mubr.msk.bf16.mxu0 %vm5275_vm0, %v6008_v43  ;;  %4455 = vmatpush3.bf16.msra.mxu0 %v4946_v46 }
 0x1ce   : > { %4456 = vmatprep.subr.bf16.mxu0 %v6008_v43 }
 0x1cf   : > { %v749_v8 = vpop.f32.mrb[28].mxu0 }
 0x1d0   : > { %v803_v13 = vadd.f32 %v749_v8, %v6032_v56  ;;  %v4202_v37 = vpop.f32.mrb[29].mxu0 }
 0x1d1   : > { %v752_v38 = vpop.f32.mrb[30].mxu0  ;;  %v915_v39 = vpop.f32.mrb[32].mxu1  ;;  %v4947_v37 = vld [vmem:[#allocation9 + $0x10] sm:$0xff]  }
 0x1d2   : > { %v804_v42 = vadd.f32 %v752_v38, %v6034_v16  ;;  %v6095_v6 = vadd.f32 %v907_v45, %v803_v13  ;;  %v4203_v47 = vpop.f32.mrb[31].mxu0  ;;  %v4236_v7 = vpop.f32.mrb[33].mxu1  ;;  %4457 = vmatpush3.bf16.msra.mxu0 %v4947_v37 }
 0x1d3   : > { %v918_v25 = vpop.f32.mrb[34].mxu1  ;;  %v4948_v7 = vld [vmem:[#allocation9 + $0x68] sm:$0xff]   ;;  %4458 = vmatprep.subr.bf16.mxu0 %v6008_v43 }
 0x1d4   : > { %v6097_v49 = vadd.f32 %v910_v60, %v804_v42  ;;  %4405 = vmatmul.mubr.msk.bf16.gmra.mrb[136].mxu0 %vm446_vm1, %v1647_v18  ;;  %v4237_v55 = vpop.f32.mrb[35].mxu1  ;;  %v4941_v18 = vld [vmem:[#allocation9 + $0x48] sm:$0xff]  }
 0x1d5   : > { %4468 = vmatprep.mubr.msk.bf16.mxu0 %vm5275_vm0, %v6008_v43  ;;  %4411 = vmatpush3.bf16.msra.mxu1 %v4941_v18 }
 0x1d6   : > { %4412 = vmatprep.subr.bf16.mxu1 %v6008_v43 }
 0x1d7   : > { %v757_v56 = vpop.f32.mrb[32].mxu0 }
 0x1d8   : > { %v805_v16 = vadd.f32 %v757_v56, %v6042_v26  ;;  %v4206_v50 = vpop.f32.mrb[33].mxu0 }
 0x1d9   : > { %v760_v52 = vpop.f32.mrb[34].mxu0  ;;  %v923_v53 = vpop.f32.mrb[36].mxu1  ;;  %4413 = vmatpush3.bf16.msra.mxu1 %v4942_v0 }
 0x1da   : > { %v806_v54 = vadd.f32 %v760_v52, %v6045_v32  ;;  %v6107_v23 = vadd.f32 %v915_v39, %v805_v16  ;;  %v4207_v14 = vpop.f32.mrb[35].mxu0  ;;  %v4240_v61 = vpop.f32.mrb[37].mxu1  ;;  %4414 = vmatprep.subr.bf16.mxu1 %v6008_v43 }
 0x1db   : > { %v926_v21 = vpop.f32.mrb[38].mxu1 }
 0x1dc   : > { %v6109_v40 = vadd.f32 %v918_v25, %v806_v54  ;;  %v4241_v35 = vpop.f32.mrb[39].mxu1 }
 0x1dd   : > { %4415 = vmatpush3.bf16.msra.mxu1 %v4943_v1 }
 0x1de   : > { %4416 = vmatprep.subr.bf16.mxu1 %v6008_v43 }
 0x1df   : > { %v765_v63 = vpop.f32.mrb[36].mxu0 }
 0x1e0   : > { %v807_v26 = vadd.f32 %v765_v63, %v6051_v33  ;;  %v4210_v4 = vpop.f32.mrb[37].mxu0 }
 0x1e1   : > { %v768_v36 = vpop.f32.mrb[38].mxu0  ;;  %v931_v59 = vpop.f32.mrb[40].mxu1 }
 0x1e2   : > { %v808_v32 = vadd.f32 %v768_v36, %v6054_v31  ;;  %v6114_v9 = vadd.f32 %v923_v53, %v807_v26  ;;  %v4211_v11 = vpop.f32.mrb[39].mxu0  ;;  %v4244_v51 = vpop.f32.mrb[41].mxu1  ;;  %v4950_v53 = vld [vmem:[#allocation9 + $0x20] sm:$0xff]  }
 0x1e3   : > { %v934_v12 = vpop.f32.mrb[42].mxu1 }
 0x1e4   : > { %v6117_v41 = vadd.f32 %v926_v21, %v808_v32  ;;  %v4245_v15 = vpop.f32.mrb[43].mxu1  ;;  %v4954_v32 = vld [vmem:[#allocation9 + $0x30] sm:$0xff]  }
 0x1e7   : > { %v773_v17 = vpop.f32.mrb[40].mxu0 }
 0x1e8   : > { %v809_v33 = vadd.f32 %v773_v17, %v6060_v10  ;;  %v4214_v19 = vpop.f32.mrb[41].mxu0  ;;  %v4945_v10 = vld [vmem:[#allocation9 + $0x60] sm:$0xff]  }
 0x1e9   : > { %v776_v20 = vpop.f32.mrb[42].mxu0  ;;  %v939_v22 = vpop.f32.mrb[44].mxu1  ;;  %4417 = vmatpush3.bf16.msra.mxu1 %v4945_v10 }
 0x1ea   : > { %v810_v31 = vadd.f32 %v776_v20, %v6063_v58  ;;  %v6121_v27 = vadd.f32 %v931_v59, %v809_v33  ;;  %v4215_v28 = vpop.f32.mrb[43].mxu0  ;;  %v4248_v30 = vpop.f32.mrb[45].mxu1  ;;  %4418 = vmatprep.subr.bf16.mxu1 %v6008_v43  ;;  %v4951_v59 = vld [vmem:[#allocation9 + $0x70] sm:$0xff]   ;;  %v4955_v33 = vld [vmem:[#allocation9 + $0x38] sm:$0xff]  }
 0x1eb   : > { %v942_v3 = vpop.f32.mrb[46].mxu1 }
 0x1ec   : > { %v6124_v45 = vadd.f32 %v934_v12, %v810_v31  ;;  %v4249_v44 = vpop.f32.mrb[47].mxu1 }
 0x1ed   : > { %4419 = vmatpush3.bf16.msra.mxu1 %v4948_v7 }
 0x1ee   : > { %4420 = vmatprep.subr.bf16.mxu1 %v6008_v43 }
 0x1ef   : > { %v781_v60 = vpop.f32.mrb[44].mxu0 }
 0x1f0   : > { %v811_v58 = vadd.f32 %v781_v60, %v6069_v2  ;;  %v4218_v62 = vpop.f32.mrb[45].mxu0  ;;  %v4949_v2 = vld [vmem:[#allocation9 + $0x18] sm:$0xff]  }
 0x1f1   : > { %v784_v8 = vpop.f32.mrb[46].mxu0  ;;  %v947_v13 = vpop.f32.mrb[48].mxu1  ;;  %4459 = vmatpush3.bf16.msra.mxu0 %v4949_v2  ;;  %4421 = vmatpush3.bf16.msra.mxu1 %v4951_v59 }
 0x1f2   : > { %v812_v38 = vadd.f32 %v784_v8, %v6072_v5  ;;  %v6131_v39 = vadd.f32 %v939_v22, %v811_v58  ;;  %v4219_v42 = vpop.f32.mrb[47].mxu0  ;;  %v4252_v47 = vpop.f32.mrb[49].mxu1  ;;  %4460 = vmatprep.subr.bf16.mxu0 %v6008_v43  ;;  %4422 = vmatprep.subr.bf16.mxu1 %v6008_v43 }
 0x1f3   : > { %v950_v48 = vpop.f32.mrb[50].mxu1 }
 0x1f4   : > { %v6133_v25 = vadd.f32 %v942_v3, %v812_v38  ;;  %v4253_v55 = vpop.f32.mrb[51].mxu1 }
 0x1f5   : > { %4461 = vmatpush3.bf16.msra.mxu0 %v4950_v53 }
 0x1f6   : > { %4462 = vmatprep.subr.bf16.mxu0 %v6008_v43 }
 0x1f7   : > { %v789_v56 = vpop.f32.mrb[48].mxu0 }
 0x1f8   : > { %v813_v5 = vadd.f32 %v789_v56, %v6077_v34  ;;  %v4222_v16 = vpop.f32.mrb[49].mxu0  ;;  %v4952_v34 = vld [vmem:[#allocation9 + $0x28] sm:$0xff]  }
 0x1f9   : > { %v792_v50 = vpop.f32.mrb[50].mxu0  ;;  %v955_v52 = vpop.f32.mrb[52].mxu1  ;;  %4463 = vmatpush3.bf16.msra.mxu0 %v4952_v34 }
 0x1fa   : > { %v814_v54 = vadd.f32 %v792_v50, %v6082_v57  ;;  %v6140_v14 = vadd.f32 %v947_v13, %v813_v5  ;;  %v4223_v61 = vpop.f32.mrb[51].mxu0  ;;  %v4256_v18 = vpop.f32.mrb[53].mxu1  ;;  %4464 = vmatprep.subr.bf16.mxu0 %v6008_v43 }
 0x1fb   : > { %v958_v21 = vpop.f32.mrb[54].mxu1 }
 0x1fc   : > { %v6142_v35 = vadd.f32 %v950_v48, %v814_v54  ;;  %v4257_v63 = vpop.f32.mrb[55].mxu1 }
 0x1fd   : > { %4465 = vmatpush3.bf16.msra.mxu0 %v4954_v32 }
 0x1fe   : > { %4466 = vmatprep.subr.bf16.mxu0 %v6008_v43 }
 0x1ff   : > { %v797_v26 = vpop.f32.mrb[52].mxu0 }
 0x200   : > { %v815_v4 = vadd.f32 %v797_v26, %v6087_v29  ;;  %v4226_v0 = vpop.f32.mrb[53].mxu0  ;;  %v4953_v29 = vld [vmem:[#allocation9 + $0x78] sm:$0xff]  }
 0x201   : > { %v800_v57 = vpop.f32.mrb[54].mxu0  ;;  %v1246_v36 = vpop.f32.mrb[56].mxu1  ;;  %4423 = vmatpush3.bf16.msra.mxu1 %v4953_v29  ;;  %4467 = vmatpush3.bf16.msra.mxu0 %v4955_v33 }
 0x202   : > { %v6147_v11 = vadd.f32 %v955_v52, %v815_v4  ;;  %v4227_v51 = vpop.f32.mrb[55].mxu0  ;;  %v4292_v12 = vpop.f32.mrb[57].mxu1  ;;  %4496 = vmatprep.subr.bf16.mxu1 %v6008_v43  ;;  %4540 = vmatprep.subr.bf16.mxu0 %v6008_v43 }
 0x203   : > { %v1249_v15 = vpop.f32.mrb[58].mxu1 }
 0x204   : > { %v4293_v17 = vpop.f32.mrb[59].mxu1 }
 0x207   : > { %v1101_v19 = vpop.f32.mrb[56].mxu0 }
 0x208   : > { %v1155_v1 = vadd.f32 %v1101_v19, %v6095_v6  ;;  %v4262_v20 = vpop.f32.mrb[57].mxu0 }
 0x209   : > { %v1104_v22 = vpop.f32.mrb[58].mxu0  ;;  %v1254_v24 = vpop.f32.mrb[60].mxu1 }
 0x20a   : > { %v1156_v31 = vadd.f32 %v1104_v22, %v6097_v49  ;;  %v6155_v28 = vadd.f32 %v1246_v36, %v1155_v1  ;;  %v4263_v30 = vpop.f32.mrb[59].mxu0  ;;  %v4296_v3 = vpop.f32.mrb[61].mxu1 }
 0x20b   : > { %v1257_v44 = vpop.f32.mrb[62].mxu1 }
 0x20c   : > { %v6157_v10 = vadd.f32 %v1249_v15, %v1156_v31  ;;  %v4297_v46 = vpop.f32.mrb[63].mxu1 }
 0x20f   : > { %v1109_v60 = vpop.f32.mrb[60].mxu0 }
 0x210   : > { %v1157_v6 = vadd.f32 %v1109_v60, %v6107_v23  ;;  %v4266_v58 = vpop.f32.mrb[61].mxu0 }
 0x211   : > { %v1112_v62 = vpop.f32.mrb[62].mxu0  ;;  %v1262_v8 = vpop.f32.mrb[64].mxu1 }
 0x212   : > { %v1158_v13 = vadd.f32 %v1112_v62, %v6109_v40  ;;  %v6161_v37 = vadd.f32 %v1254_v24, %v1157_v6  ;;  %v4267_v38 = vpop.f32.mrb[63].mxu0  ;;  %v4300_v49 = vpop.f32.mrb[65].mxu1 }
 0x213   : > { %v1265_v42 = vpop.f32.mrb[66].mxu1 }
 0x214   : > { %v6163_v47 = vadd.f32 %v1257_v44, %v1158_v13  ;;  %v4301_v7 = vpop.f32.mrb[67].mxu1 }
 0x217   : > { %v1117_v48 = vpop.f32.mrb[64].mxu0 }
 0x218   : > { %v1159_v55 = vadd.f32 %v1117_v48, %v6114_v9  ;;  %v4270_v2 = vpop.f32.mrb[65].mxu0 }
 0x219   : > { %v1120_v56 = vpop.f32.mrb[66].mxu0  ;;  %v1270_v5 = vpop.f32.mrb[68].mxu1 }
 0x21a   : > { %v1160_v23 = vadd.f32 %v1120_v56, %v6117_v41  ;;  %v6167_v16 = vadd.f32 %v1262_v8, %v1159_v55  ;;  %v4271_v50 = vpop.f32.mrb[67].mxu0  ;;  %v4304_v40 = vpop.f32.mrb[69].mxu1 }
 0x21b   : > { %v1273_v52 = vpop.f32.mrb[70].mxu1 }
 0x21c   : > { %v6169_v53 = vadd.f32 %v1265_v42, %v1160_v23  ;;  %v4305_v54 = vpop.f32.mrb[71].mxu1 }
 0x21f   : > { %v1125_v61 = vpop.f32.mrb[68].mxu0 }
 0x220   : > { %v1161_v18 = vadd.f32 %v1125_v61, %v6121_v27  ;;  %v4274_v21 = vpop.f32.mrb[69].mxu0 }
 0x221   : > { %v1128_v63 = vpop.f32.mrb[70].mxu0  ;;  %v1278_v34 = vpop.f32.mrb[72].mxu1 }
 0x222   : > { %v1162_v9 = vadd.f32 %v1128_v63, %v6124_v45  ;;  %v6173_v26 = vadd.f32 %v1270_v5, %v1161_v18  ;;  %v4275_v4 = vpop.f32.mrb[71].mxu0  ;;  %v4308_v41 = vpop.f32.mrb[73].mxu1 }
 0x223   : > { %v1281_v0 = vpop.f32.mrb[74].mxu1 }
 0x224   : > { %v6175_v57 = vadd.f32 %v1273_v52, %v1162_v9  ;;  %v4309_v36 = vpop.f32.mrb[75].mxu1 }
 0x227   : > { %v1133_v59 = vpop.f32.mrb[72].mxu0 }
 0x228   : > { %v1163_v32 = vadd.f32 %v1133_v59, %v6131_v39  ;;  %v4278_v51 = vpop.f32.mrb[73].mxu0 }
 0x229   : > { %v1136_v12 = vpop.f32.mrb[74].mxu0  ;;  %v1286_v15 = vpop.f32.mrb[76].mxu1 }
 0x22a   : > { %v1164_v27 = vadd.f32 %v1136_v12, %v6133_v25  ;;  %v6179_v17 = vadd.f32 %v1278_v34, %v1163_v32  ;;  %v4279_v29 = vpop.f32.mrb[75].mxu0  ;;  %v4312_v45 = vpop.f32.mrb[77].mxu1 }
 0x22b   : > { %v1289_v33 = vpop.f32.mrb[78].mxu1 }
 0x22c   : > { %v6181_v19 = vadd.f32 %v1281_v0, %v1164_v27  ;;  %v4313_v1 = vpop.f32.mrb[79].mxu1 }
 0x22f   : > { %v1141_v20 = vpop.f32.mrb[76].mxu0 }
 0x230   : > { %v1165_v22 = vadd.f32 %v1141_v20, %v6140_v14  ;;  %v4282_v24 = vpop.f32.mrb[77].mxu0 }
 0x231   : > { %v1144_v31 = vpop.f32.mrb[78].mxu0  ;;  %v1294_v30 = vpop.f32.mrb[80].mxu1 }
 0x232   : > { %v1166_v39 = vadd.f32 %v1144_v31, %v6142_v35  ;;  %v6185_v3 = vadd.f32 %v1286_v15, %v1165_v22  ;;  %v4283_v44 = vpop.f32.mrb[79].mxu0  ;;  %v4316_v25 = vpop.f32.mrb[81].mxu1 }
 0x233   : > { %v1297_v46 = vpop.f32.mrb[82].mxu1 }
 0x234   : > { %v6187_v60 = vadd.f32 %v1289_v33, %v1166_v39  ;;  %v4317_v6 = vpop.f32.mrb[83].mxu1 }
 0x237   : > { %v1149_v58 = vpop.f32.mrb[80].mxu0 }
 0x238   : > { %v1167_v62 = vadd.f32 %v1149_v58, %v6147_v11  ;;  %v4286_v8 = vpop.f32.mrb[81].mxu0 }
 0x239   : > { %v1152_v13 = vpop.f32.mrb[82].mxu0  ;;  %v1564_v38 = vpop.f32.mrb[84].mxu1 }
 0x23a   : > { %v6190_v14 = vadd.f32 %v1294_v30, %v1167_v62  ;;  %v4287_v49 = vpop.f32.mrb[83].mxu0  ;;  %v4352_v42 = vpop.f32.mrb[85].mxu1 }
 0x23b   : > { %v1567_v7 = vpop.f32.mrb[86].mxu1 }
 0x23c   : > { %v4353_v35 = vpop.f32.mrb[87].mxu1 }
 0x23f   : > { %v1394_v48 = vpop.f32.mrb[84].mxu0 }
 0x240   : > { %v1448_v55 = vadd.f32 %v1394_v48, %v6155_v28  ;;  %v4322_v2 = vpop.f32.mrb[85].mxu0 }
 0x241   : > { %v1397_v56 = vpop.f32.mrb[86].mxu0  ;;  %v1572_v5 = vpop.f32.mrb[88].mxu1 }
 0x242   : > { %v1449_v23 = vadd.f32 %v1397_v56, %v6157_v10  ;;  %v6194_v50 = vadd.f32 %v1564_v38, %v1448_v55  ;;  %v4323_v11 = vpop.f32.mrb[87].mxu0  ;;  %v4356_v40 = vpop.f32.mrb[89].mxu1 }
 0x243   : > { %v1575_v52 = vpop.f32.mrb[90].mxu1 }
 0x244   : > { %v6196_v54 = vadd.f32 %v1567_v7, %v1449_v23  ;;  %v4357_v61 = vpop.f32.mrb[91].mxu1 }
 0x247   : > { %v1402_v18 = vpop.f32.mrb[88].mxu0 }
 0x248   : > { %v1450_v21 = vadd.f32 %v1402_v18, %v6161_v37  ;;  %v4326_v63 = vpop.f32.mrb[89].mxu0 }
 0x249   : > { %v1405_v34 = vpop.f32.mrb[90].mxu0  ;;  %v1580_v9 = vpop.f32.mrb[92].mxu1 }
 0x24a   : > { %v1451_v28 = vadd.f32 %v1405_v34, %v6163_v47  ;;  %v6200_v4 = vadd.f32 %v1572_v5, %v1450_v21  ;;  %v4327_v41 = vpop.f32.mrb[91].mxu0  ;;  %v4360_v10 = vpop.f32.mrb[93].mxu1 }
 0x24b   : > { %v1583_v0 = vpop.f32.mrb[94].mxu1 }
 0x24c   : > { %v6202_v36 = vadd.f32 %v1575_v52, %v1451_v28  ;;  %v4361_v59 = vpop.f32.mrb[95].mxu1 }
 0x24f   : > { %v1410_v32 = vpop.f32.mrb[92].mxu0 }
 0x250   : > { %v1452_v51 = vadd.f32 %v1410_v32, %v6167_v16  ;;  %v4330_v12 = vpop.f32.mrb[93].mxu0  ;;  %v1826_v32 = vpop.permute.xlu0 %1825 }
 0x251   : > { %v1413_v15 = vpop.f32.mrb[94].mxu0  ;;  %v1588_v27 = vpop.f32.mrb[96].mxu1 }
 0x252   : > { %v1453_v37 = vadd.f32 %v1413_v15, %v6169_v53  ;;  %v6206_v29 = vadd.f32 %v1580_v9, %v1452_v51  ;;  %v4331_v45 = vpop.f32.mrb[95].mxu0  ;;  %v4364_v47 = vpop.f32.mrb[97].mxu1 }
 0x253   : > { %v1591_v33 = vpop.f32.mrb[98].mxu1 }
 0x254   : > { %v6208_v1 = vadd.f32 %v1583_v0, %v1453_v37  ;;  %v4365_v20 = vpop.f32.mrb[99].mxu1  ;;  %v6231_v0 = vld [vmem:[#allocation8] ss:$0 sm:$0xff] }
 0x257   : > { %v1418_v22 = vpop.f32.mrb[96].mxu0 }
 0x258   : > { %v1454_v24 = vadd.f32 %v1418_v22, %v6173_v26  ;;  %v4334_v31 = vpop.f32.mrb[97].mxu0 }
 0x259   : > { %v1421_v30 = vpop.f32.mrb[98].mxu0  ;;  %v1596_v39 = vpop.f32.mrb[100].mxu1 }
 0x25a   : > { %v1455_v16 = vadd.f32 %v1421_v30, %v6175_v57  ;;  %v6212_v44 = vadd.f32 %v1588_v27, %v1454_v24  ;;  %v4335_v25 = vpop.f32.mrb[99].mxu0  ;;  %v4368_v53 = vpop.f32.mrb[101].mxu1 }
 0x25b   : > { %v1599_v46 = vpop.f32.mrb[102].mxu1  ;;  %v1836_v31 = vpop.permute.xlu1 %1835 }
 0x25c   : > { %v6214_v6 = vadd.f32 %v1591_v33, %v1455_v16  ;;  %v4369_v58 = vpop.f32.mrb[103].mxu1  ;;  %v1831_v33 = vpop.permute.xlu0 %1830 }
 0x25d   : > { %v1954_v58 = vld [vmem:[#allocation2 + $0x1] sm:$0xff] }
 0x25f   : > { %v1426_v62 = vpop.f32.mrb[100].mxu0 }
 0x260   : > { %v1456_v8 = vadd.f32 %v1426_v62, %v6179_v17  ;;  %v4338_v13 = vpop.f32.mrb[101].mxu0 }
 0x261   : > { %v1429_v38 = vpop.f32.mrb[102].mxu0  ;;  %v1604_v49 = vpop.f32.mrb[104].mxu1 }
 0x262   : > { %v1457_v26 = vadd.f32 %v1429_v38, %v6181_v19  ;;  %v6218_v42 = vadd.f32 %v1596_v39, %v1456_v8  ;;  %v4339_v7 = vpop.f32.mrb[103].mxu0  ;;  %v4372_v57 = vpop.f32.mrb[105].mxu1 }
 0x263   : > { %v1607_v35 = vpop.f32.mrb[106].mxu1  ;;  %v1841_v8 = vpop.permute.xlu1 %1840 }
 0x264   : > { %v6220_v48 = vadd.f32 %v1599_v46, %v1457_v26  ;;  %v4373_v55 = vpop.f32.mrb[107].mxu1  ;;  %v4956_v26 = vld [vmem:[#allocation9 + $0x80] sm:$0xff]  }
 0x267   : > { %v1434_v2 = vpop.f32.mrb[104].mxu0 }
 0x268   : > { %v1458_v56 = vadd.f32 %v1434_v2, %v6185_v3  ;;  %v4342_v5 = vpop.f32.mrb[105].mxu0 }
 0x269   : > { %v1437_v23 = vpop.f32.mrb[106].mxu0  ;;  %v1612_v11 = vpop.f32.mrb[108].mxu1 }
 0x26a   : > { %v1459_v17 = vadd.f32 %v1437_v23, %v6187_v60  ;;  %v6224_v40 = vadd.f32 %v1604_v49, %v1458_v56  ;;  %v4343_v52 = vpop.f32.mrb[107].mxu0  ;;  %v4376_v19 = vpop.f32.mrb[109].mxu1  ;;  %v4960_v56 = vld [vmem:[#allocation9 + $0xc0] sm:$0xff]  }
 0x26b   : > { %v1615_v61 = vpop.f32.mrb[110].mxu1 }
 0x26c   : > { %v6226_v18 = vadd.f32 %v1607_v35, %v1459_v17  ;;  %v4377_v21 = vpop.f32.mrb[111].mxu1  ;;  %v4962_v61 = vld [vmem:[#allocation9 + $0xc8] sm:$0xff]  }
 0x26f   : > { %v1442_v63 = vpop.f32.mrb[108].mxu0 }
 0x270   : > { %v1460_v34 = vadd.f32 %v1442_v63, %v6190_v14  ;;  %v4346_v9 = vpop.f32.mrb[109].mxu0 }
 0x271   : > { %v1445_v28 = vpop.f32.mrb[110].mxu0  ;;  %v4958_v9 = vld [vmem:[#allocation9 + $0x90] sm:$0xff]  }
 0x272   : > { %v6229_v41 = vadd.f32 %v1612_v11, %v1460_v34  ;;  %v4347_v3 = vpop.f32.mrb[111].mxu0  ;;  %v1851_v28 = vpop.permute.xlu1 %1850 }
 0x277   : > { %v1710_v10 = vpop.f32.mrb[112].mxu0 }
 0x278   : > { %v1764_v60 = vadd.f32 %v1710_v10, %v6194_v50  ;;  %v4382_v59 = vpop.f32.mrb[113].mxu0 }
 0x279   : > { %v1713_v51 = vpop.f32.mrb[114].mxu0 }
 0x27a   : > { %v1784_v12 = vadd.f32 %v6231_v0, %v1764_v60  ;;  %v1765_v15 = vadd.f32 %v1713_v51, %v6196_v54  ;;  %v4383_v27 = vpop.f32.mrb[115].mxu0 }
 0x27c   : > { %v1797_v37 = vmax.f32 %v1784_v12, 0.0  ;;  %v1785_v14 = vadd.f32 %v6231_v0, %v1765_v15 }
 0x27e   : > { %v6237_v45 = vmul.f32 %v1826_v32, %v1797_v37  ;;  %v1798_v47 = vmax.f32 %v1785_v14, 0.0 }
 0x27f   : > { %v1718_v20 = vpop.f32.mrb[116].mxu0 }
 0x280   : > { %1905 = vst [vmem:[#allocation2 + $0xb] sm:$0xff] %v6237_v45  ;;  %v6240_v22 = vmul.f32 %v1831_v33, %v1798_v47  ;;  %v1766_v50 = vadd.f32 %v1718_v20, %v6200_v4  ;;  %v4386_v24 = vpop.f32.mrb[117].mxu0  ;;  %v4963_v20 = vld [vmem:[#allocation9 + $0xd0] sm:$0xff]  }
 0x281   : > { %v1721_v30 = vpop.f32.mrb[118].mxu0 }
 0x282   : > { %1906 = vst [vmem:[#allocation2 + $0x13] sm:$0xff] %v6240_v22  ;;  %v1786_v54 = vadd.f32 %v6231_v0, %v1766_v50  ;;  %v1767_v39 = vadd.f32 %v1721_v30, %v6202_v36  ;;  %v4387_v16 = vpop.f32.mrb[119].mxu0  ;;  %v2648_v25 = vpack.c.bf16 %v6240_v22, %v6237_v45  ;;  %v4990_v22 = vld [vmem:[#allocation9 + $0x190] sm:$0xff]  }
 0x283   : > { %v1861_v16 = vpop.permute.xlu1 %1860 }
 0x284   : > { %v1799_v53 = vmax.f32 %v1786_v54, 0.0  ;;  %v1787_v46 = vadd.f32 %v6231_v0, %v1767_v39 }
 0x286   : > { %v6249_v62 = vmul.f32 %v1836_v31, %v1799_v53  ;;  %v1800_v4 = vmax.f32 %v1787_v46, 0.0 }
 0x287   : > { %v1726_v13 = vpop.f32.mrb[120].mxu0  ;;  %v1955_v38 = vld [vmem:[#allocation2 + $0x9] sm:$0xff] }
 0x288   : > { %v1919_v49 = vld [vmem:[#allocation2 + $0x8] sm:$0xff]  ;;  %1907 = vst [vmem:[#allocation2 + $0x1b] sm:$0xff] %v6249_v62  ;;  %v6252_v7 = vmul.f32 %v1841_v8, %v1800_v4  ;;  %v1768_v36 = vadd.f32 %v1726_v13, %v6206_v29  ;;  %v4390_v57 = vpop.f32.mrb[121].mxu0  ;;  %v1967_v35 = vpack.c.bf16 %v1955_v38, %v1954_v58  ;;  %v4957_v29 = vld [vmem:[#allocation9 + $0x88] sm:$0xff]  }
 0x289   : > { %v1931_v55 = vpack.c.bf16 %v1919_v49, %v6008_v43  ;;  %v1729_v2 = vpop.f32.mrb[122].mxu0  ;;  %v1956_v34 = vld [vmem:[#allocation2 + $0x11] sm:$0xff] }
 0x28a   : > { %1908 = vst [vmem:[#allocation2 + $0x23] sm:$0xff] %v6252_v7  ;;  %v1788_v5 = vadd.f32 %v6231_v0, %v1768_v36  ;;  %v1769_v23 = vadd.f32 %v1729_v2, %v6208_v1  ;;  %v4391_v11 = vpop.f32.mrb[123].mxu0  ;;  %4425 = vmatmul.mubr.bf16.vlgmr.msra.gmra.mrb[112].mxu1 %v1967_v35  ;;  %v2649_v17 = vpack.c.bf16 %v6252_v7, %v6249_v62  ;;  %v1846_v1 = vpop.permute.xlu0 %1845  ;;  %v1920_v60 = vld [vmem:[#allocation2 + $0x10] sm:$0xff]  ;;  %v6294_v36 = vld [vmem:[#allocation2] sm:$0xff] }
 0x28b   : > { %4469 = vmatmul.mubr.bf16.vlgmr.msra.gmra.mrb[140].mxu0 %v1931_v55  ;;  %4497 = vmatpush3.bf16.msra.mxu1 %v4956_v26  ;;  %v4961_v57 = vld [vmem:[#allocation9 + $0xa0] sm:$0xff]   ;;  %v4965_v35 = vld [vmem:[#allocation9 + $0xd8] sm:$0xff]   ;;  %v4964_v11 = vld [vmem:[#allocation9 + $0xa8] sm:$0xff]  }
 0x28c   : > { %4428 = vmatprep.mubr.msk.bf16.mxu1 %vm5275_vm0, %v6008_v43  ;;  %v1801_v52 = vmax.f32 %v1788_v5, 0.0  ;;  %v1789_v19 = vadd.f32 %v6231_v0, %v1769_v23  ;;  %4498 = vmatprep.subr.bf16.mxu1 %v6008_v43  ;;  %v4993_v7 = vld [vmem:[#allocation9 + $0x1a0] sm:$0xff]  }
 0x28d   : > { %4472 = vmatprep.mubr.msk.bf16.mxu0 %vm5275_vm0, %v6008_v43  ;;  %4541 = vmatpush3.bf16.msra.mxu0 %v4960_v56 }
 0x28e   : > { %v6267_v21 = vmul.f32 %v1846_v1, %v1801_v52  ;;  %v1802_v63 = vmax.f32 %v1789_v19, 0.0  ;;  %4542 = vmatprep.subr.bf16.mxu0 %v6008_v43 }
 0x28f   : > { %v1734_v3 = vpop.f32.mrb[124].mxu0  ;;  %4499 = vmatpush3.bf16.msra.mxu1 %v4957_v29  ;;  %v1957_v10 = vld [vmem:[#allocation2 + $0x19] sm:$0xff] }
 0x290   : > { %v1921_v59 = vld [vmem:[#allocation2 + $0x18] sm:$0xff]  ;;  %1909 = vst [vmem:[#allocation2 + $0x2b] sm:$0xff] %v6267_v21  ;;  %v6271_v32 = vmul.f32 %v1851_v28, %v1802_v63  ;;  %v1770_v51 = vadd.f32 %v1734_v3, %v6212_v44  ;;  %v4394_v12 = vpop.f32.mrb[125].mxu0  ;;  %v1968_v15 = vpack.c.bf16 %v1957_v10, %v1956_v34  ;;  %4500 = vmatprep.subr.bf16.mxu1 %v6008_v43  ;;  %v4959_v44 = vld [vmem:[#allocation9 + $0x98] sm:$0xff]  }
 0x291   : > { %v1932_v27 = vpack.c.bf16 %v1921_v59, %v1920_v60  ;;  %v1737_v37 = vpop.f32.mrb[126].mxu0  ;;  %4543 = vmatpush3.bf16.msra.mxu0 %v4962_v61  ;;  %v1958_v39 = vld [vmem:[#allocation2 + $0x21] sm:$0xff]  ;;  %v1871_v61 = vpop.permute.xlu1 %1870 }
 0x292   : > { %1910 = vst [vmem:[#allocation2 + $0x33] sm:$0xff] %v6271_v32  ;;  %v1790_v14 = vadd.f32 %v6231_v0, %v1770_v51  ;;  %v1771_v47 = vadd.f32 %v1737_v37, %v6214_v6  ;;  %v4395_v33 = vpop.f32.mrb[127].mxu0  ;;  %4429 = vmatmul.mubr.bf16.gmra.mrb[116].mxu1 %v1968_v15  ;;  %v2650_v50 = vpack.c.bf16 %v6271_v32, %v6267_v21  ;;  %v1856_v6 = vpop.permute.xlu0 %1855  ;;  %v1922_v58 = vld [vmem:[#allocation2 + $0x20] sm:$0xff] }
 0x293   : > { %4473 = vmatmul.mubr.bf16.gmra.mrb[144].mxu0 %v1932_v27  ;;  %4501 = vmatpush3.bf16.msra.mxu1 %v4958_v9  ;;  %v4967_v12 = vld [vmem:[#allocation9 + $0xb0] sm:$0xff]   ;;  %v4968_v27 = vld [vmem:[#allocation9 + $0xe8] sm:$0xff]  }
 0x294   : > { %4432 = vmatprep.mubr.msk.bf16.mxu1 %vm5275_vm0, %v6008_v43  ;;  %v1803_v24 = vmax.f32 %v1790_v14, 0.0  ;;  %v1791_v31 = vadd.f32 %v6231_v0, %v1771_v47  ;;  %4476 = vmatprep.mubr.msk.bf16.mxu0 %vm5275_vm0, %v6008_v43  ;;  %v6412_v45 = vld [vmem:[#allocation2 + $0x1c] sm:$0xff] }
 0x295   : > { %4502 = vmatprep.subr.bf16.mxu1 %v6008_v43  ;;  %4544 = vmatprep.subr.bf16.mxu0 %v6008_v43  ;;  %v4999_v32 = vld [vmem:[#allocation9 + $0x1b0] sm:$0xff]  }
 0x296   : > { %v6287_v30 = vmul.f32 %v1856_v6, %v1803_v24  ;;  %v1804_v54 = vmax.f32 %v1791_v31, 0.0  ;;  %4545 = vmatpush3.bf16.msra.mxu0 %v4963_v20  ;;  %v1866_v29 = vpop.permute.xlu0 %1865  ;;  %v4970_v24 = vld [vmem:[#allocation9 + $0xf0] sm:$0xff]  }
 0x297   : > { %v1742_v53 = vpop.f32.mrb[128].mxu0  ;;  %v1959_v46 = vld [vmem:[#allocation2 + $0x29] sm:$0xff]  ;;  %4503 = vmatpush3.bf16.msra.mxu1 %v4959_v44  ;;  %4546 = vmatprep.subr.bf16.mxu0 %v6008_v43 }
 0x298   : > { %v1923_v4 = vld [vmem:[#allocation2 + $0x28] sm:$0xff]  ;;  %1911 = vst [vmem:[#allocation2 + $0x3b] sm:$0xff] %v6287_v30  ;;  %v6291_v8 = vmul.f32 %v1861_v16, %v1804_v54  ;;  %v1772_v13 = vadd.f32 %v1742_v53, %v6218_v42  ;;  %v4398_v38 = vpop.f32.mrb[129].mxu0  ;;  %v1969_v49 = vpack.c.bf16 %v1959_v46, %v1958_v39  ;;  %4504 = vmatprep.subr.bf16.mxu1 %v6294_v36  ;;  %v1881_v39 = vpop.permute.xlu1 %1880 }
 0x299   : > { %v1933_v26 = vpack.c.bf16 %v1923_v4, %v1922_v58  ;;  %v1745_v55 = vpop.f32.mrb[130].mxu0  ;;  %v1960_v1 = vld [vmem:[#allocation2 + $0x31] sm:$0xff]  ;;  %v4969_v44 = vld [vmem:[#allocation9 + $0xb8] sm:$0xff]  }
 0x29a   : > { %1912 = vst [vmem:[#allocation2 + $0x43] sm:$0xff] %v6291_v8  ;;  %v1792_v43 = vadd.f32 %v6231_v0, %v1772_v13  ;;  %v1773_v2 = vadd.f32 %v1745_v55, %v6220_v48  ;;  %v4399_v56 = vpop.f32.mrb[131].mxu0  ;;  %4433 = vmatmul.mubr.bf16.gmra.mrb[120].mxu1 %v1969_v49  ;;  %v2651_v42 = vpack.c.bf16 %v6291_v8, %v6287_v30  ;;  %v4966_v48 = vld [vmem:[#allocation9 + $0xe0] sm:$0xff]   ;;  %v5003_v8 = vld [vmem:[#allocation9 + $0x1f8] sm:$0xff]  }
 0x29b   : > { %4477 = vmatmul.mubr.bf16.gmra.mrb[148].mxu0 %v1933_v26  ;;  %4436 = vmatprep.mubr.msk.bf16.mxu1 %vm5275_vm0, %v6294_v36  ;;  %v1924_v9 = vld [vmem:[#allocation2 + $0x30] sm:$0xff] }
 0x29c   : > { %4480 = vmatprep.mubr.msk.bf16.mxu0 %vm5275_vm0, %v6294_v36  ;;  %v1805_v5 = vmax.f32 %v1792_v43, 0.0  ;;  %v1793_v23 = vadd.f32 %v6231_v0, %v1773_v2  ;;  %4505 = vmatpush3.bf16.msra.mxu1 %v4961_v57  ;;  %v4971_v57 = vld [vmem:[#allocation9 + $0xf8] sm:$0xff]  }
 0x29d   : > { %4547 = vmatpush3.bf16.msra.mxu0 %v4965_v35  ;;  %4506 = vmatprep.subr.bf16.mxu1 %v6294_v36 }
 0x29e   : > { %4548 = vmatprep.subr.bf16.mxu0 %v6294_v36  ;;  %v6309_v52 = vmul.f32 %v1866_v29, %v1805_v5  ;;  %v1806_v19 = vmax.f32 %v1793_v23, 0.0 }
 0x29f   : > { %v1750_v63 = vpop.f32.mrb[132].mxu0  ;;  %v1961_v34 = vld [vmem:[#allocation2 + $0x39] sm:$0xff] }
 0x2a0   : > { %v1925_v28 = vld [vmem:[#allocation2 + $0x38] sm:$0xff]  ;;  %1913 = vst [vmem:[#allocation2 + $0x4b] sm:$0xff] %v6309_v52  ;;  %v6312_v3 = vmul.f32 %v1871_v61, %v1806_v19  ;;  %v1774_v10 = vadd.f32 %v1750_v63, %v6224_v40  ;;  %v4402_v60 = vpop.f32.mrb[133].mxu0  ;;  %v1970_v59 = vpack.c.bf16 %v1961_v34, %v1960_v1  ;;  %4507 = vmatpush3.bf16.msra.mxu1 %v4964_v11 }
 0x2a1   : > { %v1934_v51 = vpack.c.bf16 %v1925_v28, %v1924_v9  ;;  %v1753_v15 = vpop.f32.mrb[134].mxu0  ;;  %4508 = vmatprep.subr.bf16.mxu1 %v6294_v36  ;;  %4549 = vmatpush3.bf16.msra.mxu0 %v4966_v48  ;;  %v1962_v54 = vld [vmem:[#allocation2 + $0x41] sm:$0xff]  ;;  %v2264_v28 = vld [vmem:[#allocation2 + $0xa] sm:$0xff] }
 0x2a2   : > { %1914 = vst [vmem:[#allocation2 + $0x53] sm:$0xff] %v6312_v3  ;;  %v1794_v37 = vadd.f32 %v6231_v0, %v1774_v10  ;;  %v1775_v14 = vadd.f32 %v1753_v15, %v6226_v18  ;;  %v4403_v47 = vpop.f32.mrb[135].mxu0  ;;  %4437 = vmatmul.mubr.bf16.gmra.mrb[124].mxu1 %v1970_v59  ;;  %v2652_v40 = vpack.c.bf16 %v6312_v3, %v6309_v52  ;;  %v1876_v18 = vpop.permute.xlu0 %1875  ;;  %v1926_v46 = vld [vmem:[#allocation2 + $0x40] sm:$0xff]  ;;  %v2450_v10 = vld [vmem:[#allocation2 + $0x12] sm:$0xff]  ;;  %v4972_v60 = vld [vmem:[#allocation9 + $0x100] sm:$0xff]  }
 0x2a3   : > { %4481 = vmatmul.mubr.bf16.gmra.mrb[152].mxu0 %v1934_v51  ;;  %4440 = vmatprep.mubr.msk.bf16.mxu1 %vm5275_vm0, %v6294_v36  ;;  %v2263_v9 = vld [vmem:[#allocation2 + $0x2] sm:$0xff]  ;;  %v2462_v51 = vpack.c.bf16 %v2450_v10, %v2264_v28  ;;  %v4973_v15 = vld [vmem:[#allocation9 + $0x108] sm:$0xff]   ;;  %v4974_v47 = vld [vmem:[#allocation9 + $0x110] sm:$0xff]  }
 0x2a4   : > { %4484 = vmatprep.mubr.msk.bf16.mxu0 %vm5275_vm0, %v6294_v36  ;;  %v1807_v33 = vmax.f32 %v1794_v37, 0.0  ;;  %v1795_v20 = vadd.f32 %v6231_v0, %v1775_v14  ;;  %4509 = vmatpush3.bf16.msra.mxu1 %v4967_v12  ;;  %v2276_v59 = vpack.c.bf16 %v2264_v28, %v2263_v9  ;;  %v4976_v12 = vld [vmem:[#allocation9 + $0x140] sm:$0xff]   ;;  %v2452_v37 = vld [vmem:[#allocation2 + $0x22] sm:$0xff]  ;;  %v4978_v14 = vld [vmem:[#allocation9 + $0x148] sm:$0xff]  }
 0x2a5   : > { %4550 = vmatprep.subr.bf16.mxu0 %v6294_v36  ;;  %4510 = vmatprep.subr.bf16.mxu1 %v6294_v36  ;;  %v6398_v9 = vld [vmem:[#allocation2 + $0x14] sm:$0xff]  ;;  %v2821_v28 = vld [vmem:[#allocation2 + $0xc] sm:$0xff] }
 0x2a6   : > { %4551 = vmatpush3.bf16.msra.mxu0 %v4968_v27  ;;  %v6328_v31 = vmul.f32 %v1876_v18, %v1807_v33  ;;  %v1808_v6 = vmax.f32 %v1795_v20, 0.0  ;;  %v1886_v56 = vpop.permute.xlu0 %1885  ;;  %v2266_v27 = vld [vmem:[#allocation2 + $0x1a] sm:$0xff]  ;;  %v4975_v18 = vld [vmem:[#allocation9 + $0x118] sm:$0xff]  }
 0x2a7   : > { %4552 = vmatprep.subr.bf16.mxu0 %v6294_v36  ;;  %v1758_v16 = vpop.f32.mrb[136].mxu0  ;;  %v1963_v53 = vld [vmem:[#allocation2 + $0x49] sm:$0xff]  ;;  %v2277_v33 = vpack.c.bf16 %v2266_v27, %v2450_v10  ;;  %v2463_v20 = vpack.c.bf16 %v2452_v37, %v2266_v27  ;;  %v4995_v27 = vld [vmem:[#allocation9 + $0x1d0] sm:$0xff]  }
 0x2a8   : > { %v1927_v58 = vld [vmem:[#allocation2 + $0x48] sm:$0xff]  ;;  %1915 = vst [vmem:[#allocation2 + $0x5b] sm:$0xff] %v6328_v31  ;;  %v6332_v4 = vmul.f32 %v1881_v39, %v1808_v6  ;;  %v1776_v13 = vadd.f32 %v1758_v16, %v6229_v41  ;;  %v1971_v38 = vpack.c.bf16 %v1963_v53, %v1962_v54  ;;  %4511 = vmatpush3.bf16.msra.mxu1 %v4969_v44  ;;  %v4406_v26 = vpop.f32.mrb[137].mxu0  ;;  %v4979_v44 = vld [vmem:[#allocation9 + $0x150] sm:$0xff]   ;;  %v2454_v6 = vld [vmem:[#allocation2 + $0x32] sm:$0xff] }
 0x2a9   : > { %v1935_v49 = vpack.c.bf16 %v1927_v58, %v1926_v46  ;;  %4584 = vmatprep.subr.bf16.mxu1 %v6294_v36  ;;  %v1761_v35 = vpop.f32.mrb[138].mxu0  ;;  %v1964_v23 = vld [vmem:[#allocation2 + $0x51] sm:$0xff]  ;;  %v4981_v53 = vld [vmem:[#allocation9 + $0x158] sm:$0xff]  }
 0x2aa   : > { %4553 = vmatpush3.bf16.msra.mxu0 %v4970_v24  ;;  %1916 = vst [vmem:[#allocation2 + $0x63] sm:$0xff] %v6332_v4  ;;  %v1796_v55 = vadd.f32 %v6231_v0, %v1776_v13  ;;  %4441 = vmatmul.mubr.bf16.gmra.mrb[128].mxu1 %v1971_v38  ;;  %v4407_v43 = vpop.f32.mrb[139].mxu0  ;;  %v2653_v2 = vpack.c.bf16 %v6332_v4, %v6328_v31  ;;  %v1928_v11 = vld [vmem:[#allocation2 + $0x50] sm:$0xff]  ;;  %v2270_v13 = vld [vmem:[#allocation2 + $0x3a] sm:$0xff]  ;;  %v2456_v38 = vld [vmem:[#allocation2 + $0x42] sm:$0xff] }
 0x2ab   : > { %4485 = vmatmul.mubr.bf16.gmra.mrb[156].mxu0 %v1935_v49  ;;  %4444 = vmatprep.mubr.msk.bf16.mxu1 %vm5275_vm0, %v6294_v36  ;;  %v2268_v24 = vld [vmem:[#allocation2 + $0x2a] sm:$0xff]  ;;  %v4980_v46 = vld [vmem:[#allocation9 + $0x128] sm:$0xff]   ;;  %v2279_v49 = vpack.c.bf16 %v2270_v13, %v2454_v6  ;;  %v2465_v26 = vpack.c.bf16 %v2456_v38, %v2270_v13  ;;  %v4986_v43 = vld [vmem:[#allocation9 + $0x170] sm:$0xff]  }
 0x2ac   : > { %4488 = vmatprep.mubr.msk.bf16.mxu0 %vm5275_vm0, %v6294_v36  ;;  %v1809_v41 = vmax.f32 %v1796_v55, 0.0  ;;  %4554 = vmatprep.subr.bf16.mxu0 %v6294_v36  ;;  %v2278_v54 = vpack.c.bf16 %v2268_v24, %v2452_v37  ;;  %v2464_v39 = vpack.c.bf16 %v2454_v6, %v2268_v24  ;;  %v4977_v16 = vld [vmem:[#allocation9 + $0x120] sm:$0xff]   ;;  %v4984_v35 = vld [vmem:[#allocation9 + $0x168] sm:$0xff]   ;;  %v4985_v55 = vld [vmem:[#allocation9 + $0x138] sm:$0xff]  }
 0x2ad   : > { %v4982_v58 = vld [vmem:[#allocation9 + $0x160] sm:$0xff]   ;;  %v4991_v37 = vld [vmem:[#allocation9 + $0x198] sm:$0xff]   ;;  %v5002_v6 = vld [vmem:[#allocation9 + $0x1f0] sm:$0xff]  }
 0x2ae   : > { %4555 = vmatpush3.bf16.msra.mxu0 %v4971_v57  ;;  %v1900_v5 = vmul.f32 %v1886_v56, %v1809_v41  ;;  %v4983_v57 = vld [vmem:[#allocation9 + $0x130] sm:$0xff]   ;;  %v2272_v41 = vld [vmem:[#allocation2 + $0x4a] sm:$0xff]  ;;  %v2458_v56 = vld [vmem:[#allocation2 + $0x52] sm:$0xff] }
 0x2af   : > { %4628 = vmatprep.subr.bf16.mxu0 %v6294_v36  ;;  %v1965_v0 = vld [vmem:[#allocation2 + $0x59] sm:$0xff]  ;;  %v4988_v10 = vld [vmem:[#allocation9 + $0x180] sm:$0xff]   ;;  %v5001_v24 = vld [vmem:[#allocation9 + $0x1b8] sm:$0xff]  }
 0x2b0   : > { %v1929_v29 = vld [vmem:[#allocation2 + $0x58] sm:$0xff]  ;;  %1917 = vst [vmem:[#allocation2 + $0x6b] sm:$0xf] %v1900_v5  ;;  %v1972_v48 = vpack.c.bf16 %v1965_v0, %v1964_v23  ;;  %v2280_v5 = vpack.c.bf16 %v2272_v41, %v2456_v38  ;;  %v2466_v23 = vpack.c.bf16 %v2458_v56, %v2272_v41  ;;  %v4987_v0 = vld [vmem:[#allocation9 + $0x178] sm:$0xff]  }
 0x2b1   : > { %v1936_v19 = vpack.c.bf16 %v1929_v29, %v1928_v11  ;;  %v1966_v1 = vld [vmem:[#allocation2 + $0x61] sm:$0xf]  ;;  %v3193_v4 = vld [vmem:[#allocation2 + $0x15] sm:$0xff] }
 0x2b2   : > { %4445 = vmatmul.mubr.bf16.gmra.mrb[132].mxu1 %v1972_v48  ;;  %v1930_v61 = vld [vmem:[#allocation2 + $0x60] sm:$0xf]  ;;  %v1973_v63 = vpack.c.bf16 %v1966_v1, %v1966_v1  ;;  %v5005_v38 = vld [vmem:[#allocation9 + $0x208] sm:$0xff]  }
 0x2b3   : > { %4489 = vmatmul.mubr.bf16.gmra.mrb[160].mxu0 %v1936_v19  ;;  %4448 = vmatprep.mubr.msk.bf16.mxu1 %vm5275_vm0, %v6294_v36  ;;  %v1937_v34 = vpack.c.bf16 %v1930_v61, %v1930_v61  ;;  %v2274_v11 = vld [vmem:[#allocation2 + $0x5a] sm:$0xff]  ;;  %v2460_v29 = vld [vmem:[#allocation2 + $0x62] sm:$0xff] }
 0x2b4   : > { %4492 = vmatprep.mubr.msk.bf16.mxu0 %vm5275_vm0, %v6294_v36  ;;  %v2281_v48 = vpack.c.bf16 %v2274_v11, %v2458_v56  ;;  %v2467_v19 = vpack.c.bf16 %v2460_v29, %v2274_v11  ;;  %v2275_v1 = vld [vmem:[#allocation2 + $0x62] sm:$0xf]  ;;  %v3197_v56 = vld [vmem:[#allocation2 + $0x35] sm:$0xff]  ;;  %v3200_v29 = vld [vmem:[#allocation2 + $0x4d] sm:$0xff] }
 0x2b5   : > { %v3194_v31 = vld [vmem:[#allocation2 + $0x1d] sm:$0xff]  ;;  %v5009_v11 = vld [vmem:[#allocation9 + $0x228] sm:$0xff]  }
 0x2b6   : > { %v3206_v13 = vpack.c.bf16 %v3194_v31, %v3193_v4  ;;  %v3198_v41 = vld [vmem:[#allocation2 + $0x3d] sm:$0xff] }
 0x2b7   : > { %v2461_v61 = vld [vmem:[#allocation2 + $0x6a] sm:$0xf] }
 0x2b8   : > { %v2647_v52 = vld [vmem:[#allocation2 + $0x6b] sm:$0xf] }
 0x2b9   : > { %v2833_v3 = vld [vmem:[#allocation2 + $0x6c] sm:$0xf] }
 0x2ba   : > { %4449 = vmatmul.mubr.bf16.gmra.mrb[136].mxu1 %v1973_v63  ;;  %v2282_v63 = vpack.c.bf16 %v2275_v1, %v2275_v1 }
 0x2bb   : > { %4493 = vmatmul.mubr.bf16.gmra.mrb[164].mxu0 %v1937_v34  ;;  %4512 = vmatprep.mubr.msk.bf16.mxu1 %vm5275_vm0, %v6294_v36  ;;  %v2468_v34 = vpack.c.bf16 %v2461_v61, %v2461_v61  ;;  %v5010_v61 = vld [vmem:[#allocation9 + $0x230] sm:$0xff]  }
 0x2bc   : > { %4556 = vmatprep.mubr.msk.bf16.mxu0 %vm5275_vm0, %v6294_v36 }
 0x2c2   : > { %4513 = vmatmul.mubr.bf16.vlgmr.msra.gmra.mrb[140].mxu1 %v2276_v59  ;;  %v4992_v59 = vld [vmem:[#allocation9 + $0x1c0] sm:$0xff]  }
 0x2c3   : > { %4557 = vmatmul.mubr.bf16.vlgmr.msra.gmra.mrb[168].mxu0 %v2462_v51  ;;  %4585 = vmatpush3.bf16.msra.mxu1 %v4972_v60  ;;  %v2834_v60 = vpack.c.bf16 %v6398_v9, %v2821_v28  ;;  %v4989_v51 = vld [vmem:[#allocation9 + $0x188] sm:$0xff]  }
 0x2c4   : > { %4516 = vmatprep.mubr.msk.bf16.mxu1 %vm5275_vm0, %v6294_v36  ;;  %4586 = vmatprep.subr.bf16.mxu1 %v6294_v36 }
 0x2c5   : > { %4560 = vmatprep.mubr.msk.bf16.mxu0 %vm5275_vm0, %v6294_v36  ;;  %4629 = vmatpush3.bf16.msra.mxu0 %v4976_v12  ;;  %v6409_v12 = vld [vmem:[#allocation2 + $0x24] sm:$0xff] }
 0x2c6   : > { %4630 = vmatprep.subr.bf16.mxu0 %v6294_v36 }
 0x2c7   : > { %4587 = vmatpush3.bf16.msra.mxu1 %v4973_v15  ;;  %v4994_v15 = vld [vmem:[#allocation9 + $0x1c8] sm:$0xff]  }
 0x2c8   : > { %4588 = vmatprep.subr.bf16.mxu1 %v6294_v36 }
 0x2c9   : > { %4631 = vmatpush3.bf16.msra.mxu0 %v4978_v14  ;;  %v6425_v14 = vld [vmem:[#allocation2 + $0x34] sm:$0xff] }
 0x2ca   : > { %4517 = vmatmul.mubr.bf16.gmra.mrb[144].mxu1 %v2277_v33  ;;  %4632 = vmatprep.subr.bf16.mxu0 %v6294_v36  ;;  %v4996_v33 = vld [vmem:[#allocation9 + $0x1a8] sm:$0xff]  }
 0x2cb   : > { %4561 = vmatmul.mubr.bf16.gmra.mrb[172].mxu0 %v2463_v20  ;;  %4589 = vmatpush3.bf16.msra.mxu1 %v4974_v47  ;;  %v6428_v47 = vld [vmem:[#allocation2 + $0x2c] sm:$0xff] }
 0x2cc   : > { %4520 = vmatprep.mubr.msk.bf16.mxu1 %vm5275_vm0, %v6294_v36  ;;  %4564 = vmatprep.mubr.msk.bf16.mxu0 %vm5275_vm0, %v6294_v36  ;;  %v2836_v62 = vpack.c.bf16 %v6425_v14, %v6428_v47  ;;  %v4998_v20 = vld [vmem:[#allocation9 + $0x1e0] sm:$0xff]  }
 0x2cd   : > { %4590 = vmatprep.subr.bf16.mxu1 %v6294_v36  ;;  %4633 = vmatpush3.bf16.msra.mxu0 %v4979_v44  ;;  %v6441_v44 = vld [vmem:[#allocation2 + $0x44] sm:$0xff] }
 0x2ce   : > { %4634 = vmatprep.subr.bf16.mxu0 %v6294_v36 }
 0x2cf   : > { %4591 = vmatpush3.bf16.msra.mxu1 %v4975_v18  ;;  %v6445_v18 = vld [vmem:[#allocation2 + $0x3c] sm:$0xff] }
 0x2d0   : > { %4592 = vmatprep.subr.bf16.mxu1 %v6294_v36  ;;  %v2837_v21 = vpack.c.bf16 %v6441_v44, %v6445_v18 }
 0x2d1   : > { %4635 = vmatpush3.bf16.msra.mxu0 %v4981_v53 }
 0x2d2   : > { %4521 = vmatmul.mubr.bf16.gmra.mrb[148].mxu1 %v2278_v54  ;;  %4636 = vmatprep.subr.bf16.mxu0 %v6294_v36  ;;  %v6458_v54 = vld [vmem:[#allocation2 + $0x54] sm:$0xff] }
 0x2d3   : > { %4565 = vmatmul.mubr.bf16.gmra.mrb[176].mxu0 %v2464_v39  ;;  %4524 = vmatprep.mubr.msk.bf16.mxu1 %vm5275_vm0, %v6294_v36  ;;  %v6462_v39 = vld [vmem:[#allocation2 + $0x4c] sm:$0xff] }
 0x2d4   : > { %4568 = vmatprep.mubr.msk.bf16.mxu0 %vm5275_vm0, %v6294_v36  ;;  %4593 = vmatpush3.bf16.msra.mxu1 %v4977_v16  ;;  %v2838_v30 = vpack.c.bf16 %v6458_v54, %v6462_v39  ;;  %v6477_v16 = vld [vmem:[#allocation2 + $0x5c] sm:$0xff] }
 0x2d5   : > { %4594 = vmatprep.subr.bf16.mxu1 %v6294_v36  ;;  %4637 = vmatpush3.bf16.msra.mxu0 %v4982_v58  ;;  %v3020_v58 = vpack.c.bf16 %v6412_v45, %v6398_v9  ;;  %v3201_v9 = vld [vmem:[#allocation2 + $0x55] sm:$0xff]  ;;  %v3024_v28 = vpack.c.bf16 %v6477_v16, %v6458_v54 }
 0x2d6   : > { %4638 = vmatprep.subr.bf16.mxu0 %v6294_v36 }
 0x2d8   : > { %4595 = vmatpush3.bf16.msra.mxu1 %v4980_v46  ;;  %v2840_v46 = vpack.c.bf16 %v2833_v3, %v2833_v3 }
 0x2d9   : > { %4596 = vmatprep.subr.bf16.mxu1 %v6294_v36  ;;  %4639 = vmatpush3.bf16.msra.mxu0 %v4984_v35  ;;  %v3021_v35 = vpack.c.bf16 %v6428_v47, %v6409_v12 }
 0x2da   : > { %4525 = vmatmul.mubr.bf16.gmra.mrb[152].mxu1 %v2279_v49  ;;  %4640 = vmatprep.subr.bf16.mxu0 %v6294_v36  ;;  %v3196_v49 = vld [vmem:[#allocation2 + $0x2d] sm:$0xff] }
 0x2db   : > { %4569 = vmatmul.mubr.bf16.gmra.mrb[180].mxu0 %v2465_v26  ;;  %4528 = vmatprep.mubr.msk.bf16.mxu1 %vm5275_vm0, %v6294_v36  ;;  %v3195_v26 = vld [vmem:[#allocation2 + $0x25] sm:$0xff] }
 0x2dc   : > { %4572 = vmatprep.mubr.msk.bf16.mxu0 %vm5275_vm0, %v6294_v36  ;;  %4597 = vmatpush3.bf16.msra.mxu1 %v4983_v57  ;;  %v5006_v57 = vld [vmem:[#allocation9 + $0x210] sm:$0xff]  }
 0x2dd   : > { %4598 = vmatprep.subr.bf16.mxu1 %v6294_v36  ;;  %4641 = vmatpush3.bf16.msra.mxu0 %v4986_v43  ;;  %v5007_v43 = vld [vmem:[#allocation9 + $0x218] sm:$0xff]  }
 0x2de   : > { %4642 = vmatprep.subr.bf16.mxu0 %v6294_v36 }
 0x2e0   : > { %4599 = vmatpush3.bf16.msra.mxu1 %v4985_v55  ;;  %v3207_v55 = vpack.c.bf16 %v3196_v49, %v3195_v26 }
 0x2e1   : > { %4672 = vmatprep.subr.bf16.mxu1 %v6294_v36  ;;  %4643 = vmatpush3.bf16.msra.mxu0 %v4987_v0  ;;  %v5008_v0 = vld [vmem:[#allocation9 + $0x220] sm:$0xff]  }
 0x2e2   : > { %4529 = vmatmul.mubr.bf16.gmra.mrb[156].mxu1 %v2280_v5  ;;  %4716 = vmatprep.subr.bf16.mxu0 %v6294_v36  ;;  %v3022_v5 = vpack.c.bf16 %v6445_v18, %v6425_v14 }
 0x2e3   : > { %4573 = vmatmul.mubr.bf16.gmra.mrb[184].mxu0 %v2466_v23  ;;  %4532 = vmatprep.mubr.msk.bf16.mxu1 %vm5275_vm0, %v6294_v36  ;;  %v3208_v23 = vpack.c.bf16 %v3198_v41, %v3197_v56  ;;  %v3384_v41 = vld [vmem:[#allocation2 + $0x3e] sm:$0xff] }
 0x2e4   : > { %4576 = vmatprep.mubr.msk.bf16.mxu0 %vm5275_vm0, %v6294_v36 }
 0x2ea   : > { %4533 = vmatmul.mubr.bf16.gmra.mrb[160].mxu1 %v2281_v48  ;;  %v3199_v48 = vld [vmem:[#allocation2 + $0x45] sm:$0xff] }
 0x2eb   : > { %4577 = vmatmul.mubr.bf16.gmra.mrb[188].mxu0 %v2467_v19  ;;  %4536 = vmatprep.mubr.msk.bf16.mxu1 %vm5275_vm0, %v6294_v36  ;;  %v3023_v19 = vpack.c.bf16 %v6462_v39, %v6441_v44  ;;  %v3209_v1 = vpack.c.bf16 %v3200_v29, %v3199_v48  ;;  %v3383_v29 = vld [vmem:[#allocation2 + $0x36] sm:$0xff] }
 0x2ec   : > { %4580 = vmatprep.mubr.msk.bf16.mxu0 %vm5275_vm0, %v6294_v36 }
 0x2f2   : > { %4537 = vmatmul.mubr.bf16.gmra.mrb[164].mxu1 %v2282_v63  ;;  %v5011_v63 = vld [vmem:[#allocation9 + $0x238] sm:$0xff]  }
 0x2f3   : > { %4581 = vmatmul.mubr.bf16.gmra.mrb[192].mxu0 %v2468_v34  ;;  %4600 = vmatprep.mubr.msk.bf16.mxu1 %vm5275_vm0, %v6294_v36  ;;  %v3202_v34 = vld [vmem:[#allocation2 + $0x5d] sm:$0xff] }
 0x2f4   : > { %4644 = vmatprep.mubr.msk.bf16.mxu0 %vm5275_vm0, %v6294_v36 }
 0x2fa   : > { %4601 = vmatmul.mubr.bf16.vlgmr.msra.gmra.mrb[168].mxu1 %v2648_v25  ;;  %v2835_v25 = vpack.c.bf16 %v6409_v12, %v6412_v45  ;;  %v3019_v45 = vld [vmem:[#allocation2 + $0x74] sm:$0xf] }
 0x2fb   : > { %4645 = vmatmul.mubr.bf16.vlgmr.msra.gmra.mrb[196].mxu0 %v2834_v60  ;;  %4673 = vmatpush3.bf16.msra.mxu1 %v4988_v10  ;;  %v3210_v10 = vpack.c.bf16 %v3202_v34, %v3201_v9  ;;  %v3018_v60 = vld [vmem:[#allocation2 + $0x6c] sm:$0xff] }
 0x2fc   : > { %4604 = vmatprep.mubr.msk.bf16.mxu1 %vm5275_vm0, %v6294_v36  ;;  %4674 = vmatprep.subr.bf16.mxu1 %v6294_v36  ;;  %v3386_v9 = vld [vmem:[#allocation2 + $0x4e] sm:$0xff] }
 0x2fd   : > { %4648 = vmatprep.mubr.msk.bf16.mxu0 %vm5275_vm0, %v6294_v36  ;;  %4717 = vmatpush3.bf16.msra.mxu0 %v4992_v59  ;;  %v3203_v59 = vld [vmem:[#allocation2 + $0x65] sm:$0xff] }
 0x2fe   : > { %4718 = vmatprep.subr.bf16.mxu0 %v6294_v36 }
 0x2ff   : > { %4675 = vmatpush3.bf16.msra.mxu1 %v4989_v51  ;;  %v3204_v51 = vld [vmem:[#allocation2 + $0x6d] sm:$0xff] }
 0x300   : > { %4676 = vmatprep.subr.bf16.mxu1 %v6294_v36 }
 0x301   : > { %4719 = vmatpush3.bf16.msra.mxu0 %v4994_v15  ;;  %v3211_v15 = vpack.c.bf16 %v3204_v51, %v3203_v59 }
 0x302   : > { %4605 = vmatmul.mubr.bf16.gmra.mrb[172].mxu1 %v2649_v17  ;;  %4720 = vmatprep.subr.bf16.mxu0 %v6294_v36  ;;  %v4997_v17 = vld [vmem:[#allocation9 + $0x1d8] sm:$0xff]  }
 0x303   : > { %4649 = vmatmul.mubr.bf16.gmra.mrb[200].mxu0 %v2835_v25  ;;  %4677 = vmatpush3.bf16.msra.mxu1 %v4990_v22  ;;  %v3205_v22 = vld [vmem:[#allocation2 + $0x75] sm:$0xf] }
 0x304   : > { %4608 = vmatprep.mubr.msk.bf16.mxu1 %vm5275_vm0, %v6294_v36  ;;  %4652 = vmatprep.mubr.msk.bf16.mxu0 %vm5275_vm0, %v6294_v36 }
 0x305   : > { %4678 = vmatprep.subr.bf16.mxu1 %v6294_v36  ;;  %4721 = vmatpush3.bf16.msra.mxu0 %v4995_v27 }
 0x306   : > { %4722 = vmatprep.subr.bf16.mxu0 %v6294_v36 }
 0x307   : > { %4679 = vmatpush3.bf16.msra.mxu1 %v4991_v37 }
 0x308   : > { %4680 = vmatprep.subr.bf16.mxu1 %v6294_v36 }
 0x309   : > { %4723 = vmatpush3.bf16.msra.mxu0 %v4997_v17 }
 0x30a   : > { %4609 = vmatmul.mubr.bf16.gmra.mrb[176].mxu1 %v2650_v50  ;;  %4724 = vmatprep.subr.bf16.mxu0 %v6294_v36  ;;  %v5000_v50 = vld [vmem:[#allocation9 + $0x1e8] sm:$0xff]  }
 0x30b   : > { %4653 = vmatmul.mubr.bf16.gmra.mrb[204].mxu0 %v2836_v62  ;;  %4612 = vmatprep.mubr.msk.bf16.mxu1 %vm5275_vm0, %v6294_v36  ;;  %v3026_v62 = vpack.c.bf16 %v3019_v45, %v3019_v45 }
 0x30c   : > { %4656 = vmatprep.mubr.msk.bf16.mxu0 %vm5275_vm0, %v6294_v36  ;;  %4681 = vmatpush3.bf16.msra.mxu1 %v4993_v7  ;;  %v3212_v7 = vpack.c.bf16 %v3205_v22, %v3205_v22 }
 0x30d   : > { %4682 = vmatprep.subr.bf16.mxu1 %v6294_v36  ;;  %4725 = vmatpush3.bf16.msra.mxu0 %v4998_v20 }
 0x30e   : > { %4726 = vmatprep.subr.bf16.mxu0 %v6294_v36 }
 0x310   : > { %4683 = vmatpush3.bf16.msra.mxu1 %v4996_v33 }
 0x311   : > { %4684 = vmatprep.subr.bf16.mxu1 %v6294_v36  ;;  %4727 = vmatpush3.bf16.msra.mxu0 %v5000_v50  ;;  %v3380_v50 = vld [vmem:[#allocation2 + $0x1e] sm:$0xff] }
 0x312   : > { %4613 = vmatmul.mubr.bf16.gmra.mrb[180].mxu1 %v2651_v42  ;;  %4728 = vmatprep.subr.bf16.mxu0 %v6294_v36  ;;  %v6475_v42 = vld [vmem:[#allocation2 + $0x64] sm:$0xff] }
 0x313   : > { %4657 = vmatmul.mubr.bf16.gmra.mrb[208].mxu0 %v2837_v21  ;;  %4616 = vmatprep.mubr.msk.bf16.mxu1 %vm5275_vm0, %v6294_v36  ;;  %v2839_v53 = vpack.c.bf16 %v6475_v42, %v6477_v16  ;;  %v3025_v12 = vpack.c.bf16 %v3018_v60, %v6475_v42 }
 0x314   : > { %4660 = vmatprep.mubr.msk.bf16.mxu0 %vm5275_vm0, %v6294_v36  ;;  %4685 = vmatpush3.bf16.msra.mxu1 %v4999_v32 }
 0x315   : > { %4686 = vmatprep.subr.bf16.mxu1 %v6294_v36  ;;  %4729 = vmatpush3.bf16.msra.mxu0 %v5002_v6 }
 0x316   : > { %4730 = vmatprep.subr.bf16.mxu0 %v6294_v36 }
 0x318   : > { %4687 = vmatpush3.bf16.msra.mxu1 %v5001_v24 }
 0x319   : > { %4760 = vmatprep.subr.bf16.mxu1 %v6294_v36  ;;  %4731 = vmatpush3.bf16.msra.mxu0 %v5003_v8  ;;  %v3379_v8 = vld [vmem:[#allocation2 + $0x16] sm:$0xff] }
 0x31a   : > { %4617 = vmatmul.mubr.bf16.gmra.mrb[184].mxu1 %v2652_v40  ;;  %v2654_v40 = vpack.c.bf16 %v2647_v52, %v2647_v52  ;;  %v3392_v52 = vpack.c.bf16 %v3380_v50, %v3379_v8  ;;  %v3390_v8 = vld [vmem:[#allocation2 + $0x6e] sm:$0xff] }
 0x31b   : > { %4661 = vmatmul.mubr.bf16.gmra.mrb[212].mxu0 %v2838_v30  ;;  %4620 = vmatprep.mubr.msk.bf16.mxu1 %vm5275_vm0, %v6294_v36 }
 0x31c   : > { %4664 = vmatprep.mubr.msk.bf16.mxu0 %vm5275_vm0, %v6294_v36 }
 0x322   : > { %4621 = vmatmul.mubr.bf16.gmra.mrb[188].mxu1 %v2653_v2  ;;  %v5004_v2 = vld [vmem:[#allocation9 + $0x200] sm:$0xff]  }
 0x323   : > { %4665 = vmatmul.mubr.bf16.gmra.mrb[216].mxu0 %v2839_v53  ;;  %4624 = vmatprep.mubr.msk.bf16.mxu1 %vm5275_vm0, %v6294_v36 }
 0x324   : > { %4668 = vmatprep.mubr.msk.bf16.mxu0 %vm5275_vm0, %v6294_v36 }
 0x32a   : > { %4625 = vmatmul.mubr.bf16.gmra.mrb[192].mxu1 %v2654_v40 }
 0x32b   : > { %4669 = vmatmul.mubr.bf16.gmra.mrb[220].mxu0 %v2840_v46  ;;  %4688 = vmatprep.mubr.msk.bf16.mxu1 %vm5275_vm0, %v6294_v36  ;;  %v3382_v46 = vld [vmem:[#allocation2 + $0x2e] sm:$0xff] }
 0x32c   : > { %4732 = vmatprep.mubr.msk.bf16.mxu0 %vm5275_vm0, %v6294_v36 }
 0x332   : > { %4689 = vmatmul.mubr.bf16.vlgmr.msra.gmra.mrb[196].mxu1 %v3020_v58 }
 0x333   : > { %4733 = vmatmul.mubr.bf16.vlgmr.msra.gmra.mrb[224].mxu0 %v3206_v13  ;;  %4761 = vmatpush3.bf16.msra.mxu1 %v5004_v2 }
 0x334   : > { %4692 = vmatprep.mubr.msk.bf16.mxu1 %vm5275_vm0, %v6294_v36  ;;  %4762 = vmatprep.subr.bf16.mxu1 %v6294_v36 }
 0x335   : > { %4736 = vmatprep.mubr.msk.bf16.mxu0 %vm5275_vm0, %v6294_v36 }
 0x337   : > { %4763 = vmatpush3.bf16.msra.mxu1 %v5005_v38  ;;  %v3381_v38 = vld [vmem:[#allocation2 + $0x26] sm:$0xff] }
 0x338   : > { %4764 = vmatprep.subr.bf16.mxu1 %v6294_v36 }
 0x33a   : > { %4693 = vmatmul.mubr.bf16.gmra.mrb[200].mxu1 %v3021_v35  ;;  %v3393_v35 = vpack.c.bf16 %v3382_v46, %v3381_v38 }
 0x33b   : > { %4737 = vmatmul.mubr.bf16.gmra.mrb[228].mxu0 %v3207_v55  ;;  %4765 = vmatpush3.bf16.msra.mxu1 %v5006_v57 }
 0x33c   : > { %4696 = vmatprep.mubr.msk.bf16.mxu1 %vm5275_vm0, %v6294_v36  ;;  %4740 = vmatprep.mubr.msk.bf16.mxu0 %vm5275_vm0, %v6294_v36 }
 0x33d   : > { %4766 = vmatprep.subr.bf16.mxu1 %v6294_v36 }
 0x33f   : > { %4767 = vmatpush3.bf16.msra.mxu1 %v5007_v43 }
 0x340   : > { %4768 = vmatprep.subr.bf16.mxu1 %v6294_v36 }
 0x342   : > { %4697 = vmatmul.mubr.bf16.gmra.mrb[204].mxu1 %v3022_v5 }
 0x343   : > { %4741 = vmatmul.mubr.bf16.gmra.mrb[232].mxu0 %v3208_v23  ;;  %4700 = vmatprep.mubr.msk.bf16.mxu1 %vm5275_vm0, %v6294_v36 }
 0x344   : > { %4744 = vmatprep.mubr.msk.bf16.mxu0 %vm5275_vm0, %v6294_v36  ;;  %4769 = vmatpush3.bf16.msra.mxu1 %v5008_v0 }
 0x345   : > { %4770 = vmatprep.subr.bf16.mxu1 %v6294_v36 }
 0x348   : > { %4771 = vmatpush3.bf16.msra.mxu1 %v5009_v11 }
 0x349   : > { %4772 = vmatprep.subr.bf16.mxu1 %v6294_v36 }
 0x34a   : > { %4701 = vmatmul.mubr.bf16.gmra.mrb[208].mxu1 %v3023_v19 }
 0x34b   : > { %4745 = vmatmul.mubr.bf16.gmra.mrb[236].mxu0 %v3209_v1  ;;  %4704 = vmatprep.mubr.msk.bf16.mxu1 %vm5275_vm0, %v6294_v36 }
 0x34c   : > { %4748 = vmatprep.mubr.msk.bf16.mxu0 %vm5275_vm0, %v6294_v36  ;;  %4773 = vmatpush3.bf16.msra.mxu1 %v5010_v61  ;;  %v3394_v61 = vpack.c.bf16 %v3384_v41, %v3383_v29 }
 0x34d   : > { %4774 = vmatprep.subr.bf16.mxu1 %v6294_v36 }
 0x350   : > { %4775 = vmatpush3.bf16.msra.mxu1 %v5011_v63 }
 0x352   : > { %4705 = vmatmul.mubr.bf16.gmra.mrb[212].mxu1 %v3024_v28 }
 0x353   : > { %4749 = vmatmul.mubr.bf16.gmra.mrb[240].mxu0 %v3210_v10  ;;  %4708 = vmatprep.mubr.msk.bf16.mxu1 %vm5275_vm0, %v6294_v36 }
 0x354   : > { %4752 = vmatprep.mubr.msk.bf16.mxu0 %vm5275_vm0, %v6294_v36 }
 0x35a   : > { %4709 = vmatmul.mubr.bf16.gmra.mrb[216].mxu1 %v3025_v12  ;;  %v3385_v12 = vld [vmem:[#allocation2 + $0x46] sm:$0xff] }
 0x35b   : > { %4753 = vmatmul.mubr.bf16.gmra.mrb[244].mxu0 %v3211_v15  ;;  %4712 = vmatprep.mubr.msk.bf16.mxu1 %vm5275_vm0, %v6294_v36 }
 0x35c   : > { %4756 = vmatprep.mubr.msk.bf16.mxu0 %vm5275_vm0, %v6294_v36 }
 0x35d   : > { %v2073_v25 = vpop.f32.mrb[112].mxu1 }
 0x35e   : > { %v2209_v27 = vpop.f32.mrb[140].mxu0  ;;  %v4426_v14 = vpop.f32.mrb[113].mxu1 }
 0x35f   : > { %v6534_v37 = vadd.f32 %v2209_v27, %v2073_v25  ;;  %v4470_v47 = vpop.f32.mrb[141].mxu0  ;;  %v2076_v17 = vpop.f32.mrb[114].mxu1  ;;  %v3395_v25 = vpack.c.bf16 %v3386_v9, %v3385_v12 }
 0x360   : > { %v2212_v33 = vpop.f32.mrb[142].mxu0  ;;  %v4427_v44 = vpop.f32.mrb[115].mxu1  ;;  %v3388_v47 = vld [vmem:[#allocation2 + $0x5e] sm:$0xff] }
 0x361   : > { %v6536_v20 = vadd.f32 %v2212_v33, %v2076_v17  ;;  %v4471_v18 = vpop.f32.mrb[143].mxu0 }
 0x362   : > { %4713 = vmatmul.mubr.bf16.gmra.mrb[220].mxu1 %v3026_v62  ;;  %v3387_v18 = vld [vmem:[#allocation2 + $0x56] sm:$0xff] }
 0x363   : > { %4757 = vmatmul.mubr.bf16.gmra.mrb[248].mxu0 %v3212_v7  ;;  %4776 = vmatprep.mubr.msk.bf16.mxu1 %vm5275_vm0, %v6294_v36 }
 0x365   : > { %v2081_v21 = vpop.f32.mrb[116].mxu1 }
 0x366   : > { %v2217_v32 = vpop.f32.mrb[144].mxu0  ;;  %v4430_v6 = vpop.f32.mrb[117].mxu1 }
 0x367   : > { %v6540_v24 = vadd.f32 %v2217_v32, %v2081_v21  ;;  %v4474_v54 = vpop.f32.mrb[145].mxu0  ;;  %v2084_v39 = vpop.f32.mrb[118].mxu1  ;;  %v3396_v6 = vpack.c.bf16 %v3388_v47, %v3387_v18 }
 0x368   : > { %v2220_v30 = vpop.f32.mrb[146].mxu0  ;;  %v4431_v16 = vpop.f32.mrb[119].mxu1 }
 0x369   : > { %v6542_v42 = vadd.f32 %v2220_v30, %v2084_v39  ;;  %v4475_v53 = vpop.f32.mrb[147].mxu0  ;;  %v3389_v30 = vld [vmem:[#allocation2 + $0x66] sm:$0xff] }
 0x36a   : > { %4777 = vmatmul.mubr.bf16.vlgmr.msra.gmra.mrb[224].mxu1 %v3392_v52 }
 0x36b   : > { %4780 = vmatprep.mubr.msk.bf16.mxu1 %vm5275_vm0, %v6294_v36 }
 0x36d   : > { %v2089_v3 = vpop.f32.mrb[120].mxu1 }
 0x36e   : > { %v2225_v40 = vpop.f32.mrb[148].mxu0  ;;  %v4434_v4 = vpop.f32.mrb[121].mxu1 }
 0x36f   : > { %v6546_v31 = vadd.f32 %v2225_v40, %v2089_v3  ;;  %v4478_v2 = vpop.f32.mrb[149].mxu0  ;;  %v2092_v58 = vpop.f32.mrb[122].mxu1 }
 0x370   : > { %v2228_v13 = vpop.f32.mrb[150].mxu0  ;;  %v4435_v26 = vpop.f32.mrb[123].mxu1  ;;  %v3397_v2 = vpack.c.bf16 %v3390_v8, %v3389_v30 }
 0x371   : > { %v6548_v49 = vadd.f32 %v2228_v13, %v2092_v58  ;;  %v4479_v57 = vpop.f32.mrb[151].mxu0  ;;  %v3391_v58 = vld [vmem:[#allocation2 + $0x76] sm:$0xf] }
 0x372   : > { %4781 = vmatmul.mubr.bf16.gmra.mrb[228].mxu1 %v3393_v35 }
 0x373   : > { %4784 = vmatprep.mubr.msk.bf16.mxu1 %vm5275_vm0, %v6294_v36 }
 0x375   : > { %v2097_v55 = vpop.f32.mrb[124].mxu1 }
 0x376   : > { %v2233_v43 = vpop.f32.mrb[152].mxu0  ;;  %v4438_v5 = vpop.f32.mrb[125].mxu1 }
 0x377   : > { %v6552_v56 = vadd.f32 %v2233_v43, %v2097_v55  ;;  %v4482_v23 = vpop.f32.mrb[153].mxu0  ;;  %v2100_v0 = vpop.f32.mrb[126].mxu1  ;;  %v3398_v55 = vpack.c.bf16 %v3391_v58, %v3391_v58 }
 0x378   : > { %v2236_v11 = vpop.f32.mrb[154].mxu0  ;;  %v4439_v19 = vpop.f32.mrb[127].mxu1 }
 0x379   : > { %v6554_v48 = vadd.f32 %v2236_v11, %v2100_v0  ;;  %v4483_v1 = vpop.f32.mrb[155].mxu0 }
 0x37a   : > { %4785 = vmatmul.mubr.bf16.gmra.mrb[232].mxu1 %v3394_v61 }
 0x37b   : > { %4788 = vmatprep.mubr.msk.bf16.mxu1 %vm5275_vm0, %v6294_v36 }
 0x37d   : > { %v2105_v63 = vpop.f32.mrb[128].mxu1 }
 0x37e   : > { %v2241_v34 = vpop.f32.mrb[156].mxu0  ;;  %v4442_v10 = vpop.f32.mrb[129].mxu1 }
 0x37f   : > { %v6558_v28 = vadd.f32 %v2241_v34, %v2105_v63  ;;  %v4486_v60 = vpop.f32.mrb[157].mxu0  ;;  %v2108_v59 = vpop.f32.mrb[130].mxu1 }
 0x380   : > { %v2244_v51 = vpop.f32.mrb[158].mxu0  ;;  %v4443_v45 = vpop.f32.mrb[131].mxu1 }
 0x381   : > { %v6560_v15 = vadd.f32 %v2244_v51, %v2108_v59  ;;  %v4487_v22 = vpop.f32.mrb[159].mxu0 }
 0x382   : > { %4789 = vmatmul.mubr.bf16.gmra.mrb[236].mxu1 %v3395_v25 }
 0x383   : > { %4792 = vmatprep.mubr.msk.bf16.mxu1 %vm5275_vm0, %v6294_v36 }
 0x385   : > { %v2113_v27 = vpop.f32.mrb[132].mxu1 }
 0x386   : > { %v2249_v14 = vpop.f32.mrb[160].mxu0  ;;  %v4446_v7 = vpop.f32.mrb[133].mxu1 }
 0x387   : > { %v6564_v62 = vadd.f32 %v2249_v14, %v2113_v27  ;;  %v4490_v17 = vpop.f32.mrb[161].mxu0  ;;  %v2116_v33 = vpop.f32.mrb[134].mxu1 }
 0x388   : > { %v2252_v44 = vpop.f32.mrb[162].mxu0  ;;  %v4447_v32 = vpop.f32.mrb[135].mxu1 }
 0x389   : > { %v6566_v21 = vadd.f32 %v2252_v44, %v2116_v33  ;;  %v4491_v50 = vpop.f32.mrb[163].mxu0 }
 0x38a   : > { %4793 = vmatmul.mubr.bf16.gmra.mrb[240].mxu1 %v3396_v6 }
 0x38b   : > { %4796 = vmatprep.mubr.msk.bf16.mxu1 %vm5275_vm0, %v6294_v36 }
 0x38d   : > { %v2121_v54 = vpop.f32.mrb[136].mxu1 }
 0x38e   : > { %v2257_v39 = vpop.f32.mrb[164].mxu0  ;;  %v4450_v53 = vpop.f32.mrb[137].mxu1 }
 0x38f   : > { %v6570_v16 = vadd.f32 %v2257_v39, %v2121_v54  ;;  %v4494_v52 = vpop.f32.mrb[165].mxu0  ;;  %v2124_v3 = vpop.f32.mrb[138].mxu1 }
 0x390   : > { %v2260_v40 = vpop.f32.mrb[166].mxu0  ;;  %v4451_v46 = vpop.f32.mrb[139].mxu1 }
 0x391   : > { %v4495_v4 = vpop.f32.mrb[167].mxu0 }
 0x392   : > { %4797 = vmatmul.mubr.bf16.gmra.mrb[244].mxu1 %v3397_v2 }
 0x393   : > { %4800 = vmatprep.mubr.msk.bf16.mxu1 %vm5275_vm0, %v6294_v36 }
 0x395   : > { %v2382_v13 = vpop.f32.mrb[140].mxu1 }
 0x396   : > { %v2568_v38 = vpop.f32.mrb[168].mxu0  ;;  %v2436_v26 = vadd.f32 %v2382_v13, %v6534_v37  ;;  %v4514_v57 = vpop.f32.mrb[141].mxu1 }
 0x397   : > { %v4558_v35 = vpop.f32.mrb[169].mxu0  ;;  %v2385_v43 = vpop.f32.mrb[142].mxu1 }
 0x398   : > { %v2571_v41 = vpop.f32.mrb[170].mxu0  ;;  %v6575_v5 = vadd.f32 %v2568_v38, %v2436_v26  ;;  %v2437_v23 = vadd.f32 %v2385_v43, %v6536_v20  ;;  %v4515_v0 = vpop.f32.mrb[143].mxu1 }
 0x399   : > { %v4559_v11 = vpop.f32.mrb[171].mxu0 }
 0x39a   : > { %v6578_v29 = vadd.f32 %v2571_v41, %v2437_v23  ;;  %4801 = vmatmul.mubr.bf16.gmra.mrb[248].mxu1 %v3398_v55 }
 0x39d   : > { %v2390_v36 = vpop.f32.mrb[144].mxu1 }
 0x39e   : > { %v2576_v19 = vpop.f32.mrb[172].mxu0  ;;  %v2438_v1 = vadd.f32 %v2390_v36, %v6540_v24  ;;  %v4518_v61 = vpop.f32.mrb[145].mxu1 }
 0x39f   : > { %v4562_v37 = vpop.f32.mrb[173].mxu0  ;;  %v2393_v63 = vpop.f32.mrb[146].mxu1 }
 0x3a0   : > { %v2579_v34 = vpop.f32.mrb[174].mxu0  ;;  %v6581_v9 = vadd.f32 %v2576_v19, %v2438_v1  ;;  %v2439_v10 = vadd.f32 %v2393_v63, %v6542_v42  ;;  %v4519_v60 = vpop.f32.mrb[147].mxu1 }
 0x3a1   : > { %v4563_v59 = vpop.f32.mrb[175].mxu0 }
 0x3a2   : > { %v6584_v20 = vadd.f32 %v2579_v34, %v2439_v10 }
 0x3a5   : > { %v2398_v51 = vpop.f32.mrb[148].mxu1 }
 0x3a6   : > { %v2584_v12 = vpop.f32.mrb[176].mxu0  ;;  %v2440_v45 = vadd.f32 %v2398_v51, %v6546_v31  ;;  %v4522_v22 = vpop.f32.mrb[149].mxu1 }
 0x3a7   : > { %v4566_v25 = vpop.f32.mrb[177].mxu0  ;;  %v2401_v27 = vpop.f32.mrb[150].mxu1 }
 0x3a8   : > { %v2587_v24 = vpop.f32.mrb[178].mxu0  ;;  %v6587_v14 = vadd.f32 %v2584_v12, %v2440_v45  ;;  %v2441_v47 = vadd.f32 %v2401_v27, %v6548_v49  ;;  %v4523_v7 = vpop.f32.mrb[151].mxu1 }
 0x3a9   : > { %v4567_v17 = vpop.f32.mrb[179].mxu0 }
 0x3aa   : > { %v6590_v33 = vadd.f32 %v2587_v24, %v2441_v47 }
 0x3ad   : > { %v2406_v42 = vpop.f32.mrb[152].mxu1 }
 0x3ae   : > { %v2592_v44 = vpop.f32.mrb[180].mxu0  ;;  %v2442_v18 = vadd.f32 %v2406_v42, %v6552_v56  ;;  %v4526_v32 = vpop.f32.mrb[153].mxu1 }
 0x3af   : > { %v4570_v50 = vpop.f32.mrb[181].mxu0  ;;  %v2409_v6 = vpop.f32.mrb[154].mxu1 }
 0x3b0   : > { %v2595_v31 = vpop.f32.mrb[182].mxu0  ;;  %v6593_v54 = vadd.f32 %v2592_v44, %v2442_v18  ;;  %v2443_v39 = vadd.f32 %v2409_v6, %v6554_v48  ;;  %v4527_v30 = vpop.f32.mrb[155].mxu1 }
 0x3b1   : > { %v4571_v8 = vpop.f32.mrb[183].mxu0 }
 0x3b2   : > { %v6596_v53 = vadd.f32 %v2595_v31, %v2443_v39 }
 0x3b5   : > { %v2414_v49 = vpop.f32.mrb[156].mxu1 }
 0x3b6   : > { %v2600_v52 = vpop.f32.mrb[184].mxu0  ;;  %v2444_v3 = vadd.f32 %v2414_v49, %v6558_v28  ;;  %v4530_v40 = vpop.f32.mrb[157].mxu1 }
 0x3b7   : > { %v4574_v46 = vpop.f32.mrb[185].mxu0  ;;  %v2417_v4 = vpop.f32.mrb[158].mxu1 }
 0x3b8   : > { %v2603_v56 = vpop.f32.mrb[186].mxu0  ;;  %v6599_v2 = vadd.f32 %v2600_v52, %v2444_v3  ;;  %v2445_v58 = vadd.f32 %v2417_v4, %v6560_v15  ;;  %v4531_v13 = vpop.f32.mrb[159].mxu1 }
 0x3b9   : > { %v4575_v38 = vpop.f32.mrb[187].mxu0 }
 0x3ba   : > { %v6602_v26 = vadd.f32 %v2603_v56, %v2445_v58 }
 0x3bd   : > { %v2422_v48 = vpop.f32.mrb[160].mxu1 }
 0x3be   : > { %v2608_v57 = vpop.f32.mrb[188].mxu0  ;;  %v2446_v35 = vadd.f32 %v2422_v48, %v6564_v62  ;;  %v4534_v55 = vpop.f32.mrb[161].mxu1 }
 0x3bf   : > { %v4578_v43 = vpop.f32.mrb[189].mxu0  ;;  %v2425_v41 = vpop.f32.mrb[162].mxu1 }
 0x3c0   : > { %v2611_v28 = vpop.f32.mrb[190].mxu0  ;;  %v6605_v23 = vadd.f32 %v2608_v57, %v2446_v35  ;;  %v2447_v0 = vadd.f32 %v2425_v41, %v6566_v21  ;;  %v4535_v11 = vpop.f32.mrb[163].mxu1 }
 0x3c1   : > { %v4579_v36 = vpop.f32.mrb[191].mxu0 }
 0x3c2   : > { %v6608_v19 = vadd.f32 %v2611_v28, %v2447_v0 }
 0x3c5   : > { %v2430_v15 = vpop.f32.mrb[164].mxu1 }
 0x3c6   : > { %v2616_v1 = vpop.f32.mrb[192].mxu0  ;;  %v2448_v61 = vadd.f32 %v2430_v15, %v6570_v16  ;;  %v4538_v37 = vpop.f32.mrb[165].mxu1 }
 0x3c7   : > { %v4582_v63 = vpop.f32.mrb[193].mxu0  ;;  %v2433_v34 = vpop.f32.mrb[166].mxu1 }
 0x3c8   : > { %v2619_v62 = vpop.f32.mrb[194].mxu0  ;;  %v6611_v10 = vadd.f32 %v2616_v1, %v2448_v61  ;;  %v4539_v60 = vpop.f32.mrb[167].mxu1 }
 0x3c9   : > { %v4583_v59 = vpop.f32.mrb[195].mxu0 }
 0x3cd   : > { %v2754_v51 = vpop.f32.mrb[168].mxu1 }
 0x3ce   : > { %v2940_v12 = vpop.f32.mrb[196].mxu0  ;;  %v2808_v21 = vadd.f32 %v2754_v51, %v6575_v5  ;;  %v4602_v45 = vpop.f32.mrb[169].mxu1 }
 0x3cf   : > { %v4646_v22 = vpop.f32.mrb[197].mxu0  ;;  %v2757_v25 = vpop.f32.mrb[170].mxu1 }
 0x3d0   : > { %v2943_v27 = vpop.f32.mrb[198].mxu0  ;;  %v6614_v24 = vadd.f32 %v2940_v12, %v2808_v21  ;;  %v2809_v16 = vadd.f32 %v2757_v25, %v6578_v29  ;;  %v4603_v47 = vpop.f32.mrb[171].mxu1 }
 0x3d1   : > { %v4647_v7 = vpop.f32.mrb[199].mxu0 }
 0x3d2   : > { %v6617_v17 = vadd.f32 %v2943_v27, %v2809_v16 }
 0x3d5   : > { %v2762_v42 = vpop.f32.mrb[172].mxu1 }
 0x3d6   : > { %v2948_v44 = vpop.f32.mrb[200].mxu0  ;;  %v2810_v18 = vadd.f32 %v2762_v42, %v6581_v9  ;;  %v4606_v32 = vpop.f32.mrb[173].mxu1 }
 0x3d7   : > { %v4650_v50 = vpop.f32.mrb[201].mxu0  ;;  %v2765_v6 = vpop.f32.mrb[174].mxu1 }
 0x3d8   : > { %v2951_v5 = vpop.f32.mrb[202].mxu0  ;;  %v6620_v31 = vadd.f32 %v2948_v44, %v2810_v18  ;;  %v2811_v39 = vadd.f32 %v2765_v6, %v6584_v20  ;;  %v4607_v30 = vpop.f32.mrb[175].mxu1 }
 0x3d9   : > { %v4651_v8 = vpop.f32.mrb[203].mxu0 }
 0x3da   : > { %v6623_v49 = vadd.f32 %v2951_v5, %v2811_v39 }
 0x3dd   : > { %v2770_v29 = vpop.f32.mrb[176].mxu1 }
 0x3de   : > { %v2956_v52 = vpop.f32.mrb[204].mxu0  ;;  %v2812_v3 = vadd.f32 %v2770_v29, %v6587_v14  ;;  %v4610_v40 = vpop.f32.mrb[177].mxu1 }
 0x3df   : > { %v4654_v46 = vpop.f32.mrb[205].mxu0  ;;  %v2773_v4 = vpop.f32.mrb[178].mxu1 }
 0x3e0   : > { %v2959_v9 = vpop.f32.mrb[206].mxu0  ;;  %v6626_v56 = vadd.f32 %v2956_v52, %v2812_v3  ;;  %v2813_v58 = vadd.f32 %v2773_v4, %v6590_v33  ;;  %v4611_v13 = vpop.f32.mrb[179].mxu1 }
 0x3e1   : > { %v4655_v38 = vpop.f32.mrb[207].mxu0 }
 0x3e2   : > { %v6629_v48 = vadd.f32 %v2959_v9, %v2813_v58 }
 0x3e5   : > { %v2778_v20 = vpop.f32.mrb[180].mxu1 }
 0x3e6   : > { %v2964_v57 = vpop.f32.mrb[208].mxu0  ;;  %v2814_v35 = vadd.f32 %v2778_v20, %v6593_v54  ;;  %v4614_v55 = vpop.f32.mrb[181].mxu1 }
 0x3e7   : > { %v4658_v43 = vpop.f32.mrb[209].mxu0  ;;  %v2781_v41 = vpop.f32.mrb[182].mxu1 }
 0x3e8   : > { %v2967_v14 = vpop.f32.mrb[210].mxu0  ;;  %v6632_v28 = vadd.f32 %v2964_v57, %v2814_v35  ;;  %v2815_v0 = vadd.f32 %v2781_v41, %v6596_v53  ;;  %v4615_v11 = vpop.f32.mrb[183].mxu1 }
 0x3e9   : > { %v4659_v36 = vpop.f32.mrb[211].mxu0 }
 0x3ea   : > { %v6635_v15 = vadd.f32 %v2967_v14, %v2815_v0 }
 0x3ed   : > { %v2786_v33 = vpop.f32.mrb[184].mxu1 }
 0x3ee   : > { %v2972_v1 = vpop.f32.mrb[212].mxu0  ;;  %v2816_v61 = vadd.f32 %v2786_v33, %v6599_v2  ;;  %v4618_v37 = vpop.f32.mrb[185].mxu1 }
 0x3ef   : > { %v4662_v63 = vpop.f32.mrb[213].mxu0  ;;  %v2789_v34 = vpop.f32.mrb[186].mxu1 }
 0x3f0   : > { %v2975_v54 = vpop.f32.mrb[214].mxu0  ;;  %v6638_v62 = vadd.f32 %v2972_v1, %v2816_v61  ;;  %v2817_v60 = vadd.f32 %v2789_v34, %v6602_v26  ;;  %v4619_v59 = vpop.f32.mrb[187].mxu1 }
 0x3f1   : > { %v4663_v51 = vpop.f32.mrb[215].mxu0 }
 0x3f2   : > { %v6641_v12 = vadd.f32 %v2975_v54, %v2817_v60 }
 0x3f5   : > { %v2794_v53 = vpop.f32.mrb[188].mxu1 }
 0x3f6   : > { %v2980_v21 = vpop.f32.mrb[216].mxu0  ;;  %v2818_v45 = vadd.f32 %v2794_v53, %v6605_v23  ;;  %v4622_v22 = vpop.f32.mrb[189].mxu1 }
 0x3f7   : > { %v4666_v25 = vpop.f32.mrb[217].mxu0  ;;  %v2797_v27 = vpop.f32.mrb[190].mxu1 }
 0x3f8   : > { %v2983_v2 = vpop.f32.mrb[218].mxu0  ;;  %v6644_v16 = vadd.f32 %v2980_v21, %v2818_v45  ;;  %v2819_v47 = vadd.f32 %v2797_v27, %v6608_v19  ;;  %v4623_v7 = vpop.f32.mrb[191].mxu1 }
 0x3f9   : > { %v4667_v42 = vpop.f32.mrb[219].mxu0 }
 0x3fa   : > { %v6647_v44 = vadd.f32 %v2983_v2, %v2819_v47 }
 0x3fd   : > { %v2802_v26 = vpop.f32.mrb[192].mxu1 }
 0x3fe   : > { %v2988_v18 = vpop.f32.mrb[220].mxu0  ;;  %v2820_v32 = vadd.f32 %v2802_v26, %v6611_v10  ;;  %v4626_v50 = vpop.f32.mrb[193].mxu1 }
 0x3ff   : > { %v4670_v6 = vpop.f32.mrb[221].mxu0  ;;  %v2805_v5 = vpop.f32.mrb[194].mxu1 }
 0x400   : > { %v2991_v23 = vpop.f32.mrb[222].mxu0  ;;  %v6650_v39 = vadd.f32 %v2988_v18, %v2820_v32  ;;  %v4627_v30 = vpop.f32.mrb[195].mxu1 }
 0x401   : > { %v4671_v8 = vpop.f32.mrb[223].mxu0 }
 0x405   : > { %v3126_v29 = vpop.f32.mrb[196].mxu1 }
 0x406   : > { %v3312_v52 = vpop.f32.mrb[224].mxu0  ;;  %v3180_v19 = vadd.f32 %v3126_v29, %v6614_v24  ;;  %v4690_v3 = vpop.f32.mrb[197].mxu1 }
 0x407   : > { %v4734_v40 = vpop.f32.mrb[225].mxu0  ;;  %v3129_v46 = vpop.f32.mrb[198].mxu1 }
 0x408   : > { %v3315_v4 = vpop.f32.mrb[226].mxu0  ;;  %v6653_v9 = vadd.f32 %v3312_v52, %v3180_v19  ;;  %v3181_v10 = vadd.f32 %v3129_v46, %v6617_v17  ;;  %v4691_v58 = vpop.f32.mrb[199].mxu1 }
 0x409   : > { %v4735_v13 = vpop.f32.mrb[227].mxu0 }
 0x40a   : > { %v6656_v38 = vadd.f32 %v3315_v4, %v3181_v10 }
 0x40d   : > { %v3134_v20 = vpop.f32.mrb[200].mxu1 }
 0x40e   : > { %v3320_v57 = vpop.f32.mrb[228].mxu0  ;;  %v3182_v35 = vadd.f32 %v3134_v20, %v6620_v31  ;;  %v4694_v55 = vpop.f32.mrb[201].mxu1 }
 0x40f   : > { %v4738_v43 = vpop.f32.mrb[229].mxu0  ;;  %v3137_v41 = vpop.f32.mrb[202].mxu1 }
 0x410   : > { %v3323_v24 = vpop.f32.mrb[230].mxu0  ;;  %v6659_v14 = vadd.f32 %v3320_v57, %v3182_v35  ;;  %v3183_v0 = vadd.f32 %v3137_v41, %v6623_v49  ;;  %v4695_v11 = vpop.f32.mrb[203].mxu1 }
 0x411   : > { %v4739_v36 = vpop.f32.mrb[231].mxu0 }
 0x412   : > { %v6662_v33 = vadd.f32 %v3323_v24, %v3183_v0 }
 0x415   : > { %v3142_v17 = vpop.f32.mrb[204].mxu1 }
 0x416   : > { %v3328_v1 = vpop.f32.mrb[232].mxu0  ;;  %v3184_v61 = vadd.f32 %v3142_v17, %v6626_v56  ;;  %v4698_v37 = vpop.f32.mrb[205].mxu1 }
 0x417   : > { %v4742_v63 = vpop.f32.mrb[233].mxu0  ;;  %v3145_v34 = vpop.f32.mrb[206].mxu1 }
 0x418   : > { %v3331_v31 = vpop.f32.mrb[234].mxu0  ;;  %v6665_v54 = vadd.f32 %v3328_v1, %v3184_v61  ;;  %v3185_v60 = vadd.f32 %v3145_v34, %v6629_v48  ;;  %v4699_v59 = vpop.f32.mrb[207].mxu1  ;;  %v6692_v1 = vld [vmem:[#allocation11] ss:$0 sm:$0xff] }
 0x419   : > { %v4743_v51 = vpop.f32.mrb[235].mxu0 }
 0x41a   : > { %v6668_v53 = vadd.f32 %v3331_v31, %v3185_v60 }
 0x41d   : > { %v3150_v49 = vpop.f32.mrb[208].mxu1 }
 0x41e   : > { %v3336_v21 = vpop.f32.mrb[236].mxu0  ;;  %v3186_v45 = vadd.f32 %v3150_v49, %v6632_v28  ;;  %v4702_v22 = vpop.f32.mrb[209].mxu1 }
 0x41f   : > { %v4746_v25 = vpop.f32.mrb[237].mxu0  ;;  %v3153_v27 = vpop.f32.mrb[210].mxu1 }
 0x420   : > { %v3339_v56 = vpop.f32.mrb[238].mxu0  ;;  %v6671_v2 = vadd.f32 %v3336_v21, %v3186_v45  ;;  %v3187_v47 = vadd.f32 %v3153_v27, %v6635_v15  ;;  %v4703_v7 = vpop.f32.mrb[211].mxu1 }
 0x421   : > { %v4747_v42 = vpop.f32.mrb[239].mxu0 }
 0x422   : > { %v6674_v26 = vadd.f32 %v3339_v56, %v3187_v47 }
 0x425   : > { %v3158_v48 = vpop.f32.mrb[212].mxu1 }
 0x426   : > { %v3344_v18 = vpop.f32.mrb[240].mxu0  ;;  %v3188_v32 = vadd.f32 %v3158_v48, %v6638_v62  ;;  %v4706_v50 = vpop.f32.mrb[213].mxu1 }
 0x427   : > { %v4750_v6 = vpop.f32.mrb[241].mxu0  ;;  %v3161_v5 = vpop.f32.mrb[214].mxu1 }
 0x428   : > { %v3347_v28 = vpop.f32.mrb[242].mxu0  ;;  %v6677_v23 = vadd.f32 %v3344_v18, %v3188_v32  ;;  %v3189_v30 = vadd.f32 %v3161_v5, %v6641_v12  ;;  %v4707_v8 = vpop.f32.mrb[215].mxu1 }
 0x429   : > { %v4751_v29 = vpop.f32.mrb[243].mxu0 }
 0x42a   : > { %v6680_v52 = vadd.f32 %v3347_v28, %v3189_v30 }
 0x42d   : > { %v3166_v15 = vpop.f32.mrb[216].mxu1 }
 0x42e   : > { %v3352_v19 = vpop.f32.mrb[244].mxu0  ;;  %v3190_v3 = vadd.f32 %v3166_v15, %v6644_v16  ;;  %v4710_v40 = vpop.f32.mrb[217].mxu1 }
 0x42f   : > { %v4754_v46 = vpop.f32.mrb[245].mxu0  ;;  %v3169_v4 = vpop.f32.mrb[218].mxu1 }
 0x430   : > { %v3355_v62 = vpop.f32.mrb[246].mxu0  ;;  %v6683_v10 = vadd.f32 %v3352_v19, %v3190_v3  ;;  %v3191_v58 = vadd.f32 %v3169_v4, %v6647_v44  ;;  %v4711_v13 = vpop.f32.mrb[219].mxu1 }
 0x431   : > { %v4755_v20 = vpop.f32.mrb[247].mxu0 }
 0x432   : > { %v6686_v12 = vadd.f32 %v3355_v62, %v3191_v58 }
 0x435   : > { %v3174_v57 = vpop.f32.mrb[220].mxu1 }
 0x436   : > { %v3360_v35 = vpop.f32.mrb[248].mxu0  ;;  %v3192_v55 = vadd.f32 %v3174_v57, %v6650_v39  ;;  %v4714_v43 = vpop.f32.mrb[221].mxu1 }
 0x437   : > { %v4758_v41 = vpop.f32.mrb[249].mxu0  ;;  %v3177_v16 = vpop.f32.mrb[222].mxu1 }
 0x438   : > { %v3363_v24 = vpop.f32.mrb[250].mxu0  ;;  %v6689_v0 = vadd.f32 %v3360_v35, %v3192_v55  ;;  %v4715_v11 = vpop.f32.mrb[223].mxu1 }
 0x439   : > { %v4759_v36 = vpop.f32.mrb[251].mxu0 }
 0x43d   : > { %v3498_v17 = vpop.f32.mrb[224].mxu1 }
 0x43e   : > { %v3552_v44 = vadd.f32 %v3498_v17, %v6653_v9  ;;  %v4778_v61 = vpop.f32.mrb[225].mxu1 }
 0x43f   : > { %v3501_v37 = vpop.f32.mrb[226].mxu1 }
 0x440   : > { %v3572_v63 = vadd.f32 %v6692_v1, %v3552_v44  ;;  %v3553_v39 = vadd.f32 %v3501_v37, %v6656_v38  ;;  %v4779_v34 = vpop.f32.mrb[227].mxu1 }
 0x442   : > { %v3585_v31 = vmax.f32 %v3572_v63, 0.0  ;;  %v3573_v60 = vadd.f32 %v6692_v1, %v3553_v39 }
 0x444   : > { %3598 = vst [vmem:[%s6698_s19] sm:$0xff] %v3585_v31  ;;  %v3586_v59 = vmax.f32 %v3573_v60, 0.0 }
 0x445   : > { %v3506_v51 = vpop.f32.mrb[228].mxu1 }
 0x446   : > { %3599 = vst [vmem:[%s6698_s19 + $0x8] sm:$0xff] %v3586_v59  ;;  %v3554_v9 = vadd.f32 %v3506_v51, %v6659_v14  ;;  %v4782_v49 = vpop.f32.mrb[229].mxu1 }
 0x447   : > { %v3509_v21 = vpop.f32.mrb[230].mxu1 }
 0x448   : > { %v3574_v38 = vadd.f32 %v6692_v1, %v3554_v9  ;;  %v3555_v45 = vadd.f32 %v3509_v21, %v6662_v33  ;;  %v4783_v22 = vpop.f32.mrb[231].mxu1 }
 0x44a   : > { %v3587_v25 = vmax.f32 %v3574_v38, 0.0  ;;  %v3575_v27 = vadd.f32 %v6692_v1, %v3555_v45 }
 0x44c   : > { %3600 = vst [vmem:[%s6698_s19 + $0x10] sm:$0xff] %v3587_v25  ;;  %v3588_v56 = vmax.f32 %v3575_v27, 0.0 }
 0x44d   : > { %v3514_v47 = vpop.f32.mrb[232].mxu1 }
 0x44e   : > { %3601 = vst [vmem:[%s6698_s19 + $0x18] sm:$0xff] %v3588_v56  ;;  %v3556_v7 = vadd.f32 %v3514_v47, %v6665_v54  ;;  %v4786_v42 = vpop.f32.mrb[233].mxu1 }
 0x44f   : > { %v3517_v14 = vpop.f32.mrb[234].mxu1 }
 0x450   : > { %v3576_v48 = vadd.f32 %v6692_v1, %v3556_v7  ;;  %v3557_v18 = vadd.f32 %v3517_v14, %v6668_v53  ;;  %v4787_v33 = vpop.f32.mrb[235].mxu1 }
 0x452   : > { %v3589_v32 = vmax.f32 %v3576_v48, 0.0  ;;  %v3577_v50 = vadd.f32 %v6692_v1, %v3557_v18 }
 0x454   : > { %3602 = vst [vmem:[%s6698_s19 + $0x20] sm:$0xff] %v3589_v32  ;;  %v3590_v6 = vmax.f32 %v3577_v50, 0.0 }
 0x455   : > { %v3522_v5 = vpop.f32.mrb[236].mxu1 }
 0x456   : > { %3603 = vst [vmem:[%s6698_s19 + $0x28] sm:$0xff] %v3590_v6  ;;  %v3558_v28 = vadd.f32 %v3522_v5, %v6671_v2  ;;  %v4790_v30 = vpop.f32.mrb[237].mxu1 }
 0x457   : > { %v3525_v54 = vpop.f32.mrb[238].mxu1 }
 0x458   : > { %v3578_v8 = vadd.f32 %v6692_v1, %v3558_v28  ;;  %v3559_v29 = vadd.f32 %v3525_v54, %v6674_v26  ;;  %v4791_v53 = vpop.f32.mrb[239].mxu1 }
 0x45a   : > { %v3591_v15 = vmax.f32 %v3578_v8, 0.0  ;;  %v3579_v19 = vadd.f32 %v6692_v1, %v3559_v29 }
 0x45c   : > { %3604 = vst [vmem:[%s6698_s19 + $0x30] sm:$0xff] %v3591_v15  ;;  %v3592_v3 = vmax.f32 %v3579_v19, 0.0 }
 0x45d   : > { %v3530_v40 = vpop.f32.mrb[240].mxu1 }
 0x45e   : > { %3605 = vst [vmem:[%s6698_s19 + $0x38] sm:$0xff] %v3592_v3  ;;  %v3560_v46 = vadd.f32 %v3530_v40, %v6677_v23  ;;  %v4794_v4 = vpop.f32.mrb[241].mxu1 }
 0x45f   : > { %v3533_v2 = vpop.f32.mrb[242].mxu1 }
 0x460   : > { %v3580_v62 = vadd.f32 %v6692_v1, %v3560_v46  ;;  %v3561_v58 = vadd.f32 %v3533_v2, %v6680_v52  ;;  %v4795_v26 = vpop.f32.mrb[243].mxu1 }
 0x462   : > { %v3593_v13 = vmax.f32 %v3580_v62, 0.0  ;;  %v3581_v20 = vadd.f32 %v6692_v1, %v3561_v58 }
 0x464   : > { %3606 = vst [vmem:[%s6698_s19 + $0x40] sm:$0xff] %v3593_v13  ;;  %v3594_v57 = vmax.f32 %v3581_v20, 0.0 }
 0x465   : > { %v3538_v35 = vpop.f32.mrb[244].mxu1 }
 0x466   : > { %3607 = vst [vmem:[%s6698_s19 + $0x48] sm:$0xff] %v3594_v57  ;;  %v3562_v55 = vadd.f32 %v3538_v35, %v6683_v10  ;;  %v4798_v23 = vpop.f32.mrb[245].mxu1 }
 0x467   : > { %v3541_v43 = vpop.f32.mrb[246].mxu1 }
 0x468   : > { %v3582_v41 = vadd.f32 %v6692_v1, %v3562_v55  ;;  %v3563_v52 = vadd.f32 %v3541_v43, %v6686_v12  ;;  %v4799_v16 = vpop.f32.mrb[247].mxu1 }
 0x46a   : > { %v3595_v24 = vmax.f32 %v3582_v41, 0.0  ;;  %v3583_v11 = vadd.f32 %v6692_v1, %v3563_v52 }
 0x46c   : > { %3608 = vst [vmem:[%s6698_s19 + $0x50] sm:$0xff] %v3595_v24  ;;  %v3596_v36 = vmax.f32 %v3583_v11, 0.0 }
 0x46d   : > { %v3546_v17 = vpop.f32.mrb[248].mxu1 }
 0x46e   : > { %3609 = vst [vmem:[%s6698_s19 + $0x58] sm:$0xff] %v3596_v36  ;;  %v3564_v10 = vadd.f32 %v3546_v17, %v6689_v0  ;;  %v4802_v44 = vpop.f32.mrb[249].mxu1 }
 0x46f   : > { %v3549_v61 = vpop.f32.mrb[250].mxu1 }
 0x470   : > { %v3584_v37 = vadd.f32 %v6692_v1, %v3564_v10  ;;  %v4803_v12 = vpop.f32.mrb[251].mxu1 }
 0x472   : > { %v3597_v63 = vmax.f32 %v3584_v37, 0.0 }
 0x474   : > { %3610 = vst [vmem:[%s6698_s19 + $0x60] sm:$0xf] %v3597_v63 }
 0x475   : > { %5197 = shalt.err (!%p5194_p8)
}
 0x476   : > { %s5198_s14 = scalar_lea.hbm %s6739_s26, 1664  ;;  %s5202_s28 = scalar_lea.hbm %s6792_s6, 3328 }
 0x477   : > { %p5199_p6 = scmp.ne.s32.totalorder %s6739_s26, %s5198_s14  ;;  %p5203_p0 = scmp.lt.u32.totalorder %s6739_s26, %s6792_s6 }
 0x478   : > { %p5204_p5 = scmp.lt.u32.totalorder %s5202_s28, %s5198_s14  ;;  %p5206_p7 = scmp.lt.u32.totalorder %s5198_s14, %s6739_s26 }
 0x479   : > { %p5200_p10 = pnand %p5199_p6, %p6811_p4 }
 0x47a   : > { %p5205_p9 = por %p5204_p5, %p5203_p0 }
 0x47b   : > { %p5201_p11 = pneg %p5200_p10 }
 0x47c   : > { %p5207_p12 = por %p5206_p7, %p5205_p9 }
 0x47e   : > { %p5208_p13 = pnand %p5207_p12, %p5201_p11 }
 0x480   : > { %5211 = shalt.err (!%p5208_p13)
}
 0x481   : > { %s5278_s15 = smov 128   ;;  %s5279_s16 = smov 8  }
 0x482   : > { %4828 = dma.vmem_to_hbm [thread:$0]  (%p6811_p4), %s6741_s7, 1664, %s6739_s26, %s3612_s27, %s5278_s15, %s5278_s15, %s5279_s16  }
 0x483 PF: > { %s3640_s25 = sand.u32 1, %s5250_s21   ;;  %p6812_p1 = scmp.ne.s32.totalorder %s6802_s12, 0 }
 0x484   : > { %p6813_p3 = scmp.ge.s32.totalorder %s5262_s24, 2  ;;  %s3641_s13 = scalar_lea.sflag [#allocation5], %s3640_s25 }
 0x486   : > { %p4851_p2 = pnand %p6813_p3, %p6812_p1 }
 0x488   : > { %5245 = dma.done.wait (!%p4851_p2), %s3641_s13, 1664  }
 0x489   : > { %5247 = vsyncadd (!%p4851_p2), %s3641_s13, 4294965632  ;;  %p22_p8 = scmp.ge.s32.totalorder %s5480_s17, 4   ;;  %s6814_s21 = smov %s5254_s22 }
 0x48a   : > { %s6815_s22 = smov %s5258_s23  ;;  %s6816_s23 = smov %s5492_s10 }
 0x48b   : > { %s6817_s24 = smov %s5480_s17  ;;  %24 = sbr.rel (!%p22_p8) target bundleno = 8 (0x8), region = 125 }
 0x492   :  { %3646 = vsyncpa [#allocation4], 1 }
 0x493   :  { %3648 = vsyncpa [#allocation4 + $0x1], 1 }
 0x494   :  { %3649 = vsyncpa [#allocation7], 1 }
 0x495   :  { %3650 = vsyncpa [#allocation10], 1 }
 0x496   :  { %3651 = vsyncpa [#allocation13], 1 }
 0x497   :  { %3652 = vsyncpa [#allocation5], 1 }
 0x498   :  { %3654 = vsyncpa [#allocation5 + $0x1], 1 }

</bundles_post_ra>
